<compile_context>
chip_gen: v7x
topology: tpu7x:2x2x1
jax: 0.10.0
libtpu: 0.0.40
codegen_flags: <defaults>
</compile_context>

<pallas_src>
import functools
import math

import jax
import jax.numpy as jnp
from jax import lax
from jax.experimental import pallas as pl
from jax.experimental.pallas import tpu as pltpu


# ----------------------------------------------------------------------------------
# Pallas kernel: Conv3d with kernel (KT,KH,KW), stride (1,2,2), zero padding already
# applied, inputs pre-split into the 4 spatial (row,col) parity phases.
# ----------------------------------------------------------------------------------
def _conv3d_s2_kernel(x00_ref, x01_ref, x10_ref, x11_ref, w_ref, b_ref, o_ref,
                      *, ksize, h_out, w_out, act):
    kt, kh, kw = ksize
    t = pl.program_id(2)                      # temporal output index (stride 1)
    phase = ((x00_ref, x01_ref), (x10_ref, x11_ref))
    cob = w_ref.shape[-1]

    @pl.loop(0, h_out)
    def _row(ho):
        # f32 vreg accumulator for one output row: (W_out, Cout_block)
        acc = jnp.zeros((w_out, cob), dtype=jnp.float32)
        for dt in range(kt):
            for dh in range(kh):
                x_ph = phase[dh % 2]
                oh = dh // 2
                for dw in range(kw):
                    xr = x_ph[dw % 2]
                    ow = dw // 2
                    # contiguous slice: dynamic indices only on leading dims
                    row = xr[t + dt, ho + oh, ow:ow + w_out, :]        # (W_out, Cin)
                    w_tap = w_ref[(dt * kh + dh) * kw + dw]            # (Cin, Cout_blk)
                    acc = acc + jnp.dot(row, w_tap,
                                        preferred_element_type=jnp.float32)
        out = acc + b_ref[...]                                          # (1, Cout_blk)
        if act == "leaky_relu":
            out = jnp.where(out >= 0.0, out, 0.2 * out)
        elif act == "sigmoid":
            out = jax.nn.sigmoid(out)
        o_ref[0, ho] = out.astype(o_ref.dtype)


def conv3d_s2_pallas(x, w, b, padding, act):
    """Conv3d, stride (1, 2, 2), zero padding `padding`, fused bias + activation.

    x: (B, T, H, W, Cin) f32     w: (KT, KH, KW, Cin, Cout)     b: (Cout,)
    returns (B, T_out, H_out, W_out, Cout) f32
    """
    B, T, H, W, Cin = x.shape
    KT, KH, KW, _, Cout = w.shape
    pad_t, pad_h, pad_w = padding

    T_out = T + 2 * pad_t - KT + 1
    H_out = (H + 2 * pad_h - KH) // 2 + 1
    W_out = (W + 2 * pad_w - KW) // 2 + 1
    Tp = T + 2 * pad_t
    Hp = H + 2 * pad_h
    Wp = W + 2 * pad_w
    Hp_e = Hp + (Hp % 2)   # make even so the 2x2 phase split is uniform
    Wp_e = Wp + (Wp % 2)   # (extra pad rows/cols are never read)
    Hp2, Wp2 = Hp_e // 2, Wp_e // 2

    xp = jnp.pad(x, ((0, 0), (pad_t, pad_t),
                     (pad_h, pad_h + (Hp_e - Hp)),
                     (pad_w, pad_w + (Wp_e - Wp)),
                     (0, 0)))
    # 4-phase (space-to-depth) split: stride-2 windows become contiguous slices.
    phases = [xp[:, :, i::2, j::2, :].reshape(B * Tp, Hp2, Wp2, Cin)
              for i in (0, 1) for j in (0, 1)]

    # Tile Cout to <=128 lanes (keeps the double-buffered weight block small enough
    # for every TPU generation, incl. v7x's 64 MiB VMEM).
    co_blk = 128 if Cout % 128 == 0 else Cout
    n_co = Cout // co_blk

    w_flat = w.reshape(KT * KH * KW, Cin, Cout)
    b2 = b.reshape(1, Cout)

    kernel = functools.partial(_conv3d_s2_kernel, ksize=(KT, KH, KW),
                               h_out=H_out, w_out=W_out, act=act)

    phase_spec = pl.BlockSpec((Tp, Hp2, Wp2, Cin), lambda bi, ci, ti: (bi, 0, 0, 0))
    w_spec = pl.BlockSpec((KT * KH * KW, Cin, co_blk), lambda bi, ci, ti: (0, 0, ci))
    b_spec = pl.BlockSpec((1, co_blk), lambda bi, ci, ti: (0, ci))
    out_spec = pl.BlockSpec((1, H_out, W_out, co_blk),
                            lambda bi, ci, ti: (bi * T_out + ti, 0, 0, ci))

    out = pl.pallas_call(
        kernel,
        out_shape=jax.ShapeDtypeStruct((B * T_out, H_out, W_out, Cout), jnp.float32),
        grid=(B, n_co, T_out),
        in_specs=[phase_spec, phase_spec, phase_spec, phase_spec, w_spec, b_spec],
        out_specs=out_spec,
        compiler_params=pltpu.CompilerParams(
            dimension_semantics=("parallel", "parallel", "arbitrary"),
            vmem_limit_bytes=48 * 1024 * 1024,
        ),
    )(*phases, w_flat, b2)

    return out.reshape(B, T_out, H_out, W_out, Cout)


# ----------------------------------------------------------------------------------
# Parameters (spectral norm = weight preprocessing, matches torch spectral_norm math)
# ----------------------------------------------------------------------------------
def spectral_normalize(w, key, n_iter=3, eps=1e-12):
    """W / sigma_max(W) with W flattened to (Cout, KT*KH*KW*Cin), power iteration."""
    cout = w.shape[-1]
    wm = w.reshape(-1, cout).T                      # (Cout, rest)
    u = jax.random.normal(key, (cout,), jnp.float32)
    u = u / (jnp.linalg.norm(u) + eps)
    v = None
    for _ in range(n_iter):
        v = wm.T @ u
        v = v / (jnp.linalg.norm(v) + eps)
        u = wm @ v
        u = u / (jnp.linalg.norm(u) + eps)
    sigma = jnp.dot(u, wm @ v)
    return w / sigma


def init_params(key, nc_in, nf=64):
    cfg = [
        (nc_in,  nf,     (1, 1, 1), True),   # conv1 (padding=1 -> (1,1,1)), SN
        (nf,     nf * 2, (1, 2, 2), True),   # conv2, SN
        (nf * 2, nf * 4, (1, 2, 2), True),   # conv3, SN
        (nf * 4, nf * 4, (1, 2, 2), True),   # conv4, SN
        (nf * 4, nf * 4, (1, 2, 2), True),   # conv5, SN
        (nf * 4, nf * 4, (1, 2, 2), False),  # conv6: norm=None -> no SN, no activation
    ]
    params = []
    for i, (cin, cout, pad, use_sn) in enumerate(cfg):
        kw_, kb_, ku_ = jax.random.split(jax.random.fold_in(key, i), 3)
        fan_in = 3 * 5 * 5 * cin
        w = jax.random.normal(kw_, (3, 5, 5, cin, cout), jnp.float32) / math.sqrt(fan_in)
        b = 0.01 * jax.random.normal(kb_, (cout,), jnp.float32)
        if use_sn:
            w = spectral_normalize(w, ku_)
        params.append((w, b, pad))
    return params


# ----------------------------------------------------------------------------------
# Full forward (Pallas) and pure-JAX reference
# ----------------------------------------------------------------------------------
def discriminator_forward_pallas(xs, params, use_sigmoid=True):
    # xs: (B, T, C, H, W)  (PyTorch layout).  The torch transpose(1,2) -> NCDHW is
    # implicit in our channels-last NDHWC convention.
    x = jnp.transpose(xs, (0, 1, 3, 4, 2))          # (B, T, H, W, C)
    n = len(params)
    for i, (w, b, pad) in enumerate(params):
        if i < n - 1:
            act = "leaky_relu"
        else:
            act = "sigmoid" if use_sigmoid else "none"
        x = conv3d_s2_pallas(x, w, b, pad, act)
    # back to PyTorch output layout (B, T, C, H, W) == transpose(1,2) of NCDHW
    return jnp.transpose(x, (0, 1, 4, 2, 3))


def discriminator_forward_ref(xs, params, use_sigmoid=True):
    x = jnp.transpose(xs, (0, 1, 3, 4, 2))
    dn = ("NDHWC", "DHWIO", "NDHWC")
    n = len(params)
    for i, (w, b, pad) in enumerate(params):
        x = lax.conv_general_dilated(
            x, w, window_strides=(1, 2, 2),
            padding=[(pad[0], pad[0]), (pad[1], pad[1]), (pad[2], pad[2])],
            dimension_numbers=dn, precision=lax.Precision.HIGHEST)
        x = x + b
        if i < n - 1:
            x = jnp.where(x >= 0.0, x, 0.2 * x)
        elif use_sigmoid:
            x = jax.nn.sigmoid(x)
    return jnp.transpose(x, (0, 1, 4, 2, 3))


if __name__ == "__main__":
    key = jax.random.PRNGKey(0)
    k_in, k_par = jax.random.split(key)

    B, T, C, H, W = 2, 2, 4, 16, 16          # (batch, frames, channels, height, width)
    nf = 64
    xs = jax.random.normal(k_in, (B, T, C, H, W), dtype=jnp.float32)
    params = init_params(k_par, C, nf)

    out = discriminator_forward_pallas(xs, params)
    out = jax.block_until_ready(out)

    ref = discriminator_forward_ref(xs, params)
    ref = jax.block_until_ready(ref)

    assert out.shape == ref.shape == (B, T, nf * 4, 1, 1), (out.shape, ref.shape)
    assert jnp.allclose(out, ref, rtol=2e-3, atol=2e-3), float(jnp.max(jnp.abs(out - ref)))

    print("KERNEL_OK")
</pallas_src>

<mosaic_0001>
module attributes {stable_mosaic.version = 11 : i64} {
  func.func @_conv3d_s2_kernel(%arg0: i32, %arg1: i32, %arg2: i32, %arg3: memref<4x9x9x4xf32, #tpu.memory_space<vmem>>, %arg4: memref<4x9x9x4xf32, #tpu.memory_space<vmem>>, %arg5: memref<4x9x9x4xf32, #tpu.memory_space<vmem>>, %arg6: memref<4x9x9x4xf32, #tpu.memory_space<vmem>>, %arg7: memref<75x4x64xf32, #tpu.memory_space<vmem>>, %arg8: memref<1x64xf32, #tpu.memory_space<vmem>>, %arg9: memref<1x7x7x64xf32, #tpu.memory_space<vmem>>) attributes {dimension_semantics = [#tpu.dimension_semantics<parallel>, #tpu.dimension_semantics<parallel>, #tpu.dimension_semantics<arbitrary>], iteration_bounds = array<i64: 2, 1, 2>, scalar_prefetch = 0 : i64, scratch_operands = 0 : i64, tpu.core_type = #tpu.core_type<tc>, window_params = [{transform_indices = @transform_0, window_bounds = array<i64: 4, 9, 9, 4>}, {transform_indices = @transform_1, window_bounds = array<i64: 4, 9, 9, 4>}, {transform_indices = @transform_2, window_bounds = array<i64: 4, 9, 9, 4>}, {transform_indices = @transform_3, window_bounds = array<i64: 4, 9, 9, 4>}, {transform_indices = @transform_4, window_bounds = array<i64: 75, 4, 64>}, {transform_indices = @transform_5, window_bounds = array<i64: 1, 64>}, {transform_indices = @transform_6, window_bounds = array<i64: 1, 7, 7, 64>}]} {
    %c0_i32 = arith.constant 0 : i32
    %c7_i32 = arith.constant 7 : i32
    %0 = arith.addi %c0_i32, %c7_i32 : i32
    %c1_i32 = arith.constant 1 : i32
    scf.for %arg10 = %c0_i32 to %0 step %c1_i32  : i32 {
      %c1_i32_1 = arith.constant 1 : i32
      %1 = arith.muli %arg10, %c1_i32_1 : i32
      %c0_i32_2 = arith.constant 0 : i32
      %2 = arith.addi %c0_i32_2, %1 : i32
      %cst = arith.constant 0.000000e+00 : f32
      %3 = vector.broadcast %cst : f32 to vector<7x64xf32>
      %c0_i32_3 = arith.constant 0 : i32
      %4 = arith.addi %arg2, %c0_i32_3 : i32
      %c0_i32_4 = arith.constant 0 : i32
      %5 = arith.addi %2, %c0_i32_4 : i32
      %6 = arith.index_cast %4 : i32 to index
      %7 = arith.index_cast %5 : i32 to index
      %c0 = arith.constant 0 : index
      %c0_5 = arith.constant 0 : index
      %8 = vector.load %arg3[%6, %7, %c0, %c0_5] : memref<4x9x9x4xf32, #tpu.memory_space<vmem>>, vector<1x1x7x4xf32>
      %9 = vector.shape_cast %8 : vector<1x1x7x4xf32> to vector<7x4xf32>
      %c0_6 = arith.constant 0 : index
      %c0_7 = arith.constant 0 : index
      %c0_8 = arith.constant 0 : index
      %10 = vector.load %arg7[%c0_6, %c0_7, %c0_8] : memref<75x4x64xf32, #tpu.memory_space<vmem>>, vector<1x4x64xf32>
      %11 = vector.shape_cast %10 : vector<1x4x64xf32> to vector<4x64xf32>
      %cst_9 = arith.constant dense<0.000000e+00> : vector<7x64xf32>
      %12 = tpu.matmul %9, %11, %cst_9 {dimension_numbers = #tpu.dot_dimension_numbers<[1], [0], [0], [1], [0, 0, 1, 1], [], []>} : vector<7x4xf32>, vector<4x64xf32>, vector<7x64xf32> -> vector<7x64xf32>
      %13 = arith.addf %3, %12 : vector<7x64xf32>
      %c0_i32_10 = arith.constant 0 : i32
      %14 = arith.addi %arg2, %c0_i32_10 : i32
      %c0_i32_11 = arith.constant 0 : i32
      %15 = arith.addi %2, %c0_i32_11 : i32
      %16 = arith.index_cast %14 : i32 to index
      %17 = arith.index_cast %15 : i32 to index
      %c0_12 = arith.constant 0 : index
      %c0_13 = arith.constant 0 : index
      %18 = vector.load %arg4[%16, %17, %c0_12, %c0_13] : memref<4x9x9x4xf32, #tpu.memory_space<vmem>>, vector<1x1x7x4xf32>
      %19 = vector.shape_cast %18 : vector<1x1x7x4xf32> to vector<7x4xf32>
      %c1 = arith.constant 1 : index
      %c0_14 = arith.constant 0 : index
      %c0_15 = arith.constant 0 : index
      %20 = vector.load %arg7[%c1, %c0_14, %c0_15] : memref<75x4x64xf32, #tpu.memory_space<vmem>>, vector<1x4x64xf32>
      %21 = vector.shape_cast %20 : vector<1x4x64xf32> to vector<4x64xf32>
      %cst_16 = arith.constant dense<0.000000e+00> : vector<7x64xf32>
      %22 = tpu.matmul %19, %21, %cst_16 {dimension_numbers = #tpu.dot_dimension_numbers<[1], [0], [0], [1], [0, 0, 1, 1], [], []>} : vector<7x4xf32>, vector<4x64xf32>, vector<7x64xf32> -> vector<7x64xf32>
      %23 = arith.addf %13, %22 : vector<7x64xf32>
      %c0_i32_17 = arith.constant 0 : i32
      %24 = arith.addi %arg2, %c0_i32_17 : i32
      %c0_i32_18 = arith.constant 0 : i32
      %25 = arith.addi %2, %c0_i32_18 : i32
      %26 = arith.index_cast %24 : i32 to index
      %27 = arith.index_cast %25 : i32 to index
      %c1_19 = arith.constant 1 : index
      %c0_20 = arith.constant 0 : index
      %28 = vector.load %arg3[%26, %27, %c1_19, %c0_20] : memref<4x9x9x4xf32, #tpu.memory_space<vmem>>, vector<1x1x7x4xf32>
      %29 = vector.shape_cast %28 : vector<1x1x7x4xf32> to vector<7x4xf32>
      %c2 = arith.constant 2 : index
      %c0_21 = arith.constant 0 : index
      %c0_22 = arith.constant 0 : index
      %30 = vector.load %arg7[%c2, %c0_21, %c0_22] : memref<75x4x64xf32, #tpu.memory_space<vmem>>, vector<1x4x64xf32>
      %31 = vector.shape_cast %30 : vector<1x4x64xf32> to vector<4x64xf32>
      %cst_23 = arith.constant dense<0.000000e+00> : vector<7x64xf32>
      %32 = tpu.matmul %29, %31, %cst_23 {dimension_numbers = #tpu.dot_dimension_numbers<[1], [0], [0], [1], [0, 0, 1, 1], [], []>} : vector<7x4xf32>, vector<4x64xf32>, vector<7x64xf32> -> vector<7x64xf32>
      %33 = arith.addf %23, %32 : vector<7x64xf32>
      %c0_i32_24 = arith.constant 0 : i32
      %34 = arith.addi %arg2, %c0_i32_24 : i32
      %c0_i32_25 = arith.constant 0 : i32
      %35 = arith.addi %2, %c0_i32_25 : i32
      %36 = arith.index_cast %34 : i32 to index
      %37 = arith.index_cast %35 : i32 to index
      %c1_26 = arith.constant 1 : index
      %c0_27 = arith.constant 0 : index
      %38 = vector.load %arg4[%36, %37, %c1_26, %c0_27] : memref<4x9x9x4xf32, #tpu.memory_space<vmem>>, vector<1x1x7x4xf32>
      %39 = vector.shape_cast %38 : vector<1x1x7x4xf32> to vector<7x4xf32>
      %c3 = arith.constant 3 : index
      %c0_28 = arith.constant 0 : index
      %c0_29 = arith.constant 0 : index
      %40 = vector.load %arg7[%c3, %c0_28, %c0_29] : memref<75x4x64xf32, #tpu.memory_space<vmem>>, vector<1x4x64xf32>
      %41 = vector.shape_cast %40 : vector<1x4x64xf32> to vector<4x64xf32>
      %cst_30 = arith.constant dense<0.000000e+00> : vector<7x64xf32>
      %42 = tpu.matmul %39, %41, %cst_30 {dimension_numbers = #tpu.dot_dimension_numbers<[1], [0], [0], [1], [0, 0, 1, 1], [], []>} : vector<7x4xf32>, vector<4x64xf32>, vector<7x64xf32> -> vector<7x64xf32>
      %43 = arith.addf %33, %42 : vector<7x64xf32>
      %c0_i32_31 = arith.constant 0 : i32
      %44 = arith.addi %arg2, %c0_i32_31 : i32
      %c0_i32_32 = arith.constant 0 : i32
      %45 = arith.addi %2, %c0_i32_32 : i32
      %46 = arith.index_cast %44 : i32 to index
      %47 = arith.index_cast %45 : i32 to index
      %c2_33 = arith.constant 2 : index
      %c0_34 = arith.constant 0 : index
      %48 = vector.load %arg3[%46, %47, %c2_33, %c0_34] : memref<4x9x9x4xf32, #tpu.memory_space<vmem>>, vector<1x1x7x4xf32>
      %49 = vector.shape_cast %48 : vector<1x1x7x4xf32> to vector<7x4xf32>
      %c4 = arith.constant 4 : index
      %c0_35 = arith.constant 0 : index
      %c0_36 = arith.constant 0 : index
      %50 = vector.load %arg7[%c4, %c0_35, %c0_36] : memref<75x4x64xf32, #tpu.memory_space<vmem>>, vector<1x4x64xf32>
      %51 = vector.shape_cast %50 : vector<1x4x64xf32> to vector<4x64xf32>
      %cst_37 = arith.constant dense<0.000000e+00> : vector<7x64xf32>
      %52 = tpu.matmul %49, %51, %cst_37 {dimension_numbers = #tpu.dot_dimension_numbers<[1], [0], [0], [1], [0, 0, 1, 1], [], []>} : vector<7x4xf32>, vector<4x64xf32>, vector<7x64xf32> -> vector<7x64xf32>
      %53 = arith.addf %43, %52 : vector<7x64xf32>
      %c0_i32_38 = arith.constant 0 : i32
      %54 = arith.addi %arg2, %c0_i32_38 : i32
      %c0_i32_39 = arith.constant 0 : i32
      %55 = arith.addi %2, %c0_i32_39 : i32
      %56 = arith.index_cast %54 : i32 to index
      %57 = arith.index_cast %55 : i32 to index
      %c0_40 = arith.constant 0 : index
      %c0_41 = arith.constant 0 : index
      %58 = vector.load %arg5[%56, %57, %c0_40, %c0_41] : memref<4x9x9x4xf32, #tpu.memory_space<vmem>>, vector<1x1x7x4xf32>
      %59 = vector.shape_cast %58 : vector<1x1x7x4xf32> to vector<7x4xf32>
      %c5 = arith.constant 5 : index
      %c0_42 = arith.constant 0 : index
      %c0_43 = arith.constant 0 : index
      %60 = vector.load %arg7[%c5, %c0_42, %c0_43] : memref<75x4x64xf32, #tpu.memory_space<vmem>>, vector<1x4x64xf32>
      %61 = vector.shape_cast %60 : vector<1x4x64xf32> to vector<4x64xf32>
      %cst_44 = arith.constant dense<0.000000e+00> : vector<7x64xf32>
      %62 = tpu.matmul %59, %61, %cst_44 {dimension_numbers = #tpu.dot_dimension_numbers<[1], [0], [0], [1], [0, 0, 1, 1], [], []>} : vector<7x4xf32>, vector<4x64xf32>, vector<7x64xf32> -> vector<7x64xf32>
      %63 = arith.addf %53, %62 : vector<7x64xf32>
      %c0_i32_45 = arith.constant 0 : i32
      %64 = arith.addi %arg2, %c0_i32_45 : i32
      %c0_i32_46 = arith.constant 0 : i32
      %65 = arith.addi %2, %c0_i32_46 : i32
      %66 = arith.index_cast %64 : i32 to index
      %67 = arith.index_cast %65 : i32 to index
      %c0_47 = arith.constant 0 : index
      %c0_48 = arith.constant 0 : index
      %68 = vector.load %arg6[%66, %67, %c0_47, %c0_48] : memref<4x9x9x4xf32, #tpu.memory_space<vmem>>, vector<1x1x7x4xf32>
      %69 = vector.shape_cast %68 : vector<1x1x7x4xf32> to vector<7x4xf32>
      %c6 = arith.constant 6 : index
      %c0_49 = arith.constant 0 : index
      %c0_50 = arith.constant 0 : index
      %70 = vector.load %arg7[%c6, %c0_49, %c0_50] : memref<75x4x64xf32, #tpu.memory_space<vmem>>, vector<1x4x64xf32>
      %71 = vector.shape_cast %70 : vector<1x4x64xf32> to vector<4x64xf32>
      %cst_51 = arith.constant dense<0.000000e+00> : vector<7x64xf32>
      %72 = tpu.matmul %69, %71, %cst_51 {dimension_numbers = #tpu.dot_dimension_numbers<[1], [0], [0], [1], [0, 0, 1, 1], [], []>} : vector<7x4xf32>, vector<4x64xf32>, vector<7x64xf32> -> vector<7x64xf32>
      %73 = arith.addf %63, %72 : vector<7x64xf32>
      %c0_i32_52 = arith.constant 0 : i32
      %74 = arith.addi %arg2, %c0_i32_52 : i32
      %c0_i32_53 = arith.constant 0 : i32
      %75 = arith.addi %2, %c0_i32_53 : i32
      %76 = arith.index_cast %74 : i32 to index
      %77 = arith.index_cast %75 : i32 to index
      %c1_54 = arith.constant 1 : index
      %c0_55 = arith.constant 0 : index
      %78 = vector.load %arg5[%76, %77, %c1_54, %c0_55] : memref<4x9x9x4xf32, #tpu.memory_space<vmem>>, vector<1x1x7x4xf32>
      %79 = vector.shape_cast %78 : vector<1x1x7x4xf32> to vector<7x4xf32>
      %c7 = arith.constant 7 : index
      %c0_56 = arith.constant 0 : index
      %c0_57 = arith.constant 0 : index
      %80 = vector.load %arg7[%c7, %c0_56, %c0_57] : memref<75x4x64xf32, #tpu.memory_space<vmem>>, vector<1x4x64xf32>
      %81 = vector.shape_cast %80 : vector<1x4x64xf32> to vector<4x64xf32>
      %cst_58 = arith.constant dense<0.000000e+00> : vector<7x64xf32>
      %82 = tpu.matmul %79, %81, %cst_58 {dimension_numbers = #tpu.dot_dimension_numbers<[1], [0], [0], [1], [0, 0, 1, 1], [], []>} : vector<7x4xf32>, vector<4x64xf32>, vector<7x64xf32> -> vector<7x64xf32>
      %83 = arith.addf %73, %82 : vector<7x64xf32>
      %c0_i32_59 = arith.constant 0 : i32
      %84 = arith.addi %arg2, %c0_i32_59 : i32
      %c0_i32_60 = arith.constant 0 : i32
      %85 = arith.addi %2, %c0_i32_60 : i32
      %86 = arith.index_cast %84 : i32 to index
      %87 = arith.index_cast %85 : i32 to index
      %c1_61 = arith.constant 1 : index
      %c0_62 = arith.constant 0 : index
      %88 = vector.load %arg6[%86, %87, %c1_61, %c0_62] : memref<4x9x9x4xf32, #tpu.memory_space<vmem>>, vector<1x1x7x4xf32>
      %89 = vector.shape_cast %88 : vector<1x1x7x4xf32> to vector<7x4xf32>
      %c8 = arith.constant 8 : index
      %c0_63 = arith.constant 0 : index
      %c0_64 = arith.constant 0 : index
      %90 = vector.load %arg7[%c8, %c0_63, %c0_64] : memref<75x4x64xf32, #tpu.memory_space<vmem>>, vector<1x4x64xf32>
      %91 = vector.shape_cast %90 : vector<1x4x64xf32> to vector<4x64xf32>
      %cst_65 = arith.constant dense<0.000000e+00> : vector<7x64xf32>
      %92 = tpu.matmul %89, %91, %cst_65 {dimension_numbers = #tpu.dot_dimension_numbers<[1], [0], [0], [1], [0, 0, 1, 1], [], []>} : vector<7x4xf32>, vector<4x64xf32>, vector<7x64xf32> -> vector<7x64xf32>
      %93 = arith.addf %83, %92 : vector<7x64xf32>
      %c0_i32_66 = arith.constant 0 : i32
      %94 = arith.addi %arg2, %c0_i32_66 : i32
      %c0_i32_67 = arith.constant 0 : i32
      %95 = arith.addi %2, %c0_i32_67 : i32
      %96 = arith.index_cast %94 : i32 to index
      %97 = arith.index_cast %95 : i32 to index
      %c2_68 = arith.constant 2 : index
      %c0_69 = arith.constant 0 : index
      %98 = vector.load %arg5[%96, %97, %c2_68, %c0_69] : memref<4x9x9x4xf32, #tpu.memory_space<vmem>>, vector<1x1x7x4xf32>
      %99 = vector.shape_cast %98 : vector<1x1x7x4xf32> to vector<7x4xf32>
      %c9 = arith.constant 9 : index
      %c0_70 = arith.constant 0 : index
      %c0_71 = arith.constant 0 : index
      %100 = vector.load %arg7[%c9, %c0_70, %c0_71] : memref<75x4x64xf32, #tpu.memory_space<vmem>>, vector<1x4x64xf32>
      %101 = vector.shape_cast %100 : vector<1x4x64xf32> to vector<4x64xf32>
      %cst_72 = arith.constant dense<0.000000e+00> : vector<7x64xf32>
      %102 = tpu.matmul %99, %101, %cst_72 {dimension_numbers = #tpu.dot_dimension_numbers<[1], [0], [0], [1], [0, 0, 1, 1], [], []>} : vector<7x4xf32>, vector<4x64xf32>, vector<7x64xf32> -> vector<7x64xf32>
      %103 = arith.addf %93, %102 : vector<7x64xf32>
      %c0_i32_73 = arith.constant 0 : i32
      %104 = arith.addi %arg2, %c0_i32_73 : i32
      %c1_i32_74 = arith.constant 1 : i32
      %105 = arith.addi %2, %c1_i32_74 : i32
      %106 = arith.index_cast %104 : i32 to index
      %107 = arith.index_cast %105 : i32 to index
      %c0_75 = arith.constant 0 : index
      %c0_76 = arith.constant 0 : index
      %108 = vector.load %arg3[%106, %107, %c0_75, %c0_76] : memref<4x9x9x4xf32, #tpu.memory_space<vmem>>, vector<1x1x7x4xf32>
      %109 = vector.shape_cast %108 : vector<1x1x7x4xf32> to vector<7x4xf32>
      %c10 = arith.constant 10 : index
      %c0_77 = arith.constant 0 : index
      %c0_78 = arith.constant 0 : index
      %110 = vector.load %arg7[%c10, %c0_77, %c0_78] : memref<75x4x64xf32, #tpu.memory_space<vmem>>, vector<1x4x64xf32>
      %111 = vector.shape_cast %110 : vector<1x4x64xf32> to vector<4x64xf32>
      %cst_79 = arith.constant dense<0.000000e+00> : vector<7x64xf32>
      %112 = tpu.matmul %109, %111, %cst_79 {dimension_numbers = #tpu.dot_dimension_numbers<[1], [0], [0], [1], [0, 0, 1, 1], [], []>} : vector<7x4xf32>, vector<4x64xf32>, vector<7x64xf32> -> vector<7x64xf32>
      %113 = arith.addf %103, %112 : vector<7x64xf32>
      %c0_i32_80 = arith.constant 0 : i32
      %114 = arith.addi %arg2, %c0_i32_80 : i32
      %c1_i32_81 = arith.constant 1 : i32
      %115 = arith.addi %2, %c1_i32_81 : i32
      %116 = arith.index_cast %114 : i32 to index
      %117 = arith.index_cast %115 : i32 to index
      %c0_82 = arith.constant 0 : index
      %c0_83 = arith.constant 0 : index
      %118 = vector.load %arg4[%116, %117, %c0_82, %c0_83] : memref<4x9x9x4xf32, #tpu.memory_space<vmem>>, vector<1x1x7x4xf32>
      %119 = vector.shape_cast %118 : vector<1x1x7x4xf32> to vector<7x4xf32>
      %c11 = arith.constant 11 : index
      %c0_84 = arith.constant 0 : index
      %c0_85 = arith.constant 0 : index
      %120 = vector.load %arg7[%c11, %c0_84, %c0_85] : memref<75x4x64xf32, #tpu.memory_space<vmem>>, vector<1x4x64xf32>
      %121 = vector.shape_cast %120 : vector<1x4x64xf32> to vector<4x64xf32>
      %cst_86 = arith.constant dense<0.000000e+00> : vector<7x64xf32>
      %122 = tpu.matmul %119, %121, %cst_86 {dimension_numbers = #tpu.dot_dimension_numbers<[1], [0], [0], [1], [0, 0, 1, 1], [], []>} : vector<7x4xf32>, vector<4x64xf32>, vector<7x64xf32> -> vector<7x64xf32>
      %123 = arith.addf %113, %122 : vector<7x64xf32>
      %c0_i32_87 = arith.constant 0 : i32
      %124 = arith.addi %arg2, %c0_i32_87 : i32
      %c1_i32_88 = arith.constant 1 : i32
      %125 = arith.addi %2, %c1_i32_88 : i32
      %126 = arith.index_cast %124 : i32 to index
      %127 = arith.index_cast %125 : i32 to index
      %c1_89 = arith.constant 1 : index
      %c0_90 = arith.constant 0 : index
      %128 = vector.load %arg3[%126, %127, %c1_89, %c0_90] : memref<4x9x9x4xf32, #tpu.memory_space<vmem>>, vector<1x1x7x4xf32>
      %129 = vector.shape_cast %128 : vector<1x1x7x4xf32> to vector<7x4xf32>
      %c12 = arith.constant 12 : index
      %c0_91 = arith.constant 0 : index
      %c0_92 = arith.constant 0 : index
      %130 = vector.load %arg7[%c12, %c0_91, %c0_92] : memref<75x4x64xf32, #tpu.memory_space<vmem>>, vector<1x4x64xf32>
      %131 = vector.shape_cast %130 : vector<1x4x64xf32> to vector<4x64xf32>
      %cst_93 = arith.constant dense<0.000000e+00> : vector<7x64xf32>
      %132 = tpu.matmul %129, %131, %cst_93 {dimension_numbers = #tpu.dot_dimension_numbers<[1], [0], [0], [1], [0, 0, 1, 1], [], []>} : vector<7x4xf32>, vector<4x64xf32>, vector<7x64xf32> -> vector<7x64xf32>
      %133 = arith.addf %123, %132 : vector<7x64xf32>
      %c0_i32_94 = arith.constant 0 : i32
      %134 = arith.addi %arg2, %c0_i32_94 : i32
      %c1_i32_95 = arith.constant 1 : i32
      %135 = arith.addi %2, %c1_i32_95 : i32
      %136 = arith.index_cast %134 : i32 to index
      %137 = arith.index_cast %135 : i32 to index
      %c1_96 = arith.constant 1 : index
      %c0_97 = arith.constant 0 : index
      %138 = vector.load %arg4[%136, %137, %c1_96, %c0_97] : memref<4x9x9x4xf32, #tpu.memory_space<vmem>>, vector<1x1x7x4xf32>
      %139 = vector.shape_cast %138 : vector<1x1x7x4xf32> to vector<7x4xf32>
      %c13 = arith.constant 13 : index
      %c0_98 = arith.constant 0 : index
      %c0_99 = arith.constant 0 : index
      %140 = vector.load %arg7[%c13, %c0_98, %c0_99] : memref<75x4x64xf32, #tpu.memory_space<vmem>>, vector<1x4x64xf32>
      %141 = vector.shape_cast %140 : vector<1x4x64xf32> to vector<4x64xf32>
      %cst_100 = arith.constant dense<0.000000e+00> : vector<7x64xf32>
      %142 = tpu.matmul %139, %141, %cst_100 {dimension_numbers = #tpu.dot_dimension_numbers<[1], [0], [0], [1], [0, 0, 1, 1], [], []>} : vector<7x4xf32>, vector<4x64xf32>, vector<7x64xf32> -> vector<7x64xf32>
      %143 = arith.addf %133, %142 : vector<7x64xf32>
      %c0_i32_101 = arith.constant 0 : i32
      %144 = arith.addi %arg2, %c0_i32_101 : i32
      %c1_i32_102 = arith.constant 1 : i32
      %145 = arith.addi %2, %c1_i32_102 : i32
      %146 = arith.index_cast %144 : i32 to index
      %147 = arith.index_cast %145 : i32 to index
      %c2_103 = arith.constant 2 : index
      %c0_104 = arith.constant 0 : index
      %148 = vector.load %arg3[%146, %147, %c2_103, %c0_104] : memref<4x9x9x4xf32, #tpu.memory_space<vmem>>, vector<1x1x7x4xf32>
      %149 = vector.shape_cast %148 : vector<1x1x7x4xf32> to vector<7x4xf32>
      %c14 = arith.constant 14 : index
      %c0_105 = arith.constant 0 : index
      %c0_106 = arith.constant 0 : index
      %150 = vector.load %arg7[%c14, %c0_105, %c0_106] : memref<75x4x64xf32, #tpu.memory_space<vmem>>, vector<1x4x64xf32>
      %151 = vector.shape_cast %150 : vector<1x4x64xf32> to vector<4x64xf32>
      %cst_107 = arith.constant dense<0.000000e+00> : vector<7x64xf32>
      %152 = tpu.matmul %149, %151, %cst_107 {dimension_numbers = #tpu.dot_dimension_numbers<[1], [0], [0], [1], [0, 0, 1, 1], [], []>} : vector<7x4xf32>, vector<4x64xf32>, vector<7x64xf32> -> vector<7x64xf32>
      %153 = arith.addf %143, %152 : vector<7x64xf32>
      %c0_i32_108 = arith.constant 0 : i32
      %154 = arith.addi %arg2, %c0_i32_108 : i32
      %c1_i32_109 = arith.constant 1 : i32
      %155 = arith.addi %2, %c1_i32_109 : i32
      %156 = arith.index_cast %154 : i32 to index
      %157 = arith.index_cast %155 : i32 to index
      %c0_110 = arith.constant 0 : index
      %c0_111 = arith.constant 0 : index
      %158 = vector.load %arg5[%156, %157, %c0_110, %c0_111] : memref<4x9x9x4xf32, #tpu.memory_space<vmem>>, vector<1x1x7x4xf32>
      %159 = vector.shape_cast %158 : vector<1x1x7x4xf32> to vector<7x4xf32>
      %c15 = arith.constant 15 : index
      %c0_112 = arith.constant 0 : index
      %c0_113 = arith.constant 0 : index
      %160 = vector.load %arg7[%c15, %c0_112, %c0_113] : memref<75x4x64xf32, #tpu.memory_space<vmem>>, vector<1x4x64xf32>
      %161 = vector.shape_cast %160 : vector<1x4x64xf32> to vector<4x64xf32>
      %cst_114 = arith.constant dense<0.000000e+00> : vector<7x64xf32>
      %162 = tpu.matmul %159, %161, %cst_114 {dimension_numbers = #tpu.dot_dimension_numbers<[1], [0], [0], [1], [0, 0, 1, 1], [], []>} : vector<7x4xf32>, vector<4x64xf32>, vector<7x64xf32> -> vector<7x64xf32>
      %163 = arith.addf %153, %162 : vector<7x64xf32>
      %c0_i32_115 = arith.constant 0 : i32
      %164 = arith.addi %arg2, %c0_i32_115 : i32
      %c1_i32_116 = arith.constant 1 : i32
      %165 = arith.addi %2, %c1_i32_116 : i32
      %166 = arith.index_cast %164 : i32 to index
      %167 = arith.index_cast %165 : i32 to index
      %c0_117 = arith.constant 0 : index
      %c0_118 = arith.constant 0 : index
      %168 = vector.load %arg6[%166, %167, %c0_117, %c0_118] : memref<4x9x9x4xf32, #tpu.memory_space<vmem>>, vector<1x1x7x4xf32>
      %169 = vector.shape_cast %168 : vector<1x1x7x4xf32> to vector<7x4xf32>
      %c16 = arith.constant 16 : index
      %c0_119 = arith.constant 0 : index
      %c0_120 = arith.constant 0 : index
      %170 = vector.load %arg7[%c16, %c0_119, %c0_120] : memref<75x4x64xf32, #tpu.memory_space<vmem>>, vector<1x4x64xf32>
      %171 = vector.shape_cast %170 : vector<1x4x64xf32> to vector<4x64xf32>
      %cst_121 = arith.constant dense<0.000000e+00> : vector<7x64xf32>
      %172 = tpu.matmul %169, %171, %cst_121 {dimension_numbers = #tpu.dot_dimension_numbers<[1], [0], [0], [1], [0, 0, 1, 1], [], []>} : vector<7x4xf32>, vector<4x64xf32>, vector<7x64xf32> -> vector<7x64xf32>
      %173 = arith.addf %163, %172 : vector<7x64xf32>
      %c0_i32_122 = arith.constant 0 : i32
      %174 = arith.addi %arg2, %c0_i32_122 : i32
      %c1_i32_123 = arith.constant 1 : i32
      %175 = arith.addi %2, %c1_i32_123 : i32
      %176 = arith.index_cast %174 : i32 to index
      %177 = arith.index_cast %175 : i32 to index
      %c1_124 = arith.constant 1 : index
      %c0_125 = arith.constant 0 : index
      %178 = vector.load %arg5[%176, %177, %c1_124, %c0_125] : memref<4x9x9x4xf32, #tpu.memory_space<vmem>>, vector<1x1x7x4xf32>
      %179 = vector.shape_cast %178 : vector<1x1x7x4xf32> to vector<7x4xf32>
      %c17 = arith.constant 17 : index
      %c0_126 = arith.constant 0 : index
      %c0_127 = arith.constant 0 : index
      %180 = vector.load %arg7[%c17, %c0_126, %c0_127] : memref<75x4x64xf32, #tpu.memory_space<vmem>>, vector<1x4x64xf32>
      %181 = vector.shape_cast %180 : vector<1x4x64xf32> to vector<4x64xf32>
      %cst_128 = arith.constant dense<0.000000e+00> : vector<7x64xf32>
      %182 = tpu.matmul %179, %181, %cst_128 {dimension_numbers = #tpu.dot_dimension_numbers<[1], [0], [0], [1], [0, 0, 1, 1], [], []>} : vector<7x4xf32>, vector<4x64xf32>, vector<7x64xf32> -> vector<7x64xf32>
      %183 = arith.addf %173, %182 : vector<7x64xf32>
      %c0_i32_129 = arith.constant 0 : i32
      %184 = arith.addi %arg2, %c0_i32_129 : i32
      %c1_i32_130 = arith.constant 1 : i32
      %185 = arith.addi %2, %c1_i32_130 : i32
      %186 = arith.index_cast %184 : i32 to index
      %187 = arith.index_cast %185 : i32 to index
      %c1_131 = arith.constant 1 : index
      %c0_132 = arith.constant 0 : index
      %188 = vector.load %arg6[%186, %187, %c1_131, %c0_132] : memref<4x9x9x4xf32, #tpu.memory_space<vmem>>, vector<1x1x7x4xf32>
      %189 = vector.shape_cast %188 : vector<1x1x7x4xf32> to vector<7x4xf32>
      %c18 = arith.constant 18 : index
      %c0_133 = arith.constant 0 : index
      %c0_134 = arith.constant 0 : index
      %190 = vector.load %arg7[%c18, %c0_133, %c0_134] : memref<75x4x64xf32, #tpu.memory_space<vmem>>, vector<1x4x64xf32>
      %191 = vector.shape_cast %190 : vector<1x4x64xf32> to vector<4x64xf32>
      %cst_135 = arith.constant dense<0.000000e+00> : vector<7x64xf32>
      %192 = tpu.matmul %189, %191, %cst_135 {dimension_numbers = #tpu.dot_dimension_numbers<[1], [0], [0], [1], [0, 0, 1, 1], [], []>} : vector<7x4xf32>, vector<4x64xf32>, vector<7x64xf32> -> vector<7x64xf32>
      %193 = arith.addf %183, %192 : vector<7x64xf32>
      %c0_i32_136 = arith.constant 0 : i32
      %194 = arith.addi %arg2, %c0_i32_136 : i32
      %c1_i32_137 = arith.constant 1 : i32
      %195 = arith.addi %2, %c1_i32_137 : i32
      %196 = arith.index_cast %194 : i32 to index
      %197 = arith.index_cast %195 : i32 to index
      %c2_138 = arith.constant 2 : index
      %c0_139 = arith.constant 0 : index
      %198 = vector.load %arg5[%196, %197, %c2_138, %c0_139] : memref<4x9x9x4xf32, #tpu.memory_space<vmem>>, vector<1x1x7x4xf32>
      %199 = vector.shape_cast %198 : vector<1x1x7x4xf32> to vector<7x4xf32>
      %c19 = arith.constant 19 : index
      %c0_140 = arith.constant 0 : index
      %c0_141 = arith.constant 0 : index
      %200 = vector.load %arg7[%c19, %c0_140, %c0_141] : memref<75x4x64xf32, #tpu.memory_space<vmem>>, vector<1x4x64xf32>
      %201 = vector.shape_cast %200 : vector<1x4x64xf32> to vector<4x64xf32>
      %cst_142 = arith.constant dense<0.000000e+00> : vector<7x64xf32>
      %202 = tpu.matmul %199, %201, %cst_142 {dimension_numbers = #tpu.dot_dimension_numbers<[1], [0], [0], [1], [0, 0, 1, 1], [], []>} : vector<7x4xf32>, vector<4x64xf32>, vector<7x64xf32> -> vector<7x64xf32>
      %203 = arith.addf %193, %202 : vector<7x64xf32>
      %c0_i32_143 = arith.constant 0 : i32
      %204 = arith.addi %arg2, %c0_i32_143 : i32
      %c2_i32 = arith.constant 2 : i32
      %205 = arith.addi %2, %c2_i32 : i32
      %206 = arith.index_cast %204 : i32 to index
      %207 = arith.index_cast %205 : i32 to index
      %c0_144 = arith.constant 0 : index
      %c0_145 = arith.constant 0 : index
      %208 = vector.load %arg3[%206, %207, %c0_144, %c0_145] : memref<4x9x9x4xf32, #tpu.memory_space<vmem>>, vector<1x1x7x4xf32>
      %209 = vector.shape_cast %208 : vector<1x1x7x4xf32> to vector<7x4xf32>
      %c20 = arith.constant 20 : index
      %c0_146 = arith.constant 0 : index
      %c0_147 = arith.constant 0 : index
      %210 = vector.load %arg7[%c20, %c0_146, %c0_147] : memref<75x4x64xf32, #tpu.memory_space<vmem>>, vector<1x4x64xf32>
      %211 = vector.shape_cast %210 : vector<1x4x64xf32> to vector<4x64xf32>
      %cst_148 = arith.constant dense<0.000000e+00> : vector<7x64xf32>
      %212 = tpu.matmul %209, %211, %cst_148 {dimension_numbers = #tpu.dot_dimension_numbers<[1], [0], [0], [1], [0, 0, 1, 1], [], []>} : vector<7x4xf32>, vector<4x64xf32>, vector<7x64xf32> -> vector<7x64xf32>
      %213 = arith.addf %203, %212 : vector<7x64xf32>
      %c0_i32_149 = arith.constant 0 : i32
      %214 = arith.addi %arg2, %c0_i32_149 : i32
      %c2_i32_150 = arith.constant 2 : i32
      %215 = arith.addi %2, %c2_i32_150 : i32
      %216 = arith.index_cast %214 : i32 to index
      %217 = arith.index_cast %215 : i32 to index
      %c0_151 = arith.constant 0 : index
      %c0_152 = arith.constant 0 : index
      %218 = vector.load %arg4[%216, %217, %c0_151, %c0_152] : memref<4x9x9x4xf32, #tpu.memory_space<vmem>>, vector<1x1x7x4xf32>
      %219 = vector.shape_cast %218 : vector<1x1x7x4xf32> to vector<7x4xf32>
      %c21 = arith.constant 21 : index
      %c0_153 = arith.constant 0 : index
      %c0_154 = arith.constant 0 : index
      %220 = vector.load %arg7[%c21, %c0_153, %c0_154] : memref<75x4x64xf32, #tpu.memory_space<vmem>>, vector<1x4x64xf32>
      %221 = vector.shape_cast %220 : vector<1x4x64xf32> to vector<4x64xf32>
      %cst_155 = arith.constant dense<0.000000e+00> : vector<7x64xf32>
      %222 = tpu.matmul %219, %221, %cst_155 {dimension_numbers = #tpu.dot_dimension_numbers<[1], [0], [0], [1], [0, 0, 1, 1], [], []>} : vector<7x4xf32>, vector<4x64xf32>, vector<7x64xf32> -> vector<7x64xf32>
      %223 = arith.addf %213, %222 : vector<7x64xf32>
      %c0_i32_156 = arith.constant 0 : i32
      %224 = arith.addi %arg2, %c0_i32_156 : i32
      %c2_i32_157 = arith.constant 2 : i32
      %225 = arith.addi %2, %c2_i32_157 : i32
      %226 = arith.index_cast %224 : i32 to index
      %227 = arith.index_cast %225 : i32 to index
      %c1_158 = arith.constant 1 : index
      %c0_159 = arith.constant 0 : index
      %228 = vector.load %arg3[%226, %227, %c1_158, %c0_159] : memref<4x9x9x4xf32, #tpu.memory_space<vmem>>, vector<1x1x7x4xf32>
      %229 = vector.shape_cast %228 : vector<1x1x7x4xf32> to vector<7x4xf32>
      %c22 = arith.constant 22 : index
      %c0_160 = arith.constant 0 : index
      %c0_161 = arith.constant 0 : index
      %230 = vector.load %arg7[%c22, %c0_160, %c0_161] : memref<75x4x64xf32, #tpu.memory_space<vmem>>, vector<1x4x64xf32>
      %231 = vector.shape_cast %230 : vector<1x4x64xf32> to vector<4x64xf32>
      %cst_162 = arith.constant dense<0.000000e+00> : vector<7x64xf32>
      %232 = tpu.matmul %229, %231, %cst_162 {dimension_numbers = #tpu.dot_dimension_numbers<[1], [0], [0], [1], [0, 0, 1, 1], [], []>} : vector<7x4xf32>, vector<4x64xf32>, vector<7x64xf32> -> vector<7x64xf32>
      %233 = arith.addf %223, %232 : vector<7x64xf32>
      %c0_i32_163 = arith.constant 0 : i32
      %234 = arith.addi %arg2, %c0_i32_163 : i32
      %c2_i32_164 = arith.constant 2 : i32
      %235 = arith.addi %2, %c2_i32_164 : i32
      %236 = arith.index_cast %234 : i32 to index
      %237 = arith.index_cast %235 : i32 to index
      %c1_165 = arith.constant 1 : index
      %c0_166 = arith.constant 0 : index
      %238 = vector.load %arg4[%236, %237, %c1_165, %c0_166] : memref<4x9x9x4xf32, #tpu.memory_space<vmem>>, vector<1x1x7x4xf32>
      %239 = vector.shape_cast %238 : vector<1x1x7x4xf32> to vector<7x4xf32>
      %c23 = arith.constant 23 : index
      %c0_167 = arith.constant 0 : index
      %c0_168 = arith.constant 0 : index
      %240 = vector.load %arg7[%c23, %c0_167, %c0_168] : memref<75x4x64xf32, #tpu.memory_space<vmem>>, vector<1x4x64xf32>
      %241 = vector.shape_cast %240 : vector<1x4x64xf32> to vector<4x64xf32>
      %cst_169 = arith.constant dense<0.000000e+00> : vector<7x64xf32>
      %242 = tpu.matmul %239, %241, %cst_169 {dimension_numbers = #tpu.dot_dimension_numbers<[1], [0], [0], [1], [0, 0, 1, 1], [], []>} : vector<7x4xf32>, vector<4x64xf32>, vector<7x64xf32> -> vector<7x64xf32>
      %243 = arith.addf %233, %242 : vector<7x64xf32>
      %c0_i32_170 = arith.constant 0 : i32
      %244 = arith.addi %arg2, %c0_i32_170 : i32
      %c2_i32_171 = arith.constant 2 : i32
      %245 = arith.addi %2, %c2_i32_171 : i32
      %246 = arith.index_cast %244 : i32 to index
      %247 = arith.index_cast %245 : i32 to index
      %c2_172 = arith.constant 2 : index
      %c0_173 = arith.constant 0 : index
      %248 = vector.load %arg3[%246, %247, %c2_172, %c0_173] : memref<4x9x9x4xf32, #tpu.memory_space<vmem>>, vector<1x1x7x4xf32>
      %249 = vector.shape_cast %248 : vector<1x1x7x4xf32> to vector<7x4xf32>
      %c24 = arith.constant 24 : index
      %c0_174 = arith.constant 0 : index
      %c0_175 = arith.constant 0 : index
      %250 = vector.load %arg7[%c24, %c0_174, %c0_175] : memref<75x4x64xf32, #tpu.memory_space<vmem>>, vector<1x4x64xf32>
      %251 = vector.shape_cast %250 : vector<1x4x64xf32> to vector<4x64xf32>
      %cst_176 = arith.constant dense<0.000000e+00> : vector<7x64xf32>
      %252 = tpu.matmul %249, %251, %cst_176 {dimension_numbers = #tpu.dot_dimension_numbers<[1], [0], [0], [1], [0, 0, 1, 1], [], []>} : vector<7x4xf32>, vector<4x64xf32>, vector<7x64xf32> -> vector<7x64xf32>
      %253 = arith.addf %243, %252 : vector<7x64xf32>
      %c1_i32_177 = arith.constant 1 : i32
      %254 = arith.addi %arg2, %c1_i32_177 : i32
      %c0_i32_178 = arith.constant 0 : i32
      %255 = arith.addi %2, %c0_i32_178 : i32
      %256 = arith.index_cast %254 : i32 to index
      %257 = arith.index_cast %255 : i32 to index
      %c0_179 = arith.constant 0 : index
      %c0_180 = arith.constant 0 : index
      %258 = vector.load %arg3[%256, %257, %c0_179, %c0_180] : memref<4x9x9x4xf32, #tpu.memory_space<vmem>>, vector<1x1x7x4xf32>
      %259 = vector.shape_cast %258 : vector<1x1x7x4xf32> to vector<7x4xf32>
      %c25 = arith.constant 25 : index
      %c0_181 = arith.constant 0 : index
      %c0_182 = arith.constant 0 : index
      %260 = vector.load %arg7[%c25, %c0_181, %c0_182] : memref<75x4x64xf32, #tpu.memory_space<vmem>>, vector<1x4x64xf32>
      %261 = vector.shape_cast %260 : vector<1x4x64xf32> to vector<4x64xf32>
      %cst_183 = arith.constant dense<0.000000e+00> : vector<7x64xf32>
      %262 = tpu.matmul %259, %261, %cst_183 {dimension_numbers = #tpu.dot_dimension_numbers<[1], [0], [0], [1], [0, 0, 1, 1], [], []>} : vector<7x4xf32>, vector<4x64xf32>, vector<7x64xf32> -> vector<7x64xf32>
      %263 = arith.addf %253, %262 : vector<7x64xf32>
      %c1_i32_184 = arith.constant 1 : i32
      %264 = arith.addi %arg2, %c1_i32_184 : i32
      %c0_i32_185 = arith.constant 0 : i32
      %265 = arith.addi %2, %c0_i32_185 : i32
      %266 = arith.index_cast %264 : i32 to index
      %267 = arith.index_cast %265 : i32 to index
      %c0_186 = arith.constant 0 : index
      %c0_187 = arith.constant 0 : index
      %268 = vector.load %arg4[%266, %267, %c0_186, %c0_187] : memref<4x9x9x4xf32, #tpu.memory_space<vmem>>, vector<1x1x7x4xf32>
      %269 = vector.shape_cast %268 : vector<1x1x7x4xf32> to vector<7x4xf32>
      %c26 = arith.constant 26 : index
      %c0_188 = arith.constant 0 : index
      %c0_189 = arith.constant 0 : index
      %270 = vector.load %arg7[%c26, %c0_188, %c0_189] : memref<75x4x64xf32, #tpu.memory_space<vmem>>, vector<1x4x64xf32>
      %271 = vector.shape_cast %270 : vector<1x4x64xf32> to vector<4x64xf32>
      %cst_190 = arith.constant dense<0.000000e+00> : vector<7x64xf32>
      %272 = tpu.matmul %269, %271, %cst_190 {dimension_numbers = #tpu.dot_dimension_numbers<[1], [0], [0], [1], [0, 0, 1, 1], [], []>} : vector<7x4xf32>, vector<4x64xf32>, vector<7x64xf32> -> vector<7x64xf32>
      %273 = arith.addf %263, %272 : vector<7x64xf32>
      %c1_i32_191 = arith.constant 1 : i32
      %274 = arith.addi %arg2, %c1_i32_191 : i32
      %c0_i32_192 = arith.constant 0 : i32
      %275 = arith.addi %2, %c0_i32_192 : i32
      %276 = arith.index_cast %274 : i32 to index
      %277 = arith.index_cast %275 : i32 to index
      %c1_193 = arith.constant 1 : index
      %c0_194 = arith.constant 0 : index
      %278 = vector.load %arg3[%276, %277, %c1_193, %c0_194] : memref<4x9x9x4xf32, #tpu.memory_space<vmem>>, vector<1x1x7x4xf32>
      %279 = vector.shape_cast %278 : vector<1x1x7x4xf32> to vector<7x4xf32>
      %c27 = arith.constant 27 : index
      %c0_195 = arith.constant 0 : index
      %c0_196 = arith.constant 0 : index
      %280 = vector.load %arg7[%c27, %c0_195, %c0_196] : memref<75x4x64xf32, #tpu.memory_space<vmem>>, vector<1x4x64xf32>
      %281 = vector.shape_cast %280 : vector<1x4x64xf32> to vector<4x64xf32>
      %cst_197 = arith.constant dense<0.000000e+00> : vector<7x64xf32>
      %282 = tpu.matmul %279, %281, %cst_197 {dimension_numbers = #tpu.dot_dimension_numbers<[1], [0], [0], [1], [0, 0, 1, 1], [], []>} : vector<7x4xf32>, vector<4x64xf32>, vector<7x64xf32> -> vector<7x64xf32>
      %283 = arith.addf %273, %282 : vector<7x64xf32>
      %c1_i32_198 = arith.constant 1 : i32
      %284 = arith.addi %arg2, %c1_i32_198 : i32
      %c0_i32_199 = arith.constant 0 : i32
      %285 = arith.addi %2, %c0_i32_199 : i32
      %286 = arith.index_cast %284 : i32 to index
      %287 = arith.index_cast %285 : i32 to index
      %c1_200 = arith.constant 1 : index
      %c0_201 = arith.constant 0 : index
      %288 = vector.load %arg4[%286, %287, %c1_200, %c0_201] : memref<4x9x9x4xf32, #tpu.memory_space<vmem>>, vector<1x1x7x4xf32>
      %289 = vector.shape_cast %288 : vector<1x1x7x4xf32> to vector<7x4xf32>
      %c28 = arith.constant 28 : index
      %c0_202 = arith.constant 0 : index
      %c0_203 = arith.constant 0 : index
      %290 = vector.load %arg7[%c28, %c0_202, %c0_203] : memref<75x4x64xf32, #tpu.memory_space<vmem>>, vector<1x4x64xf32>
      %291 = vector.shape_cast %290 : vector<1x4x64xf32> to vector<4x64xf32>
      %cst_204 = arith.constant dense<0.000000e+00> : vector<7x64xf32>
      %292 = tpu.matmul %289, %291, %cst_204 {dimension_numbers = #tpu.dot_dimension_numbers<[1], [0], [0], [1], [0, 0, 1, 1], [], []>} : vector<7x4xf32>, vector<4x64xf32>, vector<7x64xf32> -> vector<7x64xf32>
      %293 = arith.addf %283, %292 : vector<7x64xf32>
      %c1_i32_205 = arith.constant 1 : i32
      %294 = arith.addi %arg2, %c1_i32_205 : i32
      %c0_i32_206 = arith.constant 0 : i32
      %295 = arith.addi %2, %c0_i32_206 : i32
      %296 = arith.index_cast %294 : i32 to index
      %297 = arith.index_cast %295 : i32 to index
      %c2_207 = arith.constant 2 : index
      %c0_208 = arith.constant 0 : index
      %298 = vector.load %arg3[%296, %297, %c2_207, %c0_208] : memref<4x9x9x4xf32, #tpu.memory_space<vmem>>, vector<1x1x7x4xf32>
      %299 = vector.shape_cast %298 : vector<1x1x7x4xf32> to vector<7x4xf32>
      %c29 = arith.constant 29 : index
      %c0_209 = arith.constant 0 : index
      %c0_210 = arith.constant 0 : index
      %300 = vector.load %arg7[%c29, %c0_209, %c0_210] : memref<75x4x64xf32, #tpu.memory_space<vmem>>, vector<1x4x64xf32>
      %301 = vector.shape_cast %300 : vector<1x4x64xf32> to vector<4x64xf32>
      %cst_211 = arith.constant dense<0.000000e+00> : vector<7x64xf32>
      %302 = tpu.matmul %299, %301, %cst_211 {dimension_numbers = #tpu.dot_dimension_numbers<[1], [0], [0], [1], [0, 0, 1, 1], [], []>} : vector<7x4xf32>, vector<4x64xf32>, vector<7x64xf32> -> vector<7x64xf32>
      %303 = arith.addf %293, %302 : vector<7x64xf32>
      %c1_i32_212 = arith.constant 1 : i32
      %304 = arith.addi %arg2, %c1_i32_212 : i32
      %c0_i32_213 = arith.constant 0 : i32
      %305 = arith.addi %2, %c0_i32_213 : i32
      %306 = arith.index_cast %304 : i32 to index
      %307 = arith.index_cast %305 : i32 to index
      %c0_214 = arith.constant 0 : index
      %c0_215 = arith.constant 0 : index
      %308 = vector.load %arg5[%306, %307, %c0_214, %c0_215] : memref<4x9x9x4xf32, #tpu.memory_space<vmem>>, vector<1x1x7x4xf32>
      %309 = vector.shape_cast %308 : vector<1x1x7x4xf32> to vector<7x4xf32>
      %c30 = arith.constant 30 : index
      %c0_216 = arith.constant 0 : index
      %c0_217 = arith.constant 0 : index
      %310 = vector.load %arg7[%c30, %c0_216, %c0_217] : memref<75x4x64xf32, #tpu.memory_space<vmem>>, vector<1x4x64xf32>
      %311 = vector.shape_cast %310 : vector<1x4x64xf32> to vector<4x64xf32>
      %cst_218 = arith.constant dense<0.000000e+00> : vector<7x64xf32>
      %312 = tpu.matmul %309, %311, %cst_218 {dimension_numbers = #tpu.dot_dimension_numbers<[1], [0], [0], [1], [0, 0, 1, 1], [], []>} : vector<7x4xf32>, vector<4x64xf32>, vector<7x64xf32> -> vector<7x64xf32>
      %313 = arith.addf %303, %312 : vector<7x64xf32>
      %c1_i32_219 = arith.constant 1 : i32
      %314 = arith.addi %arg2, %c1_i32_219 : i32
      %c0_i32_220 = arith.constant 0 : i32
      %315 = arith.addi %2, %c0_i32_220 : i32
      %316 = arith.index_cast %314 : i32 to index
      %317 = arith.index_cast %315 : i32 to index
      %c0_221 = arith.constant 0 : index
      %c0_222 = arith.constant 0 : index
      %318 = vector.load %arg6[%316, %317, %c0_221, %c0_222] : memref<4x9x9x4xf32, #tpu.memory_space<vmem>>, vector<1x1x7x4xf32>
      %319 = vector.shape_cast %318 : vector<1x1x7x4xf32> to vector<7x4xf32>
      %c31 = arith.constant 31 : index
      %c0_223 = arith.constant 0 : index
      %c0_224 = arith.constant 0 : index
      %320 = vector.load %arg7[%c31, %c0_223, %c0_224] : memref<75x4x64xf32, #tpu.memory_space<vmem>>, vector<1x4x64xf32>
      %321 = vector.shape_cast %320 : vector<1x4x64xf32> to vector<4x64xf32>
      %cst_225 = arith.constant dense<0.000000e+00> : vector<7x64xf32>
      %322 = tpu.matmul %319, %321, %cst_225 {dimension_numbers = #tpu.dot_dimension_numbers<[1], [0], [0], [1], [0, 0, 1, 1], [], []>} : vector<7x4xf32>, vector<4x64xf32>, vector<7x64xf32> -> vector<7x64xf32>
      %323 = arith.addf %313, %322 : vector<7x64xf32>
      %c1_i32_226 = arith.constant 1 : i32
      %324 = arith.addi %arg2, %c1_i32_226 : i32
      %c0_i32_227 = arith.constant 0 : i32
      %325 = arith.addi %2, %c0_i32_227 : i32
      %326 = arith.index_cast %324 : i32 to index
      %327 = arith.index_cast %325 : i32 to index
      %c1_228 = arith.constant 1 : index
      %c0_229 = arith.constant 0 : index
      %328 = vector.load %arg5[%326, %327, %c1_228, %c0_229] : memref<4x9x9x4xf32, #tpu.memory_space<vmem>>, vector<1x1x7x4xf32>
      %329 = vector.shape_cast %328 : vector<1x1x7x4xf32> to vector<7x4xf32>
      %c32 = arith.constant 32 : index
      %c0_230 = arith.constant 0 : index
      %c0_231 = arith.constant 0 : index
      %330 = vector.load %arg7[%c32, %c0_230, %c0_231] : memref<75x4x64xf32, #tpu.memory_space<vmem>>, vector<1x4x64xf32>
      %331 = vector.shape_cast %330 : vector<1x4x64xf32> to vector<4x64xf32>
      %cst_232 = arith.constant dense<0.000000e+00> : vector<7x64xf32>
      %332 = tpu.matmul %329, %331, %cst_232 {dimension_numbers = #tpu.dot_dimension_numbers<[1], [0], [0], [1], [0, 0, 1, 1], [], []>} : vector<7x4xf32>, vector<4x64xf32>, vector<7x64xf32> -> vector<7x64xf32>
      %333 = arith.addf %323, %332 : vector<7x64xf32>
      %c1_i32_233 = arith.constant 1 : i32
      %334 = arith.addi %arg2, %c1_i32_233 : i32
      %c0_i32_234 = arith.constant 0 : i32
      %335 = arith.addi %2, %c0_i32_234 : i32
      %336 = arith.index_cast %334 : i32 to index
      %337 = arith.index_cast %335 : i32 to index
      %c1_235 = arith.constant 1 : index
      %c0_236 = arith.constant 0 : index
      %338 = vector.load %arg6[%336, %337, %c1_235, %c0_236] : memref<4x9x9x4xf32, #tpu.memory_space<vmem>>, vector<1x1x7x4xf32>
      %339 = vector.shape_cast %338 : vector<1x1x7x4xf32> to vector<7x4xf32>
      %c33 = arith.constant 33 : index
      %c0_237 = arith.constant 0 : index
      %c0_238 = arith.constant 0 : index
      %340 = vector.load %arg7[%c33, %c0_237, %c0_238] : memref<75x4x64xf32, #tpu.memory_space<vmem>>, vector<1x4x64xf32>
      %341 = vector.shape_cast %340 : vector<1x4x64xf32> to vector<4x64xf32>
      %cst_239 = arith.constant dense<0.000000e+00> : vector<7x64xf32>
      %342 = tpu.matmul %339, %341, %cst_239 {dimension_numbers = #tpu.dot_dimension_numbers<[1], [0], [0], [1], [0, 0, 1, 1], [], []>} : vector<7x4xf32>, vector<4x64xf32>, vector<7x64xf32> -> vector<7x64xf32>
      %343 = arith.addf %333, %342 : vector<7x64xf32>
      %c1_i32_240 = arith.constant 1 : i32
      %344 = arith.addi %arg2, %c1_i32_240 : i32
      %c0_i32_241 = arith.constant 0 : i32
      %345 = arith.addi %2, %c0_i32_241 : i32
      %346 = arith.index_cast %344 : i32 to index
      %347 = arith.index_cast %345 : i32 to index
      %c2_242 = arith.constant 2 : index
      %c0_243 = arith.constant 0 : index
      %348 = vector.load %arg5[%346, %347, %c2_242, %c0_243] : memref<4x9x9x4xf32, #tpu.memory_space<vmem>>, vector<1x1x7x4xf32>
      %349 = vector.shape_cast %348 : vector<1x1x7x4xf32> to vector<7x4xf32>
      %c34 = arith.constant 34 : index
      %c0_244 = arith.constant 0 : index
      %c0_245 = arith.constant 0 : index
      %350 = vector.load %arg7[%c34, %c0_244, %c0_245] : memref<75x4x64xf32, #tpu.memory_space<vmem>>, vector<1x4x64xf32>
      %351 = vector.shape_cast %350 : vector<1x4x64xf32> to vector<4x64xf32>
      %cst_246 = arith.constant dense<0.000000e+00> : vector<7x64xf32>
      %352 = tpu.matmul %349, %351, %cst_246 {dimension_numbers = #tpu.dot_dimension_numbers<[1], [0], [0], [1], [0, 0, 1, 1], [], []>} : vector<7x4xf32>, vector<4x64xf32>, vector<7x64xf32> -> vector<7x64xf32>
      %353 = arith.addf %343, %352 : vector<7x64xf32>
      %c1_i32_247 = arith.constant 1 : i32
      %354 = arith.addi %arg2, %c1_i32_247 : i32
      %c1_i32_248 = arith.constant 1 : i32
      %355 = arith.addi %2, %c1_i32_248 : i32
      %356 = arith.index_cast %354 : i32 to index
      %357 = arith.index_cast %355 : i32 to index
      %c0_249 = arith.constant 0 : index
      %c0_250 = arith.constant 0 : index
      %358 = vector.load %arg3[%356, %357, %c0_249, %c0_250] : memref<4x9x9x4xf32, #tpu.memory_space<vmem>>, vector<1x1x7x4xf32>
      %359 = vector.shape_cast %358 : vector<1x1x7x4xf32> to vector<7x4xf32>
      %c35 = arith.constant 35 : index
      %c0_251 = arith.constant 0 : index
      %c0_252 = arith.constant 0 : index
      %360 = vector.load %arg7[%c35, %c0_251, %c0_252] : memref<75x4x64xf32, #tpu.memory_space<vmem>>, vector<1x4x64xf32>
      %361 = vector.shape_cast %360 : vector<1x4x64xf32> to vector<4x64xf32>
      %cst_253 = arith.constant dense<0.000000e+00> : vector<7x64xf32>
      %362 = tpu.matmul %359, %361, %cst_253 {dimension_numbers = #tpu.dot_dimension_numbers<[1], [0], [0], [1], [0, 0, 1, 1], [], []>} : vector<7x4xf32>, vector<4x64xf32>, vector<7x64xf32> -> vector<7x64xf32>
      %363 = arith.addf %353, %362 : vector<7x64xf32>
      %c1_i32_254 = arith.constant 1 : i32
      %364 = arith.addi %arg2, %c1_i32_254 : i32
      %c1_i32_255 = arith.constant 1 : i32
      %365 = arith.addi %2, %c1_i32_255 : i32
      %366 = arith.index_cast %364 : i32 to index
      %367 = arith.index_cast %365 : i32 to index
      %c0_256 = arith.constant 0 : index
      %c0_257 = arith.constant 0 : index
      %368 = vector.load %arg4[%366, %367, %c0_256, %c0_257] : memref<4x9x9x4xf32, #tpu.memory_space<vmem>>, vector<1x1x7x4xf32>
      %369 = vector.shape_cast %368 : vector<1x1x7x4xf32> to vector<7x4xf32>
      %c36 = arith.constant 36 : index
      %c0_258 = arith.constant 0 : index
      %c0_259 = arith.constant 0 : index
      %370 = vector.load %arg7[%c36, %c0_258, %c0_259] : memref<75x4x64xf32, #tpu.memory_space<vmem>>, vector<1x4x64xf32>
      %371 = vector.shape_cast %370 : vector<1x4x64xf32> to vector<4x64xf32>
      %cst_260 = arith.constant dense<0.000000e+00> : vector<7x64xf32>
      %372 = tpu.matmul %369, %371, %cst_260 {dimension_numbers = #tpu.dot_dimension_numbers<[1], [0], [0], [1], [0, 0, 1, 1], [], []>} : vector<7x4xf32>, vector<4x64xf32>, vector<7x64xf32> -> vector<7x64xf32>
      %373 = arith.addf %363, %372 : vector<7x64xf32>
      %c1_i32_261 = arith.constant 1 : i32
      %374 = arith.addi %arg2, %c1_i32_261 : i32
      %c1_i32_262 = arith.constant 1 : i32
      %375 = arith.addi %2, %c1_i32_262 : i32
      %376 = arith.index_cast %374 : i32 to index
      %377 = arith.index_cast %375 : i32 to index
      %c1_263 = arith.constant 1 : index
      %c0_264 = arith.constant 0 : index
      %378 = vector.load %arg3[%376, %377, %c1_263, %c0_264] : memref<4x9x9x4xf32, #tpu.memory_space<vmem>>, vector<1x1x7x4xf32>
      %379 = vector.shape_cast %378 : vector<1x1x7x4xf32> to vector<7x4xf32>
      %c37 = arith.constant 37 : index
      %c0_265 = arith.constant 0 : index
      %c0_266 = arith.constant 0 : index
      %380 = vector.load %arg7[%c37, %c0_265, %c0_266] : memref<75x4x64xf32, #tpu.memory_space<vmem>>, vector<1x4x64xf32>
      %381 = vector.shape_cast %380 : vector<1x4x64xf32> to vector<4x64xf32>
      %cst_267 = arith.constant dense<0.000000e+00> : vector<7x64xf32>
      %382 = tpu.matmul %379, %381, %cst_267 {dimension_numbers = #tpu.dot_dimension_numbers<[1], [0], [0], [1], [0, 0, 1, 1], [], []>} : vector<7x4xf32>, vector<4x64xf32>, vector<7x64xf32> -> vector<7x64xf32>
      %383 = arith.addf %373, %382 : vector<7x64xf32>
      %c1_i32_268 = arith.constant 1 : i32
      %384 = arith.addi %arg2, %c1_i32_268 : i32
      %c1_i32_269 = arith.constant 1 : i32
      %385 = arith.addi %2, %c1_i32_269 : i32
      %386 = arith.index_cast %384 : i32 to index
      %387 = arith.index_cast %385 : i32 to index
      %c1_270 = arith.constant 1 : index
      %c0_271 = arith.constant 0 : index
      %388 = vector.load %arg4[%386, %387, %c1_270, %c0_271] : memref<4x9x9x4xf32, #tpu.memory_space<vmem>>, vector<1x1x7x4xf32>
      %389 = vector.shape_cast %388 : vector<1x1x7x4xf32> to vector<7x4xf32>
      %c38 = arith.constant 38 : index
      %c0_272 = arith.constant 0 : index
      %c0_273 = arith.constant 0 : index
      %390 = vector.load %arg7[%c38, %c0_272, %c0_273] : memref<75x4x64xf32, #tpu.memory_space<vmem>>, vector<1x4x64xf32>
      %391 = vector.shape_cast %390 : vector<1x4x64xf32> to vector<4x64xf32>
      %cst_274 = arith.constant dense<0.000000e+00> : vector<7x64xf32>
      %392 = tpu.matmul %389, %391, %cst_274 {dimension_numbers = #tpu.dot_dimension_numbers<[1], [0], [0], [1], [0, 0, 1, 1], [], []>} : vector<7x4xf32>, vector<4x64xf32>, vector<7x64xf32> -> vector<7x64xf32>
      %393 = arith.addf %383, %392 : vector<7x64xf32>
      %c1_i32_275 = arith.constant 1 : i32
      %394 = arith.addi %arg2, %c1_i32_275 : i32
      %c1_i32_276 = arith.constant 1 : i32
      %395 = arith.addi %2, %c1_i32_276 : i32
      %396 = arith.index_cast %394 : i32 to index
      %397 = arith.index_cast %395 : i32 to index
      %c2_277 = arith.constant 2 : index
      %c0_278 = arith.constant 0 : index
      %398 = vector.load %arg3[%396, %397, %c2_277, %c0_278] : memref<4x9x9x4xf32, #tpu.memory_space<vmem>>, vector<1x1x7x4xf32>
      %399 = vector.shape_cast %398 : vector<1x1x7x4xf32> to vector<7x4xf32>
      %c39 = arith.constant 39 : index
      %c0_279 = arith.constant 0 : index
      %c0_280 = arith.constant 0 : index
      %400 = vector.load %arg7[%c39, %c0_279, %c0_280] : memref<75x4x64xf32, #tpu.memory_space<vmem>>, vector<1x4x64xf32>
      %401 = vector.shape_cast %400 : vector<1x4x64xf32> to vector<4x64xf32>
      %cst_281 = arith.constant dense<0.000000e+00> : vector<7x64xf32>
      %402 = tpu.matmul %399, %401, %cst_281 {dimension_numbers = #tpu.dot_dimension_numbers<[1], [0], [0], [1], [0, 0, 1, 1], [], []>} : vector<7x4xf32>, vector<4x64xf32>, vector<7x64xf32> -> vector<7x64xf32>
      %403 = arith.addf %393, %402 : vector<7x64xf32>
      %c1_i32_282 = arith.constant 1 : i32
      %404 = arith.addi %arg2, %c1_i32_282 : i32
      %c1_i32_283 = arith.constant 1 : i32
      %405 = arith.addi %2, %c1_i32_283 : i32
      %406 = arith.index_cast %404 : i32 to index
      %407 = arith.index_cast %405 : i32 to index
      %c0_284 = arith.constant 0 : index
      %c0_285 = arith.constant 0 : index
      %408 = vector.load %arg5[%406, %407, %c0_284, %c0_285] : memref<4x9x9x4xf32, #tpu.memory_space<vmem>>, vector<1x1x7x4xf32>
      %409 = vector.shape_cast %408 : vector<1x1x7x4xf32> to vector<7x4xf32>
      %c40 = arith.constant 40 : index
      %c0_286 = arith.constant 0 : index
      %c0_287 = arith.constant 0 : index
      %410 = vector.load %arg7[%c40, %c0_286, %c0_287] : memref<75x4x64xf32, #tpu.memory_space<vmem>>, vector<1x4x64xf32>
      %411 = vector.shape_cast %410 : vector<1x4x64xf32> to vector<4x64xf32>
      %cst_288 = arith.constant dense<0.000000e+00> : vector<7x64xf32>
      %412 = tpu.matmul %409, %411, %cst_288 {dimension_numbers = #tpu.dot_dimension_numbers<[1], [0], [0], [1], [0, 0, 1, 1], [], []>} : vector<7x4xf32>, vector<4x64xf32>, vector<7x64xf32> -> vector<7x64xf32>
      %413 = arith.addf %403, %412 : vector<7x64xf32>
      %c1_i32_289 = arith.constant 1 : i32
      %414 = arith.addi %arg2, %c1_i32_289 : i32
      %c1_i32_290 = arith.constant 1 : i32
      %415 = arith.addi %2, %c1_i32_290 : i32
      %416 = arith.index_cast %414 : i32 to index
      %417 = arith.index_cast %415 : i32 to index
      %c0_291 = arith.constant 0 : index
      %c0_292 = arith.constant 0 : index
      %418 = vector.load %arg6[%416, %417, %c0_291, %c0_292] : memref<4x9x9x4xf32, #tpu.memory_space<vmem>>, vector<1x1x7x4xf32>
      %419 = vector.shape_cast %418 : vector<1x1x7x4xf32> to vector<7x4xf32>
      %c41 = arith.constant 41 : index
      %c0_293 = arith.constant 0 : index
      %c0_294 = arith.constant 0 : index
      %420 = vector.load %arg7[%c41, %c0_293, %c0_294] : memref<75x4x64xf32, #tpu.memory_space<vmem>>, vector<1x4x64xf32>
      %421 = vector.shape_cast %420 : vector<1x4x64xf32> to vector<4x64xf32>
      %cst_295 = arith.constant dense<0.000000e+00> : vector<7x64xf32>
      %422 = tpu.matmul %419, %421, %cst_295 {dimension_numbers = #tpu.dot_dimension_numbers<[1], [0], [0], [1], [0, 0, 1, 1], [], []>} : vector<7x4xf32>, vector<4x64xf32>, vector<7x64xf32> -> vector<7x64xf32>
      %423 = arith.addf %413, %422 : vector<7x64xf32>
      %c1_i32_296 = arith.constant 1 : i32
      %424 = arith.addi %arg2, %c1_i32_296 : i32
      %c1_i32_297 = arith.constant 1 : i32
      %425 = arith.addi %2, %c1_i32_297 : i32
      %426 = arith.index_cast %424 : i32 to index
      %427 = arith.index_cast %425 : i32 to index
      %c1_298 = arith.constant 1 : index
      %c0_299 = arith.constant 0 : index
      %428 = vector.load %arg5[%426, %427, %c1_298, %c0_299] : memref<4x9x9x4xf32, #tpu.memory_space<vmem>>, vector<1x1x7x4xf32>
      %429 = vector.shape_cast %428 : vector<1x1x7x4xf32> to vector<7x4xf32>
      %c42 = arith.constant 42 : index
      %c0_300 = arith.constant 0 : index
      %c0_301 = arith.constant 0 : index
      %430 = vector.load %arg7[%c42, %c0_300, %c0_301] : memref<75x4x64xf32, #tpu.memory_space<vmem>>, vector<1x4x64xf32>
      %431 = vector.shape_cast %430 : vector<1x4x64xf32> to vector<4x64xf32>
      %cst_302 = arith.constant dense<0.000000e+00> : vector<7x64xf32>
      %432 = tpu.matmul %429, %431, %cst_302 {dimension_numbers = #tpu.dot_dimension_numbers<[1], [0], [0], [1], [0, 0, 1, 1], [], []>} : vector<7x4xf32>, vector<4x64xf32>, vector<7x64xf32> -> vector<7x64xf32>
      %433 = arith.addf %423, %432 : vector<7x64xf32>
      %c1_i32_303 = arith.constant 1 : i32
      %434 = arith.addi %arg2, %c1_i32_303 : i32
      %c1_i32_304 = arith.constant 1 : i32
      %435 = arith.addi %2, %c1_i32_304 : i32
      %436 = arith.index_cast %434 : i32 to index
      %437 = arith.index_cast %435 : i32 to index
      %c1_305 = arith.constant 1 : index
      %c0_306 = arith.constant 0 : index
      %438 = vector.load %arg6[%436, %437, %c1_305, %c0_306] : memref<4x9x9x4xf32, #tpu.memory_space<vmem>>, vector<1x1x7x4xf32>
      %439 = vector.shape_cast %438 : vector<1x1x7x4xf32> to vector<7x4xf32>
      %c43 = arith.constant 43 : index
      %c0_307 = arith.constant 0 : index
      %c0_308 = arith.constant 0 : index
      %440 = vector.load %arg7[%c43, %c0_307, %c0_308] : memref<75x4x64xf32, #tpu.memory_space<vmem>>, vector<1x4x64xf32>
      %441 = vector.shape_cast %440 : vector<1x4x64xf32> to vector<4x64xf32>
      %cst_309 = arith.constant dense<0.000000e+00> : vector<7x64xf32>
      %442 = tpu.matmul %439, %441, %cst_309 {dimension_numbers = #tpu.dot_dimension_numbers<[1], [0], [0], [1], [0, 0, 1, 1], [], []>} : vector<7x4xf32>, vector<4x64xf32>, vector<7x64xf32> -> vector<7x64xf32>
      %443 = arith.addf %433, %442 : vector<7x64xf32>
      %c1_i32_310 = arith.constant 1 : i32
      %444 = arith.addi %arg2, %c1_i32_310 : i32
      %c1_i32_311 = arith.constant 1 : i32
      %445 = arith.addi %2, %c1_i32_311 : i32
      %446 = arith.index_cast %444 : i32 to index
      %447 = arith.index_cast %445 : i32 to index
      %c2_312 = arith.constant 2 : index
      %c0_313 = arith.constant 0 : index
      %448 = vector.load %arg5[%446, %447, %c2_312, %c0_313] : memref<4x9x9x4xf32, #tpu.memory_space<vmem>>, vector<1x1x7x4xf32>
      %449 = vector.shape_cast %448 : vector<1x1x7x4xf32> to vector<7x4xf32>
      %c44 = arith.constant 44 : index
      %c0_314 = arith.constant 0 : index
      %c0_315 = arith.constant 0 : index
      %450 = vector.load %arg7[%c44, %c0_314, %c0_315] : memref<75x4x64xf32, #tpu.memory_space<vmem>>, vector<1x4x64xf32>
      %451 = vector.shape_cast %450 : vector<1x4x64xf32> to vector<4x64xf32>
      %cst_316 = arith.constant dense<0.000000e+00> : vector<7x64xf32>
      %452 = tpu.matmul %449, %451, %cst_316 {dimension_numbers = #tpu.dot_dimension_numbers<[1], [0], [0], [1], [0, 0, 1, 1], [], []>} : vector<7x4xf32>, vector<4x64xf32>, vector<7x64xf32> -> vector<7x64xf32>
      %453 = arith.addf %443, %452 : vector<7x64xf32>
      %c1_i32_317 = arith.constant 1 : i32
      %454 = arith.addi %arg2, %c1_i32_317 : i32
      %c2_i32_318 = arith.constant 2 : i32
      %455 = arith.addi %2, %c2_i32_318 : i32
      %456 = arith.index_cast %454 : i32 to index
      %457 = arith.index_cast %455 : i32 to index
      %c0_319 = arith.constant 0 : index
      %c0_320 = arith.constant 0 : index
      %458 = vector.load %arg3[%456, %457, %c0_319, %c0_320] : memref<4x9x9x4xf32, #tpu.memory_space<vmem>>, vector<1x1x7x4xf32>
      %459 = vector.shape_cast %458 : vector<1x1x7x4xf32> to vector<7x4xf32>
      %c45 = arith.constant 45 : index
      %c0_321 = arith.constant 0 : index
      %c0_322 = arith.constant 0 : index
      %460 = vector.load %arg7[%c45, %c0_321, %c0_322] : memref<75x4x64xf32, #tpu.memory_space<vmem>>, vector<1x4x64xf32>
      %461 = vector.shape_cast %460 : vector<1x4x64xf32> to vector<4x64xf32>
      %cst_323 = arith.constant dense<0.000000e+00> : vector<7x64xf32>
      %462 = tpu.matmul %459, %461, %cst_323 {dimension_numbers = #tpu.dot_dimension_numbers<[1], [0], [0], [1], [0, 0, 1, 1], [], []>} : vector<7x4xf32>, vector<4x64xf32>, vector<7x64xf32> -> vector<7x64xf32>
      %463 = arith.addf %453, %462 : vector<7x64xf32>
      %c1_i32_324 = arith.constant 1 : i32
      %464 = arith.addi %arg2, %c1_i32_324 : i32
      %c2_i32_325 = arith.constant 2 : i32
      %465 = arith.addi %2, %c2_i32_325 : i32
      %466 = arith.index_cast %464 : i32 to index
      %467 = arith.index_cast %465 : i32 to index
      %c0_326 = arith.constant 0 : index
      %c0_327 = arith.constant 0 : index
      %468 = vector.load %arg4[%466, %467, %c0_326, %c0_327] : memref<4x9x9x4xf32, #tpu.memory_space<vmem>>, vector<1x1x7x4xf32>
      %469 = vector.shape_cast %468 : vector<1x1x7x4xf32> to vector<7x4xf32>
      %c46 = arith.constant 46 : index
      %c0_328 = arith.constant 0 : index
      %c0_329 = arith.constant 0 : index
      %470 = vector.load %arg7[%c46, %c0_328, %c0_329] : memref<75x4x64xf32, #tpu.memory_space<vmem>>, vector<1x4x64xf32>
      %471 = vector.shape_cast %470 : vector<1x4x64xf32> to vector<4x64xf32>
      %cst_330 = arith.constant dense<0.000000e+00> : vector<7x64xf32>
      %472 = tpu.matmul %469, %471, %cst_330 {dimension_numbers = #tpu.dot_dimension_numbers<[1], [0], [0], [1], [0, 0, 1, 1], [], []>} : vector<7x4xf32>, vector<4x64xf32>, vector<7x64xf32> -> vector<7x64xf32>
      %473 = arith.addf %463, %472 : vector<7x64xf32>
      %c1_i32_331 = arith.constant 1 : i32
      %474 = arith.addi %arg2, %c1_i32_331 : i32
      %c2_i32_332 = arith.constant 2 : i32
      %475 = arith.addi %2, %c2_i32_332 : i32
      %476 = arith.index_cast %474 : i32 to index
      %477 = arith.index_cast %475 : i32 to index
      %c1_333 = arith.constant 1 : index
      %c0_334 = arith.constant 0 : index
      %478 = vector.load %arg3[%476, %477, %c1_333, %c0_334] : memref<4x9x9x4xf32, #tpu.memory_space<vmem>>, vector<1x1x7x4xf32>
      %479 = vector.shape_cast %478 : vector<1x1x7x4xf32> to vector<7x4xf32>
      %c47 = arith.constant 47 : index
      %c0_335 = arith.constant 0 : index
      %c0_336 = arith.constant 0 : index
      %480 = vector.load %arg7[%c47, %c0_335, %c0_336] : memref<75x4x64xf32, #tpu.memory_space<vmem>>, vector<1x4x64xf32>
      %481 = vector.shape_cast %480 : vector<1x4x64xf32> to vector<4x64xf32>
      %cst_337 = arith.constant dense<0.000000e+00> : vector<7x64xf32>
      %482 = tpu.matmul %479, %481, %cst_337 {dimension_numbers = #tpu.dot_dimension_numbers<[1], [0], [0], [1], [0, 0, 1, 1], [], []>} : vector<7x4xf32>, vector<4x64xf32>, vector<7x64xf32> -> vector<7x64xf32>
      %483 = arith.addf %473, %482 : vector<7x64xf32>
      %c1_i32_338 = arith.constant 1 : i32
      %484 = arith.addi %arg2, %c1_i32_338 : i32
      %c2_i32_339 = arith.constant 2 : i32
      %485 = arith.addi %2, %c2_i32_339 : i32
      %486 = arith.index_cast %484 : i32 to index
      %487 = arith.index_cast %485 : i32 to index
      %c1_340 = arith.constant 1 : index
      %c0_341 = arith.constant 0 : index
      %488 = vector.load %arg4[%486, %487, %c1_340, %c0_341] : memref<4x9x9x4xf32, #tpu.memory_space<vmem>>, vector<1x1x7x4xf32>
      %489 = vector.shape_cast %488 : vector<1x1x7x4xf32> to vector<7x4xf32>
      %c48 = arith.constant 48 : index
      %c0_342 = arith.constant 0 : index
      %c0_343 = arith.constant 0 : index
      %490 = vector.load %arg7[%c48, %c0_342, %c0_343] : memref<75x4x64xf32, #tpu.memory_space<vmem>>, vector<1x4x64xf32>
      %491 = vector.shape_cast %490 : vector<1x4x64xf32> to vector<4x64xf32>
      %cst_344 = arith.constant dense<0.000000e+00> : vector<7x64xf32>
      %492 = tpu.matmul %489, %491, %cst_344 {dimension_numbers = #tpu.dot_dimension_numbers<[1], [0], [0], [1], [0, 0, 1, 1], [], []>} : vector<7x4xf32>, vector<4x64xf32>, vector<7x64xf32> -> vector<7x64xf32>
      %493 = arith.addf %483, %492 : vector<7x64xf32>
      %c1_i32_345 = arith.constant 1 : i32
      %494 = arith.addi %arg2, %c1_i32_345 : i32
      %c2_i32_346 = arith.constant 2 : i32
      %495 = arith.addi %2, %c2_i32_346 : i32
      %496 = arith.index_cast %494 : i32 to index
      %497 = arith.index_cast %495 : i32 to index
      %c2_347 = arith.constant 2 : index
      %c0_348 = arith.constant 0 : index
      %498 = vector.load %arg3[%496, %497, %c2_347, %c0_348] : memref<4x9x9x4xf32, #tpu.memory_space<vmem>>, vector<1x1x7x4xf32>
      %499 = vector.shape_cast %498 : vector<1x1x7x4xf32> to vector<7x4xf32>
      %c49 = arith.constant 49 : index
      %c0_349 = arith.constant 0 : index
      %c0_350 = arith.constant 0 : index
      %500 = vector.load %arg7[%c49, %c0_349, %c0_350] : memref<75x4x64xf32, #tpu.memory_space<vmem>>, vector<1x4x64xf32>
      %501 = vector.shape_cast %500 : vector<1x4x64xf32> to vector<4x64xf32>
      %cst_351 = arith.constant dense<0.000000e+00> : vector<7x64xf32>
      %502 = tpu.matmul %499, %501, %cst_351 {dimension_numbers = #tpu.dot_dimension_numbers<[1], [0], [0], [1], [0, 0, 1, 1], [], []>} : vector<7x4xf32>, vector<4x64xf32>, vector<7x64xf32> -> vector<7x64xf32>
      %503 = arith.addf %493, %502 : vector<7x64xf32>
      %c2_i32_352 = arith.constant 2 : i32
      %504 = arith.addi %arg2, %c2_i32_352 : i32
      %c0_i32_353 = arith.constant 0 : i32
      %505 = arith.addi %2, %c0_i32_353 : i32
      %506 = arith.index_cast %504 : i32 to index
      %507 = arith.index_cast %505 : i32 to index
      %c0_354 = arith.constant 0 : index
      %c0_355 = arith.constant 0 : index
      %508 = vector.load %arg3[%506, %507, %c0_354, %c0_355] : memref<4x9x9x4xf32, #tpu.memory_space<vmem>>, vector<1x1x7x4xf32>
      %509 = vector.shape_cast %508 : vector<1x1x7x4xf32> to vector<7x4xf32>
      %c50 = arith.constant 50 : index
      %c0_356 = arith.constant 0 : index
      %c0_357 = arith.constant 0 : index
      %510 = vector.load %arg7[%c50, %c0_356, %c0_357] : memref<75x4x64xf32, #tpu.memory_space<vmem>>, vector<1x4x64xf32>
      %511 = vector.shape_cast %510 : vector<1x4x64xf32> to vector<4x64xf32>
      %cst_358 = arith.constant dense<0.000000e+00> : vector<7x64xf32>
      %512 = tpu.matmul %509, %511, %cst_358 {dimension_numbers = #tpu.dot_dimension_numbers<[1], [0], [0], [1], [0, 0, 1, 1], [], []>} : vector<7x4xf32>, vector<4x64xf32>, vector<7x64xf32> -> vector<7x64xf32>
      %513 = arith.addf %503, %512 : vector<7x64xf32>
      %c2_i32_359 = arith.constant 2 : i32
      %514 = arith.addi %arg2, %c2_i32_359 : i32
      %c0_i32_360 = arith.constant 0 : i32
      %515 = arith.addi %2, %c0_i32_360 : i32
      %516 = arith.index_cast %514 : i32 to index
      %517 = arith.index_cast %515 : i32 to index
      %c0_361 = arith.constant 0 : index
      %c0_362 = arith.constant 0 : index
      %518 = vector.load %arg4[%516, %517, %c0_361, %c0_362] : memref<4x9x9x4xf32, #tpu.memory_space<vmem>>, vector<1x1x7x4xf32>
      %519 = vector.shape_cast %518 : vector<1x1x7x4xf32> to vector<7x4xf32>
      %c51 = arith.constant 51 : index
      %c0_363 = arith.constant 0 : index
      %c0_364 = arith.constant 0 : index
      %520 = vector.load %arg7[%c51, %c0_363, %c0_364] : memref<75x4x64xf32, #tpu.memory_space<vmem>>, vector<1x4x64xf32>
      %521 = vector.shape_cast %520 : vector<1x4x64xf32> to vector<4x64xf32>
      %cst_365 = arith.constant dense<0.000000e+00> : vector<7x64xf32>
      %522 = tpu.matmul %519, %521, %cst_365 {dimension_numbers = #tpu.dot_dimension_numbers<[1], [0], [0], [1], [0, 0, 1, 1], [], []>} : vector<7x4xf32>, vector<4x64xf32>, vector<7x64xf32> -> vector<7x64xf32>
      %523 = arith.addf %513, %522 : vector<7x64xf32>
      %c2_i32_366 = arith.constant 2 : i32
      %524 = arith.addi %arg2, %c2_i32_366 : i32
      %c0_i32_367 = arith.constant 0 : i32
      %525 = arith.addi %2, %c0_i32_367 : i32
      %526 = arith.index_cast %524 : i32 to index
      %527 = arith.index_cast %525 : i32 to index
      %c1_368 = arith.constant 1 : index
      %c0_369 = arith.constant 0 : index
      %528 = vector.load %arg3[%526, %527, %c1_368, %c0_369] : memref<4x9x9x4xf32, #tpu.memory_space<vmem>>, vector<1x1x7x4xf32>
      %529 = vector.shape_cast %528 : vector<1x1x7x4xf32> to vector<7x4xf32>
      %c52 = arith.constant 52 : index
      %c0_370 = arith.constant 0 : index
      %c0_371 = arith.constant 0 : index
      %530 = vector.load %arg7[%c52, %c0_370, %c0_371] : memref<75x4x64xf32, #tpu.memory_space<vmem>>, vector<1x4x64xf32>
      %531 = vector.shape_cast %530 : vector<1x4x64xf32> to vector<4x64xf32>
      %cst_372 = arith.constant dense<0.000000e+00> : vector<7x64xf32>
      %532 = tpu.matmul %529, %531, %cst_372 {dimension_numbers = #tpu.dot_dimension_numbers<[1], [0], [0], [1], [0, 0, 1, 1], [], []>} : vector<7x4xf32>, vector<4x64xf32>, vector<7x64xf32> -> vector<7x64xf32>
      %533 = arith.addf %523, %532 : vector<7x64xf32>
      %c2_i32_373 = arith.constant 2 : i32
      %534 = arith.addi %arg2, %c2_i32_373 : i32
      %c0_i32_374 = arith.constant 0 : i32
      %535 = arith.addi %2, %c0_i32_374 : i32
      %536 = arith.index_cast %534 : i32 to index
      %537 = arith.index_cast %535 : i32 to index
      %c1_375 = arith.constant 1 : index
      %c0_376 = arith.constant 0 : index
      %538 = vector.load %arg4[%536, %537, %c1_375, %c0_376] : memref<4x9x9x4xf32, #tpu.memory_space<vmem>>, vector<1x1x7x4xf32>
      %539 = vector.shape_cast %538 : vector<1x1x7x4xf32> to vector<7x4xf32>
      %c53 = arith.constant 53 : index
      %c0_377 = arith.constant 0 : index
      %c0_378 = arith.constant 0 : index
      %540 = vector.load %arg7[%c53, %c0_377, %c0_378] : memref<75x4x64xf32, #tpu.memory_space<vmem>>, vector<1x4x64xf32>
      %541 = vector.shape_cast %540 : vector<1x4x64xf32> to vector<4x64xf32>
      %cst_379 = arith.constant dense<0.000000e+00> : vector<7x64xf32>
      %542 = tpu.matmul %539, %541, %cst_379 {dimension_numbers = #tpu.dot_dimension_numbers<[1], [0], [0], [1], [0, 0, 1, 1], [], []>} : vector<7x4xf32>, vector<4x64xf32>, vector<7x64xf32> -> vector<7x64xf32>
      %543 = arith.addf %533, %542 : vector<7x64xf32>
      %c2_i32_380 = arith.constant 2 : i32
      %544 = arith.addi %arg2, %c2_i32_380 : i32
      %c0_i32_381 = arith.constant 0 : i32
      %545 = arith.addi %2, %c0_i32_381 : i32
      %546 = arith.index_cast %544 : i32 to index
      %547 = arith.index_cast %545 : i32 to index
      %c2_382 = arith.constant 2 : index
      %c0_383 = arith.constant 0 : index
      %548 = vector.load %arg3[%546, %547, %c2_382, %c0_383] : memref<4x9x9x4xf32, #tpu.memory_space<vmem>>, vector<1x1x7x4xf32>
      %549 = vector.shape_cast %548 : vector<1x1x7x4xf32> to vector<7x4xf32>
      %c54 = arith.constant 54 : index
      %c0_384 = arith.constant 0 : index
      %c0_385 = arith.constant 0 : index
      %550 = vector.load %arg7[%c54, %c0_384, %c0_385] : memref<75x4x64xf32, #tpu.memory_space<vmem>>, vector<1x4x64xf32>
      %551 = vector.shape_cast %550 : vector<1x4x64xf32> to vector<4x64xf32>
      %cst_386 = arith.constant dense<0.000000e+00> : vector<7x64xf32>
      %552 = tpu.matmul %549, %551, %cst_386 {dimension_numbers = #tpu.dot_dimension_numbers<[1], [0], [0], [1], [0, 0, 1, 1], [], []>} : vector<7x4xf32>, vector<4x64xf32>, vector<7x64xf32> -> vector<7x64xf32>
      %553 = arith.addf %543, %552 : vector<7x64xf32>
      %c2_i32_387 = arith.constant 2 : i32
      %554 = arith.addi %arg2, %c2_i32_387 : i32
      %c0_i32_388 = arith.constant 0 : i32
      %555 = arith.addi %2, %c0_i32_388 : i32
      %556 = arith.index_cast %554 : i32 to index
      %557 = arith.index_cast %555 : i32 to index
      %c0_389 = arith.constant 0 : index
      %c0_390 = arith.constant 0 : index
      %558 = vector.load %arg5[%556, %557, %c0_389, %c0_390] : memref<4x9x9x4xf32, #tpu.memory_space<vmem>>, vector<1x1x7x4xf32>
      %559 = vector.shape_cast %558 : vector<1x1x7x4xf32> to vector<7x4xf32>
      %c55 = arith.constant 55 : index
      %c0_391 = arith.constant 0 : index
      %c0_392 = arith.constant 0 : index
      %560 = vector.load %arg7[%c55, %c0_391, %c0_392] : memref<75x4x64xf32, #tpu.memory_space<vmem>>, vector<1x4x64xf32>
      %561 = vector.shape_cast %560 : vector<1x4x64xf32> to vector<4x64xf32>
      %cst_393 = arith.constant dense<0.000000e+00> : vector<7x64xf32>
      %562 = tpu.matmul %559, %561, %cst_393 {dimension_numbers = #tpu.dot_dimension_numbers<[1], [0], [0], [1], [0, 0, 1, 1], [], []>} : vector<7x4xf32>, vector<4x64xf32>, vector<7x64xf32> -> vector<7x64xf32>
      %563 = arith.addf %553, %562 : vector<7x64xf32>
      %c2_i32_394 = arith.constant 2 : i32
      %564 = arith.addi %arg2, %c2_i32_394 : i32
      %c0_i32_395 = arith.constant 0 : i32
      %565 = arith.addi %2, %c0_i32_395 : i32
      %566 = arith.index_cast %564 : i32 to index
      %567 = arith.index_cast %565 : i32 to index
      %c0_396 = arith.constant 0 : index
      %c0_397 = arith.constant 0 : index
      %568 = vector.load %arg6[%566, %567, %c0_396, %c0_397] : memref<4x9x9x4xf32, #tpu.memory_space<vmem>>, vector<1x1x7x4xf32>
      %569 = vector.shape_cast %568 : vector<1x1x7x4xf32> to vector<7x4xf32>
      %c56 = arith.constant 56 : index
      %c0_398 = arith.constant 0 : index
      %c0_399 = arith.constant 0 : index
      %570 = vector.load %arg7[%c56, %c0_398, %c0_399] : memref<75x4x64xf32, #tpu.memory_space<vmem>>, vector<1x4x64xf32>
      %571 = vector.shape_cast %570 : vector<1x4x64xf32> to vector<4x64xf32>
      %cst_400 = arith.constant dense<0.000000e+00> : vector<7x64xf32>
      %572 = tpu.matmul %569, %571, %cst_400 {dimension_numbers = #tpu.dot_dimension_numbers<[1], [0], [0], [1], [0, 0, 1, 1], [], []>} : vector<7x4xf32>, vector<4x64xf32>, vector<7x64xf32> -> vector<7x64xf32>
      %573 = arith.addf %563, %572 : vector<7x64xf32>
      %c2_i32_401 = arith.constant 2 : i32
      %574 = arith.addi %arg2, %c2_i32_401 : i32
      %c0_i32_402 = arith.constant 0 : i32
      %575 = arith.addi %2, %c0_i32_402 : i32
      %576 = arith.index_cast %574 : i32 to index
      %577 = arith.index_cast %575 : i32 to index
      %c1_403 = arith.constant 1 : index
      %c0_404 = arith.constant 0 : index
      %578 = vector.load %arg5[%576, %577, %c1_403, %c0_404] : memref<4x9x9x4xf32, #tpu.memory_space<vmem>>, vector<1x1x7x4xf32>
      %579 = vector.shape_cast %578 : vector<1x1x7x4xf32> to vector<7x4xf32>
      %c57 = arith.constant 57 : index
      %c0_405 = arith.constant 0 : index
      %c0_406 = arith.constant 0 : index
      %580 = vector.load %arg7[%c57, %c0_405, %c0_406] : memref<75x4x64xf32, #tpu.memory_space<vmem>>, vector<1x4x64xf32>
      %581 = vector.shape_cast %580 : vector<1x4x64xf32> to vector<4x64xf32>
      %cst_407 = arith.constant dense<0.000000e+00> : vector<7x64xf32>
      %582 = tpu.matmul %579, %581, %cst_407 {dimension_numbers = #tpu.dot_dimension_numbers<[1], [0], [0], [1], [0, 0, 1, 1], [], []>} : vector<7x4xf32>, vector<4x64xf32>, vector<7x64xf32> -> vector<7x64xf32>
      %583 = arith.addf %573, %582 : vector<7x64xf32>
      %c2_i32_408 = arith.constant 2 : i32
      %584 = arith.addi %arg2, %c2_i32_408 : i32
      %c0_i32_409 = arith.constant 0 : i32
      %585 = arith.addi %2, %c0_i32_409 : i32
      %586 = arith.index_cast %584 : i32 to index
      %587 = arith.index_cast %585 : i32 to index
      %c1_410 = arith.constant 1 : index
      %c0_411 = arith.constant 0 : index
      %588 = vector.load %arg6[%586, %587, %c1_410, %c0_411] : memref<4x9x9x4xf32, #tpu.memory_space<vmem>>, vector<1x1x7x4xf32>
      %589 = vector.shape_cast %588 : vector<1x1x7x4xf32> to vector<7x4xf32>
      %c58 = arith.constant 58 : index
      %c0_412 = arith.constant 0 : index
      %c0_413 = arith.constant 0 : index
      %590 = vector.load %arg7[%c58, %c0_412, %c0_413] : memref<75x4x64xf32, #tpu.memory_space<vmem>>, vector<1x4x64xf32>
      %591 = vector.shape_cast %590 : vector<1x4x64xf32> to vector<4x64xf32>
      %cst_414 = arith.constant dense<0.000000e+00> : vector<7x64xf32>
      %592 = tpu.matmul %589, %591, %cst_414 {dimension_numbers = #tpu.dot_dimension_numbers<[1], [0], [0], [1], [0, 0, 1, 1], [], []>} : vector<7x4xf32>, vector<4x64xf32>, vector<7x64xf32> -> vector<7x64xf32>
      %593 = arith.addf %583, %592 : vector<7x64xf32>
      %c2_i32_415 = arith.constant 2 : i32
      %594 = arith.addi %arg2, %c2_i32_415 : i32
      %c0_i32_416 = arith.constant 0 : i32
      %595 = arith.addi %2, %c0_i32_416 : i32
      %596 = arith.index_cast %594 : i32 to index
      %597 = arith.index_cast %595 : i32 to index
      %c2_417 = arith.constant 2 : index
      %c0_418 = arith.constant 0 : index
      %598 = vector.load %arg5[%596, %597, %c2_417, %c0_418] : memref<4x9x9x4xf32, #tpu.memory_space<vmem>>, vector<1x1x7x4xf32>
      %599 = vector.shape_cast %598 : vector<1x1x7x4xf32> to vector<7x4xf32>
      %c59 = arith.constant 59 : index
      %c0_419 = arith.constant 0 : index
      %c0_420 = arith.constant 0 : index
      %600 = vector.load %arg7[%c59, %c0_419, %c0_420] : memref<75x4x64xf32, #tpu.memory_space<vmem>>, vector<1x4x64xf32>
      %601 = vector.shape_cast %600 : vector<1x4x64xf32> to vector<4x64xf32>
      %cst_421 = arith.constant dense<0.000000e+00> : vector<7x64xf32>
      %602 = tpu.matmul %599, %601, %cst_421 {dimension_numbers = #tpu.dot_dimension_numbers<[1], [0], [0], [1], [0, 0, 1, 1], [], []>} : vector<7x4xf32>, vector<4x64xf32>, vector<7x64xf32> -> vector<7x64xf32>
      %603 = arith.addf %593, %602 : vector<7x64xf32>
      %c2_i32_422 = arith.constant 2 : i32
      %604 = arith.addi %arg2, %c2_i32_422 : i32
      %c1_i32_423 = arith.constant 1 : i32
      %605 = arith.addi %2, %c1_i32_423 : i32
      %606 = arith.index_cast %604 : i32 to index
      %607 = arith.index_cast %605 : i32 to index
      %c0_424 = arith.constant 0 : index
      %c0_425 = arith.constant 0 : index
      %608 = vector.load %arg3[%606, %607, %c0_424, %c0_425] : memref<4x9x9x4xf32, #tpu.memory_space<vmem>>, vector<1x1x7x4xf32>
      %609 = vector.shape_cast %608 : vector<1x1x7x4xf32> to vector<7x4xf32>
      %c60 = arith.constant 60 : index
      %c0_426 = arith.constant 0 : index
      %c0_427 = arith.constant 0 : index
      %610 = vector.load %arg7[%c60, %c0_426, %c0_427] : memref<75x4x64xf32, #tpu.memory_space<vmem>>, vector<1x4x64xf32>
      %611 = vector.shape_cast %610 : vector<1x4x64xf32> to vector<4x64xf32>
      %cst_428 = arith.constant dense<0.000000e+00> : vector<7x64xf32>
      %612 = tpu.matmul %609, %611, %cst_428 {dimension_numbers = #tpu.dot_dimension_numbers<[1], [0], [0], [1], [0, 0, 1, 1], [], []>} : vector<7x4xf32>, vector<4x64xf32>, vector<7x64xf32> -> vector<7x64xf32>
      %613 = arith.addf %603, %612 : vector<7x64xf32>
      %c2_i32_429 = arith.constant 2 : i32
      %614 = arith.addi %arg2, %c2_i32_429 : i32
      %c1_i32_430 = arith.constant 1 : i32
      %615 = arith.addi %2, %c1_i32_430 : i32
      %616 = arith.index_cast %614 : i32 to index
      %617 = arith.index_cast %615 : i32 to index
      %c0_431 = arith.constant 0 : index
      %c0_432 = arith.constant 0 : index
      %618 = vector.load %arg4[%616, %617, %c0_431, %c0_432] : memref<4x9x9x4xf32, #tpu.memory_space<vmem>>, vector<1x1x7x4xf32>
      %619 = vector.shape_cast %618 : vector<1x1x7x4xf32> to vector<7x4xf32>
      %c61 = arith.constant 61 : index
      %c0_433 = arith.constant 0 : index
      %c0_434 = arith.constant 0 : index
      %620 = vector.load %arg7[%c61, %c0_433, %c0_434] : memref<75x4x64xf32, #tpu.memory_space<vmem>>, vector<1x4x64xf32>
      %621 = vector.shape_cast %620 : vector<1x4x64xf32> to vector<4x64xf32>
      %cst_435 = arith.constant dense<0.000000e+00> : vector<7x64xf32>
      %622 = tpu.matmul %619, %621, %cst_435 {dimension_numbers = #tpu.dot_dimension_numbers<[1], [0], [0], [1], [0, 0, 1, 1], [], []>} : vector<7x4xf32>, vector<4x64xf32>, vector<7x64xf32> -> vector<7x64xf32>
      %623 = arith.addf %613, %622 : vector<7x64xf32>
      %c2_i32_436 = arith.constant 2 : i32
      %624 = arith.addi %arg2, %c2_i32_436 : i32
      %c1_i32_437 = arith.constant 1 : i32
      %625 = arith.addi %2, %c1_i32_437 : i32
      %626 = arith.index_cast %624 : i32 to index
      %627 = arith.index_cast %625 : i32 to index
      %c1_438 = arith.constant 1 : index
      %c0_439 = arith.constant 0 : index
      %628 = vector.load %arg3[%626, %627, %c1_438, %c0_439] : memref<4x9x9x4xf32, #tpu.memory_space<vmem>>, vector<1x1x7x4xf32>
      %629 = vector.shape_cast %628 : vector<1x1x7x4xf32> to vector<7x4xf32>
      %c62 = arith.constant 62 : index
      %c0_440 = arith.constant 0 : index
      %c0_441 = arith.constant 0 : index
      %630 = vector.load %arg7[%c62, %c0_440, %c0_441] : memref<75x4x64xf32, #tpu.memory_space<vmem>>, vector<1x4x64xf32>
      %631 = vector.shape_cast %630 : vector<1x4x64xf32> to vector<4x64xf32>
      %cst_442 = arith.constant dense<0.000000e+00> : vector<7x64xf32>
      %632 = tpu.matmul %629, %631, %cst_442 {dimension_numbers = #tpu.dot_dimension_numbers<[1], [0], [0], [1], [0, 0, 1, 1], [], []>} : vector<7x4xf32>, vector<4x64xf32>, vector<7x64xf32> -> vector<7x64xf32>
      %633 = arith.addf %623, %632 : vector<7x64xf32>
      %c2_i32_443 = arith.constant 2 : i32
      %634 = arith.addi %arg2, %c2_i32_443 : i32
      %c1_i32_444 = arith.constant 1 : i32
      %635 = arith.addi %2, %c1_i32_444 : i32
      %636 = arith.index_cast %634 : i32 to index
      %637 = arith.index_cast %635 : i32 to index
      %c1_445 = arith.constant 1 : index
      %c0_446 = arith.constant 0 : index
      %638 = vector.load %arg4[%636, %637, %c1_445, %c0_446] : memref<4x9x9x4xf32, #tpu.memory_space<vmem>>, vector<1x1x7x4xf32>
      %639 = vector.shape_cast %638 : vector<1x1x7x4xf32> to vector<7x4xf32>
      %c63 = arith.constant 63 : index
      %c0_447 = arith.constant 0 : index
      %c0_448 = arith.constant 0 : index
      %640 = vector.load %arg7[%c63, %c0_447, %c0_448] : memref<75x4x64xf32, #tpu.memory_space<vmem>>, vector<1x4x64xf32>
      %641 = vector.shape_cast %640 : vector<1x4x64xf32> to vector<4x64xf32>
      %cst_449 = arith.constant dense<0.000000e+00> : vector<7x64xf32>
      %642 = tpu.matmul %639, %641, %cst_449 {dimension_numbers = #tpu.dot_dimension_numbers<[1], [0], [0], [1], [0, 0, 1, 1], [], []>} : vector<7x4xf32>, vector<4x64xf32>, vector<7x64xf32> -> vector<7x64xf32>
      %643 = arith.addf %633, %642 : vector<7x64xf32>
      %c2_i32_450 = arith.constant 2 : i32
      %644 = arith.addi %arg2, %c2_i32_450 : i32
      %c1_i32_451 = arith.constant 1 : i32
      %645 = arith.addi %2, %c1_i32_451 : i32
      %646 = arith.index_cast %644 : i32 to index
      %647 = arith.index_cast %645 : i32 to index
      %c2_452 = arith.constant 2 : index
      %c0_453 = arith.constant 0 : index
      %648 = vector.load %arg3[%646, %647, %c2_452, %c0_453] : memref<4x9x9x4xf32, #tpu.memory_space<vmem>>, vector<1x1x7x4xf32>
      %649 = vector.shape_cast %648 : vector<1x1x7x4xf32> to vector<7x4xf32>
      %c64 = arith.constant 64 : index
      %c0_454 = arith.constant 0 : index
      %c0_455 = arith.constant 0 : index
      %650 = vector.load %arg7[%c64, %c0_454, %c0_455] : memref<75x4x64xf32, #tpu.memory_space<vmem>>, vector<1x4x64xf32>
      %651 = vector.shape_cast %650 : vector<1x4x64xf32> to vector<4x64xf32>
      %cst_456 = arith.constant dense<0.000000e+00> : vector<7x64xf32>
      %652 = tpu.matmul %649, %651, %cst_456 {dimension_numbers = #tpu.dot_dimension_numbers<[1], [0], [0], [1], [0, 0, 1, 1], [], []>} : vector<7x4xf32>, vector<4x64xf32>, vector<7x64xf32> -> vector<7x64xf32>
      %653 = arith.addf %643, %652 : vector<7x64xf32>
      %c2_i32_457 = arith.constant 2 : i32
      %654 = arith.addi %arg2, %c2_i32_457 : i32
      %c1_i32_458 = arith.constant 1 : i32
      %655 = arith.addi %2, %c1_i32_458 : i32
      %656 = arith.index_cast %654 : i32 to index
      %657 = arith.index_cast %655 : i32 to index
      %c0_459 = arith.constant 0 : index
      %c0_460 = arith.constant 0 : index
      %658 = vector.load %arg5[%656, %657, %c0_459, %c0_460] : memref<4x9x9x4xf32, #tpu.memory_space<vmem>>, vector<1x1x7x4xf32>
      %659 = vector.shape_cast %658 : vector<1x1x7x4xf32> to vector<7x4xf32>
      %c65 = arith.constant 65 : index
      %c0_461 = arith.constant 0 : index
      %c0_462 = arith.constant 0 : index
      %660 = vector.load %arg7[%c65, %c0_461, %c0_462] : memref<75x4x64xf32, #tpu.memory_space<vmem>>, vector<1x4x64xf32>
      %661 = vector.shape_cast %660 : vector<1x4x64xf32> to vector<4x64xf32>
      %cst_463 = arith.constant dense<0.000000e+00> : vector<7x64xf32>
      %662 = tpu.matmul %659, %661, %cst_463 {dimension_numbers = #tpu.dot_dimension_numbers<[1], [0], [0], [1], [0, 0, 1, 1], [], []>} : vector<7x4xf32>, vector<4x64xf32>, vector<7x64xf32> -> vector<7x64xf32>
      %663 = arith.addf %653, %662 : vector<7x64xf32>
      %c2_i32_464 = arith.constant 2 : i32
      %664 = arith.addi %arg2, %c2_i32_464 : i32
      %c1_i32_465 = arith.constant 1 : i32
      %665 = arith.addi %2, %c1_i32_465 : i32
      %666 = arith.index_cast %664 : i32 to index
      %667 = arith.index_cast %665 : i32 to index
      %c0_466 = arith.constant 0 : index
      %c0_467 = arith.constant 0 : index
      %668 = vector.load %arg6[%666, %667, %c0_466, %c0_467] : memref<4x9x9x4xf32, #tpu.memory_space<vmem>>, vector<1x1x7x4xf32>
      %669 = vector.shape_cast %668 : vector<1x1x7x4xf32> to vector<7x4xf32>
      %c66 = arith.constant 66 : index
      %c0_468 = arith.constant 0 : index
      %c0_469 = arith.constant 0 : index
      %670 = vector.load %arg7[%c66, %c0_468, %c0_469] : memref<75x4x64xf32, #tpu.memory_space<vmem>>, vector<1x4x64xf32>
      %671 = vector.shape_cast %670 : vector<1x4x64xf32> to vector<4x64xf32>
      %cst_470 = arith.constant dense<0.000000e+00> : vector<7x64xf32>
      %672 = tpu.matmul %669, %671, %cst_470 {dimension_numbers = #tpu.dot_dimension_numbers<[1], [0], [0], [1], [0, 0, 1, 1], [], []>} : vector<7x4xf32>, vector<4x64xf32>, vector<7x64xf32> -> vector<7x64xf32>
      %673 = arith.addf %663, %672 : vector<7x64xf32>
      %c2_i32_471 = arith.constant 2 : i32
      %674 = arith.addi %arg2, %c2_i32_471 : i32
      %c1_i32_472 = arith.constant 1 : i32
      %675 = arith.addi %2, %c1_i32_472 : i32
      %676 = arith.index_cast %674 : i32 to index
      %677 = arith.index_cast %675 : i32 to index
      %c1_473 = arith.constant 1 : index
      %c0_474 = arith.constant 0 : index
      %678 = vector.load %arg5[%676, %677, %c1_473, %c0_474] : memref<4x9x9x4xf32, #tpu.memory_space<vmem>>, vector<1x1x7x4xf32>
      %679 = vector.shape_cast %678 : vector<1x1x7x4xf32> to vector<7x4xf32>
      %c67 = arith.constant 67 : index
      %c0_475 = arith.constant 0 : index
      %c0_476 = arith.constant 0 : index
      %680 = vector.load %arg7[%c67, %c0_475, %c0_476] : memref<75x4x64xf32, #tpu.memory_space<vmem>>, vector<1x4x64xf32>
      %681 = vector.shape_cast %680 : vector<1x4x64xf32> to vector<4x64xf32>
      %cst_477 = arith.constant dense<0.000000e+00> : vector<7x64xf32>
      %682 = tpu.matmul %679, %681, %cst_477 {dimension_numbers = #tpu.dot_dimension_numbers<[1], [0], [0], [1], [0, 0, 1, 1], [], []>} : vector<7x4xf32>, vector<4x64xf32>, vector<7x64xf32> -> vector<7x64xf32>
      %683 = arith.addf %673, %682 : vector<7x64xf32>
      %c2_i32_478 = arith.constant 2 : i32
      %684 = arith.addi %arg2, %c2_i32_478 : i32
      %c1_i32_479 = arith.constant 1 : i32
      %685 = arith.addi %2, %c1_i32_479 : i32
      %686 = arith.index_cast %684 : i32 to index
      %687 = arith.index_cast %685 : i32 to index
      %c1_480 = arith.constant 1 : index
      %c0_481 = arith.constant 0 : index
      %688 = vector.load %arg6[%686, %687, %c1_480, %c0_481] : memref<4x9x9x4xf32, #tpu.memory_space<vmem>>, vector<1x1x7x4xf32>
      %689 = vector.shape_cast %688 : vector<1x1x7x4xf32> to vector<7x4xf32>
      %c68 = arith.constant 68 : index
      %c0_482 = arith.constant 0 : index
      %c0_483 = arith.constant 0 : index
      %690 = vector.load %arg7[%c68, %c0_482, %c0_483] : memref<75x4x64xf32, #tpu.memory_space<vmem>>, vector<1x4x64xf32>
      %691 = vector.shape_cast %690 : vector<1x4x64xf32> to vector<4x64xf32>
      %cst_484 = arith.constant dense<0.000000e+00> : vector<7x64xf32>
      %692 = tpu.matmul %689, %691, %cst_484 {dimension_numbers = #tpu.dot_dimension_numbers<[1], [0], [0], [1], [0, 0, 1, 1], [], []>} : vector<7x4xf32>, vector<4x64xf32>, vector<7x64xf32> -> vector<7x64xf32>
      %693 = arith.addf %683, %692 : vector<7x64xf32>
      %c2_i32_485 = arith.constant 2 : i32
      %694 = arith.addi %arg2, %c2_i32_485 : i32
      %c1_i32_486 = arith.constant 1 : i32
      %695 = arith.addi %2, %c1_i32_486 : i32
      %696 = arith.index_cast %694 : i32 to index
      %697 = arith.index_cast %695 : i32 to index
      %c2_487 = arith.constant 2 : index
      %c0_488 = arith.constant 0 : index
      %698 = vector.load %arg5[%696, %697, %c2_487, %c0_488] : memref<4x9x9x4xf32, #tpu.memory_space<vmem>>, vector<1x1x7x4xf32>
      %699 = vector.shape_cast %698 : vector<1x1x7x4xf32> to vector<7x4xf32>
      %c69 = arith.constant 69 : index
      %c0_489 = arith.constant 0 : index
      %c0_490 = arith.constant 0 : index
      %700 = vector.load %arg7[%c69, %c0_489, %c0_490] : memref<75x4x64xf32, #tpu.memory_space<vmem>>, vector<1x4x64xf32>
      %701 = vector.shape_cast %700 : vector<1x4x64xf32> to vector<4x64xf32>
      %cst_491 = arith.constant dense<0.000000e+00> : vector<7x64xf32>
      %702 = tpu.matmul %699, %701, %cst_491 {dimension_numbers = #tpu.dot_dimension_numbers<[1], [0], [0], [1], [0, 0, 1, 1], [], []>} : vector<7x4xf32>, vector<4x64xf32>, vector<7x64xf32> -> vector<7x64xf32>
      %703 = arith.addf %693, %702 : vector<7x64xf32>
      %c2_i32_492 = arith.constant 2 : i32
      %704 = arith.addi %arg2, %c2_i32_492 : i32
      %c2_i32_493 = arith.constant 2 : i32
      %705 = arith.addi %2, %c2_i32_493 : i32
      %706 = arith.index_cast %704 : i32 to index
      %707 = arith.index_cast %705 : i32 to index
      %c0_494 = arith.constant 0 : index
      %c0_495 = arith.constant 0 : index
      %708 = vector.load %arg3[%706, %707, %c0_494, %c0_495] : memref<4x9x9x4xf32, #tpu.memory_space<vmem>>, vector<1x1x7x4xf32>
      %709 = vector.shape_cast %708 : vector<1x1x7x4xf32> to vector<7x4xf32>
      %c70 = arith.constant 70 : index
      %c0_496 = arith.constant 0 : index
      %c0_497 = arith.constant 0 : index
      %710 = vector.load %arg7[%c70, %c0_496, %c0_497] : memref<75x4x64xf32, #tpu.memory_space<vmem>>, vector<1x4x64xf32>
      %711 = vector.shape_cast %710 : vector<1x4x64xf32> to vector<4x64xf32>
      %cst_498 = arith.constant dense<0.000000e+00> : vector<7x64xf32>
      %712 = tpu.matmul %709, %711, %cst_498 {dimension_numbers = #tpu.dot_dimension_numbers<[1], [0], [0], [1], [0, 0, 1, 1], [], []>} : vector<7x4xf32>, vector<4x64xf32>, vector<7x64xf32> -> vector<7x64xf32>
      %713 = arith.addf %703, %712 : vector<7x64xf32>
      %c2_i32_499 = arith.constant 2 : i32
      %714 = arith.addi %arg2, %c2_i32_499 : i32
      %c2_i32_500 = arith.constant 2 : i32
      %715 = arith.addi %2, %c2_i32_500 : i32
      %716 = arith.index_cast %714 : i32 to index
      %717 = arith.index_cast %715 : i32 to index
      %c0_501 = arith.constant 0 : index
      %c0_502 = arith.constant 0 : index
      %718 = vector.load %arg4[%716, %717, %c0_501, %c0_502] : memref<4x9x9x4xf32, #tpu.memory_space<vmem>>, vector<1x1x7x4xf32>
      %719 = vector.shape_cast %718 : vector<1x1x7x4xf32> to vector<7x4xf32>
      %c71 = arith.constant 71 : index
      %c0_503 = arith.constant 0 : index
      %c0_504 = arith.constant 0 : index
      %720 = vector.load %arg7[%c71, %c0_503, %c0_504] : memref<75x4x64xf32, #tpu.memory_space<vmem>>, vector<1x4x64xf32>
      %721 = vector.shape_cast %720 : vector<1x4x64xf32> to vector<4x64xf32>
      %cst_505 = arith.constant dense<0.000000e+00> : vector<7x64xf32>
      %722 = tpu.matmul %719, %721, %cst_505 {dimension_numbers = #tpu.dot_dimension_numbers<[1], [0], [0], [1], [0, 0, 1, 1], [], []>} : vector<7x4xf32>, vector<4x64xf32>, vector<7x64xf32> -> vector<7x64xf32>
      %723 = arith.addf %713, %722 : vector<7x64xf32>
      %c2_i32_506 = arith.constant 2 : i32
      %724 = arith.addi %arg2, %c2_i32_506 : i32
      %c2_i32_507 = arith.constant 2 : i32
      %725 = arith.addi %2, %c2_i32_507 : i32
      %726 = arith.index_cast %724 : i32 to index
      %727 = arith.index_cast %725 : i32 to index
      %c1_508 = arith.constant 1 : index
      %c0_509 = arith.constant 0 : index
      %728 = vector.load %arg3[%726, %727, %c1_508, %c0_509] : memref<4x9x9x4xf32, #tpu.memory_space<vmem>>, vector<1x1x7x4xf32>
      %729 = vector.shape_cast %728 : vector<1x1x7x4xf32> to vector<7x4xf32>
      %c72 = arith.constant 72 : index
      %c0_510 = arith.constant 0 : index
      %c0_511 = arith.constant 0 : index
      %730 = vector.load %arg7[%c72, %c0_510, %c0_511] : memref<75x4x64xf32, #tpu.memory_space<vmem>>, vector<1x4x64xf32>
      %731 = vector.shape_cast %730 : vector<1x4x64xf32> to vector<4x64xf32>
      %cst_512 = arith.constant dense<0.000000e+00> : vector<7x64xf32>
      %732 = tpu.matmul %729, %731, %cst_512 {dimension_numbers = #tpu.dot_dimension_numbers<[1], [0], [0], [1], [0, 0, 1, 1], [], []>} : vector<7x4xf32>, vector<4x64xf32>, vector<7x64xf32> -> vector<7x64xf32>
      %733 = arith.addf %723, %732 : vector<7x64xf32>
      %c2_i32_513 = arith.constant 2 : i32
      %734 = arith.addi %arg2, %c2_i32_513 : i32
      %c2_i32_514 = arith.constant 2 : i32
      %735 = arith.addi %2, %c2_i32_514 : i32
      %736 = arith.index_cast %734 : i32 to index
      %737 = arith.index_cast %735 : i32 to index
      %c1_515 = arith.constant 1 : index
      %c0_516 = arith.constant 0 : index
      %738 = vector.load %arg4[%736, %737, %c1_515, %c0_516] : memref<4x9x9x4xf32, #tpu.memory_space<vmem>>, vector<1x1x7x4xf32>
      %739 = vector.shape_cast %738 : vector<1x1x7x4xf32> to vector<7x4xf32>
      %c73 = arith.constant 73 : index
      %c0_517 = arith.constant 0 : index
      %c0_518 = arith.constant 0 : index
      %740 = vector.load %arg7[%c73, %c0_517, %c0_518] : memref<75x4x64xf32, #tpu.memory_space<vmem>>, vector<1x4x64xf32>
      %741 = vector.shape_cast %740 : vector<1x4x64xf32> to vector<4x64xf32>
      %cst_519 = arith.constant dense<0.000000e+00> : vector<7x64xf32>
      %742 = tpu.matmul %739, %741, %cst_519 {dimension_numbers = #tpu.dot_dimension_numbers<[1], [0], [0], [1], [0, 0, 1, 1], [], []>} : vector<7x4xf32>, vector<4x64xf32>, vector<7x64xf32> -> vector<7x64xf32>
      %743 = arith.addf %733, %742 : vector<7x64xf32>
      %c2_i32_520 = arith.constant 2 : i32
      %744 = arith.addi %arg2, %c2_i32_520 : i32
      %c2_i32_521 = arith.constant 2 : i32
      %745 = arith.addi %2, %c2_i32_521 : i32
      %746 = arith.index_cast %744 : i32 to index
      %747 = arith.index_cast %745 : i32 to index
      %c2_522 = arith.constant 2 : index
      %c0_523 = arith.constant 0 : index
      %748 = vector.load %arg3[%746, %747, %c2_522, %c0_523] : memref<4x9x9x4xf32, #tpu.memory_space<vmem>>, vector<1x1x7x4xf32>
      %749 = vector.shape_cast %748 : vector<1x1x7x4xf32> to vector<7x4xf32>
      %c74 = arith.constant 74 : index
      %c0_524 = arith.constant 0 : index
      %c0_525 = arith.constant 0 : index
      %750 = vector.load %arg7[%c74, %c0_524, %c0_525] : memref<75x4x64xf32, #tpu.memory_space<vmem>>, vector<1x4x64xf32>
      %751 = vector.shape_cast %750 : vector<1x4x64xf32> to vector<4x64xf32>
      %cst_526 = arith.constant dense<0.000000e+00> : vector<7x64xf32>
      %752 = tpu.matmul %749, %751, %cst_526 {dimension_numbers = #tpu.dot_dimension_numbers<[1], [0], [0], [1], [0, 0, 1, 1], [], []>} : vector<7x4xf32>, vector<4x64xf32>, vector<7x64xf32> -> vector<7x64xf32>
      %753 = arith.addf %743, %752 : vector<7x64xf32>
      %c0_527 = arith.constant 0 : index
      %c0_528 = arith.constant 0 : index
      %754 = vector.load %arg8[%c0_527, %c0_528] : memref<1x64xf32, #tpu.memory_space<vmem>>, vector<1x64xf32>
      %755 = vector.broadcast %754 : vector<1x64xf32> to vector<7x64xf32>
      %756 = arith.addf %753, %755 : vector<7x64xf32>
      %cst_529 = arith.constant 0.000000e+00 : f32
      %757 = vector.broadcast %cst_529 : f32 to vector<7x64xf32>
      %758 = arith.cmpf oge, %756, %757 : vector<7x64xf32>
      %cst_530 = arith.constant 2.000000e-01 : f32
      %759 = vector.broadcast %cst_530 : f32 to vector<7x64xf32>
      %760 = arith.mulf %759, %756 : vector<7x64xf32>
      %761 = arith.select %758, %756, %760 : vector<7x64xi1>, vector<7x64xf32>
      %c0_531 = arith.constant 0 : index
      %762 = arith.index_cast %2 : i32 to index
      %c0_532 = arith.constant 0 : index
      %c0_533 = arith.constant 0 : index
      %763 = vector.load %arg9[%c0_531, %762, %c0_532, %c0_533] : memref<1x7x7x64xf32, #tpu.memory_space<vmem>>, vector<1x1x7x64xf32>
      %764 = vector.shape_cast %763 : vector<1x1x7x64xf32> to vector<7x64xf32>
      %765 = vector.shape_cast %761 : vector<7x64xf32> to vector<1x1x7x64xf32>
      tpu.vector_store %arg9[%c0_531, %762, %c0_532, %c0_533], %765 {strides = array<i32>} : memref<1x7x7x64xf32, #tpu.memory_space<vmem>>, vector<1x1x7x64xf32>,
    }
    %c7_i32_0 = arith.constant 7 : i32
    return
  }
  func.func @transform_0(%arg0: i32, %arg1: i32, %arg2: i32) -> (i32, i32, i32, i32) {
    %c0_i32 = arith.constant 0 : i32
    %c0_i32_0 = arith.constant 0 : i32
    %c0_i32_1 = arith.constant 0 : i32
    %c0_i32_2 = arith.constant 0 : i32
    return %arg0, %c0_i32, %c0_i32_0, %c0_i32_1 : i32, i32, i32, i32
  }
  func.func @transform_1(%arg0: i32, %arg1: i32, %arg2: i32) -> (i32, i32, i32, i32) {
    %c0_i32 = arith.constant 0 : i32
    %c0_i32_0 = arith.constant 0 : i32
    %c0_i32_1 = arith.constant 0 : i32
    %c0_i32_2 = arith.constant 0 : i32
    return %arg0, %c0_i32, %c0_i32_0, %c0_i32_1 : i32, i32, i32, i32
  }
  func.func @transform_2(%arg0: i32, %arg1: i32, %arg2: i32) -> (i32, i32, i32, i32) {
    %c0_i32 = arith.constant 0 : i32
    %c0_i32_0 = arith.constant 0 : i32
    %c0_i32_1 = arith.constant 0 : i32
    %c0_i32_2 = arith.constant 0 : i32
    return %arg0, %c0_i32, %c0_i32_0, %c0_i32_1 : i32, i32, i32, i32
  }
  func.func @transform_3(%arg0: i32, %arg1: i32, %arg2: i32) -> (i32, i32, i32, i32) {
    %c0_i32 = arith.constant 0 : i32
    %c0_i32_0 = arith.constant 0 : i32
    %c0_i32_1 = arith.constant 0 : i32
    %c0_i32_2 = arith.constant 0 : i32
    return %arg0, %c0_i32, %c0_i32_0, %c0_i32_1 : i32, i32, i32, i32
  }
  func.func @transform_4(%arg0: i32, %arg1: i32, %arg2: i32) -> (i32, i32, i32) {
    %c0_i32 = arith.constant 0 : i32
    %c0_i32_0 = arith.constant 0 : i32
    %c0_i32_1 = arith.constant 0 : i32
    return %c0_i32, %c0_i32_0, %arg1 : i32, i32, i32
  }
  func.func @transform_5(%arg0: i32, %arg1: i32, %arg2: i32) -> (i32, i32) {
    %c0_i32 = arith.constant 0 : i32
    %c0_i32_0 = arith.constant 0 : i32
    return %c0_i32, %arg1 : i32, i32
  }
  func.func @transform_6(%arg0: i32, %arg1: i32, %arg2: i32) -> (i32, i32, i32, i32) {
    %c2_i32 = arith.constant 2 : i32
    %0 = arith.muli %arg0, %c2_i32 : i32
    %1 = arith.addi %0, %arg2 : i32
    %c0_i32 = arith.constant 0 : i32
    %c0_i32_0 = arith.constant 0 : i32
    %c0_i32_1 = arith.constant 0 : i32
    return %1, %c0_i32, %c0_i32_0, %arg1 : i32, i32, i32, i32
  }
}

</mosaic_0001>

<bundles_post_ra>
// kernel: tpu_custom_call.1
= control target key start
LH: loop header
LB: loop body
LE: loop exit
PB: predicated region body
PF: predicated region fallthrough
CT: control target
= control target key end

     0   :  { %s7776_s21 = smov 0   ;;  %s7778_s22 = smov 0   ;;  %s8571_s0 = inlined_call_operand.vmem [shape: f32[8,9,9,4], index: 0, kind: input, shape index: {}]   ;;  %s8572_s1 = inlined_call_operand.vmem [shape: f32[8,9,9,4], index: 1, kind: input, shape index: {}]   ;;  %s8573_s2 = inlined_call_operand.vmem [shape: f32[8,9,9,4], index: 2, kind: input, shape index: {}]   ;;  %s8574_s3 = inlined_call_operand.vmem [shape: f32[8,9,9,4], index: 3, kind: input, shape index: {}]   ;;  %s8575_s4 = inlined_call_operand.vmem [shape: f32[75,4,64], index: 4, kind: input, shape index: {}]   ;;  %s8576_s5 = inlined_call_operand.vmem [shape: f32[1,64], index: 5, kind: input, shape index: {}]   ;;  %s8577_s6 = inlined_call_operand.vmem [shape: f32[4,7,7,64], index: 6, kind: output, shape index: {}]  }
   0x1   :  { %s7780_s23 = smov 0   ;;  %s7782_s24 = smov 0  }
   0x2   :  { %s7784_s25 = smov 0  }
   0x3 LB: > { %s28_s26 = sadd.s32 1, %s7725_s23  ;;  %s35_s27 = sadd.s32 1, %s7729_s24  ;;  %s7733_s25 = sphi %s7784_s25, %s16_s25   ;;  %s7729_s24 = sphi %s7782_s24, %s8581_s24   ;;  %s7725_s23 = sphi %s7780_s23, %s8580_s23   ;;  %s7721_s22 = sphi %s7778_s22, %s8579_s22   ;;  %s7717_s21 = sphi %s7776_s21, %s8578_s21  }
   0x4   : > { %p29_p0 = scmp.ge.s32.totalorder %s28_s26, 2  ;;  %p6783_p1 = scmp.ge.s32.totalorder %s7733_s25, 1 }
   0x5   : > { %p292_p2 = scmp.lt.s32.totalorder %s7733_s25, 5 }
   0x6   : > { %s8583_s26 = smov (%p29_p0, %s28_s26), 0  ;;  %s8585_s27 = smov (!%p29_p0, %s35_s27), %s7729_s24 }
   0x7   : > { %p293_p3 = pnand %p6783_p1, %p292_p2  ;;  %p37_p4 = scmp.ge.s32.totalorder %s8585_s27, 2 }
   0x8   : > { %s6784_s28 = sshll.u32 (!%p293_p3), %s7721_s22, 2  ;;  %s6792_s29 = sshll.u32 (!%p293_p3), %s7721_s22, 1 }
   0x9   : > { %s8587_s27 = smov (%p37_p4, %s8585_s27), 0  ;;  %296 = sbr.rel (%p293_p3) target bundleno = 395 (0x18b), region = 44 }
   0xa   : > { %p354_p5 = scmp.lt.s32.totalorder (!%p293_p3), %s6784_s28, 7  ;;  %s389_s30 = sadd.s32 (!%p293_p3), %s7717_s21, %s6792_s29 }
   0xb   : > { %p390_p6 = scmp.lt.s32.totalorder (!%p293_p3), %s389_s30, 3 }
  0x10   : > { %s8589_s28 = smov (!%p354_p5, %s6784_s28), 7  ;;  %s8591_s30 = smov (!%p390_p6, %s389_s30), 3 }
  0x11   : > { %s7809_s7 = smul.u32 144, %s8589_s28 }
  0x12   : > { %s7640_s8 = smul.u32 56, %s8591_s30  ;;  %s7832_s30 = smov 0  }
  0x13   : > { %s358_s11 = scalar_lea.vmem %s8571_s0, %s7809_s7  ;;  %s365_s14 = scalar_lea.vmem %s8572_s1, %s7809_s7 }
  0x14   : > { %s372_s17 = scalar_lea.vmem %s8573_s2, %s7809_s7  ;;  %s379_s20 = scalar_lea.vmem %s8574_s3, %s7809_s7 }
  0x15   : > { %s7830_s29 = scalar_lea.vmem %s8577_s6, %s7640_s8 }
  0x16 LB: >> { %v6795_v0 = vld [vmem:[%s8575_s4 + $0x4] sm:$0xf]  ;;  %vm420_vm0 = vcmask 1043456   ;;  %s407_s12 = smul.u32 144, %s7717_s21  ;;  %v7739_v1 = vmov 0.0   ;;  %vm7740_vm1 = vmmov 0   ;;  %s7737_s30 = sphi %s7832_s30, %s405_s30  }
  0x17   : >> { %7264 = vmatprep.subr.mxu0 %v7739_v1  ;;  %7269 = vmatprep.subr.mxu1 %v7739_v1  ;;  %v411_v2 = vld [vmem:[%s8575_s4] sm:$0xf]  ;;  %s6794_s15 = sshll.u32 %s7737_s30, 4  ;;  %vm416_vm2 = vcmask 31744   ;;  %v6800_v3 = vld [vmem:[%s8575_s4 + $0x8] sm:$0xf] }
  0x18   : >> { %7265 = vmatpush3.msk.msra.mxu0 %vm420_vm0, %v6795_v0  ;;  %7266 = vmatprep.mubr.msk.f32.mxu0 %vm7740_vm1, %v7739_v1  ;;  %s7853_s16 = sadd.s32 %s6794_s15, %s407_s12  ;;  %v6803_v4 = vld [vmem:[%s8575_s4 + $0xc] sm:$0xf]  ;;  %v6806_v9 = vld [vmem:[%s8575_s4 + $0x10] sm:$0xf]  ;;  %v6809_v10 = vld [vmem:[%s8575_s4 + $0x14] sm:$0xf] }
  0x19   : >> { %7270 = vmatpush3.msk.msra.mxu1 %vm420_vm0, %v411_v2  ;;  %7271 = vmatprep.mubr.msk.f32.mxu1 %vm7740_vm1, %v7739_v1  ;;  %s7862_s22 = scalar_lea.vmem %s358_s11, %s7853_s16  ;;  %s7870_s10 = scalar_lea.vmem %s365_s14, %s7853_s16  ;;  %v6812_v13 = vld [vmem:[%s8575_s4 + $0x18] sm:$0xf]  ;;  %v6815_v14 = vld [vmem:[%s8575_s4 + $0x1c] sm:$0xf]  ;;  %v6818_v17 = vld [vmem:[%s8575_s4 + $0x20] sm:$0xf] }
  0x1a   : >> { %7274 = vmatprep.subr.mxu0 %v7739_v1  ;;  %7279 = vmatprep.subr.mxu1 %v7739_v1  ;;  %v413_v5 = vld [vmem:[%s7870_s10] sm:$0x7f]  ;;  %s7902_s13 = scalar_lea.vmem %s372_s17, %s7853_s16  ;;  %s7928_s8 = scalar_lea.vmem %s379_s20, %s7853_s16  ;;  %v6826_v21 = vld [vmem:[%s8575_s4 + $0x28] sm:$0xf]  ;;  %v6831_v22 = vld [vmem:[%s8575_s4 + $0x2c] sm:$0xf] }
  0x1b   : >> { %v410_v6 = vld [vmem:[%s7862_s22] sm:$0x7f]  ;;  %7267 = vmatmul.mubr.msk.f32.vlgmr.msra.gmra.mrb[0].mxu0 %vm416_vm2, %v413_v5  ;;  %v6825_v23 = vld [vmem:[%s7862_s22 + $0x10] sm:$0x7f]  ;;  %v6843_v29 = vld [vmem:[%s8575_s4 + $0x38] sm:$0xf] }
  0x1c   : >> { %7272 = vmatmul.mubr.msk.f32.vlgmr.msra.gmra.mrb[0].mxu1 %vm416_vm2, %v410_v6  ;;  %7275 = vmatpush3.msk.msra.mxu0 %vm420_vm0, %v6800_v3  ;;  %v570_v7 = vld [vmem:[%s7862_s22 + $0x1] sm:$0x7f]  ;;  %v6830_v24 = vld [vmem:[%s7870_s10 + $0x10] sm:$0x7f]  ;;  %v6848_v30 = vld [vmem:[%s8575_s4 + $0x3c] sm:$0xf] }
  0x1d   : >> { %7280 = vmatpush3.msk.msra.mxu1 %vm420_vm0, %v6803_v4  ;;  %v650_v8 = vld [vmem:[%s7870_s10 + $0x1] sm:$0x7f]  ;;  %7276 = vmatprep.mubr.msk.f32.mxu0 %vm7740_vm1, %v7739_v1  ;;  %v6835_v25 = vld [vmem:[%s8575_s4 + $0x30] sm:$0xf]  ;;  %v6839_v26 = vld [vmem:[%s8575_s4 + $0x34] sm:$0xf] }
  0x1e   : >> { %7284 = vmatprep.subr.mxu0 %v7739_v1  ;;  %7281 = vmatprep.mubr.msk.f32.mxu1 %vm7740_vm1, %v7739_v1  ;;  %v730_v11 = vld [vmem:[%s7862_s22 + $0x2] sm:$0x7f]  ;;  %v6834_v27 = vld [vmem:[%s7862_s22 + $0x11] sm:$0x7f]  ;;  %v6865_v38 = vld [vmem:[%s8575_s4 + $0x4c] sm:$0xf] }
  0x1f   : >> { %7289 = vmatprep.subr.mxu1 %v7739_v1  ;;  %7277 = vmatmul.mubr.msk.f32.vlgmr.msra.gmra.mrb[2].mxu0 %vm416_vm2, %v570_v7  ;;  %v811_v12 = vld [vmem:[%s7902_s13] sm:$0x7f]  ;;  %v6838_v28 = vld [vmem:[%s7870_s10 + $0x11] sm:$0x7f]  ;;  %v6861_v37 = vld [vmem:[%s8575_s4 + $0x48] sm:$0xf] }
  0x20   : >> { %7282 = vmatmul.mubr.msk.f32.vlgmr.msra.gmra.mrb[2].mxu1 %vm416_vm2, %v650_v8  ;;  %7285 = vmatpush3.msk.msra.mxu0 %vm420_vm0, %v6806_v9  ;;  %v892_v15 = vld [vmem:[%s7928_s8] sm:$0x7f]  ;;  %v6842_v31 = vld [vmem:[%s7862_s22 + $0x12] sm:$0x7f]  ;;  %v6883_v46 = vld [vmem:[%s8575_s4 + $0x5c] sm:$0xf] }
  0x21   : >> { %7290 = vmatpush3.msk.msra.mxu1 %vm420_vm0, %v6809_v10  ;;  %7286 = vmatprep.mubr.msk.f32.mxu0 %vm7740_vm1, %v7739_v1  ;;  %v972_v16 = vld [vmem:[%s7902_s13 + $0x1] sm:$0x7f]  ;;  %v6847_v32 = vld [vmem:[%s7902_s13 + $0x10] sm:$0x7f]  ;;  %v6879_v45 = vld [vmem:[%s8575_s4 + $0x58] sm:$0xf] }
  0x22   : >> { %7294 = vmatprep.subr.mxu0 %v7739_v1  ;;  %7291 = vmatprep.mubr.msk.f32.mxu1 %vm7740_vm1, %v7739_v1  ;;  %v6821_v18 = vld [vmem:[%s8575_s4 + $0x24] sm:$0xf]  ;;  %v6853_v33 = vld [vmem:[%s8575_s4 + $0x40] sm:$0xf]  ;;  %v6852_v35 = vld [vmem:[%s7928_s8 + $0x10] sm:$0x7f] }
  0x23   : >> { %7299 = vmatprep.subr.mxu1 %v7739_v1  ;;  %7287 = vmatmul.mubr.msk.f32.vlgmr.msra.gmra.mrb[4].mxu0 %vm416_vm2, %v730_v11  ;;  %v1052_v19 = vld [vmem:[%s7928_s8 + $0x1] sm:$0x7f]  ;;  %v6856_v36 = vld [vmem:[%s7902_s13 + $0x11] sm:$0x7f]  ;;  %v6897_v53 = vld [vmem:[%s8575_s4 + $0x68] sm:$0xf] }
  0x24   : >> { %7292 = vmatmul.mubr.msk.f32.vlgmr.msra.gmra.mrb[4].mxu1 %vm416_vm2, %v811_v12  ;;  %7295 = vmatpush3.msk.msra.mxu0 %vm420_vm0, %v6812_v13  ;;  %v1132_v20 = vld [vmem:[%s7902_s13 + $0x2] sm:$0x7f]  ;;  %v6860_v39 = vld [vmem:[%s7928_s8 + $0x11] sm:$0x7f]  ;;  %v6901_v54 = vld [vmem:[%s8575_s4 + $0x6c] sm:$0xf] }
  0x25   : >> { %7300 = vmatpush3.msk.msra.mxu1 %vm420_vm0, %v6815_v14  ;;  %7296 = vmatprep.mubr.msk.f32.mxu0 %vm7740_vm1, %v7739_v1  ;;  %v6857_v34 = vld [vmem:[%s8575_s4 + $0x44] sm:$0xf]  ;;  %v6864_v40 = vld [vmem:[%s7902_s13 + $0x12] sm:$0x7f]  ;;  %v6887_v49 = vld [vmem:[%s8575_s4 + $0x60] sm:$0xf] }
  0x26   : >> { %7304 = vmatprep.subr.mxu0 %v7739_v1  ;;  %7301 = vmatprep.mubr.msk.f32.mxu1 %vm7740_vm1, %v7739_v1  ;;  %v6870_v41 = vld [vmem:[%s8575_s4 + $0x50] sm:$0xf]  ;;  %v6875_v42 = vld [vmem:[%s8575_s4 + $0x54] sm:$0xf]  ;;  %v6869_v43 = vld [vmem:[%s7862_s22 + $0x20] sm:$0x7f] }
  0x27   : >> { %7309 = vmatprep.subr.mxu1 %v7739_v1  ;;  %7297 = vmatmul.mubr.msk.f32.vlgmr.msra.gmra.mrb[6].mxu0 %vm416_vm2, %v892_v15  ;;  %v6874_v44 = vld [vmem:[%s7870_s10 + $0x20] sm:$0x7f]  ;;  %v6891_v52 = vld [vmem:[%s7862_s22 + $0x90] sm:$0x7f]  ;;  %v6914_v61 = vld [vmem:[%s8575_s4 + $0x78] sm:$0xf] }
  0x28   : >> { %7302 = vmatmul.mubr.msk.f32.vlgmr.msra.gmra.mrb[6].mxu1 %vm416_vm2, %v972_v16  ;;  %7305 = vmatpush3.msk.msra.mxu0 %vm420_vm0, %v6818_v17  ;;  %v6878_v47 = vld [vmem:[%s7862_s22 + $0x21] sm:$0x7f]  ;;  %v6896_v55 = vld [vmem:[%s7870_s10 + $0x90] sm:$0x7f]  ;;  %v6919_v62 = vld [vmem:[%s8575_s4 + $0x7c] sm:$0xf] }
  0x29   : >> { %7310 = vmatpush3.msk.msra.mxu1 %vm420_vm0, %v6821_v18  ;;  %7306 = vmatprep.mubr.msk.f32.mxu0 %vm7740_vm1, %v7739_v1  ;;  %v6882_v48 = vld [vmem:[%s7870_s10 + $0x21] sm:$0x7f]  ;;  %v6900_v56 = vld [vmem:[%s7862_s22 + $0x91] sm:$0x7f]  ;;  %v6931_v6 = vld [vmem:[%s8575_s4 + $0x88] sm:$0xf] }
  0x2a   : >> { %7314 = vmatprep.subr.mxu0 %v7739_v1  ;;  %7311 = vmatprep.mubr.msk.f32.mxu1 %vm7740_vm1, %v7739_v1  ;;  %v6892_v50 = vld [vmem:[%s8575_s4 + $0x64] sm:$0xf]  ;;  %v6905_v57 = vld [vmem:[%s8575_s4 + $0x70] sm:$0xf]  ;;  %v6909_v58 = vld [vmem:[%s8575_s4 + $0x74] sm:$0xf] }
  0x2b   : >> { %7319 = vmatprep.subr.mxu1 %v7739_v1  ;;  %7307 = vmatmul.mubr.msk.f32.vlgmr.msra.gmra.mrb[8].mxu0 %vm416_vm2, %v1052_v19  ;;  %v6886_v51 = vld [vmem:[%s7862_s22 + $0x22] sm:$0x7f]  ;;  %v6904_v59 = vld [vmem:[%s7870_s10 + $0x91] sm:$0x7f]  ;;  %v6936_v7 = vld [vmem:[%s8575_s4 + $0x8c] sm:$0xf] }
  0x2c   : >> { %7312 = vmatmul.mubr.msk.f32.vlgmr.msra.gmra.mrb[8].mxu1 %vm416_vm2, %v1132_v20  ;;  %7315 = vmatpush3.msk.msra.mxu0 %vm420_vm0, %v6826_v21  ;;  %v6908_v60 = vld [vmem:[%s7862_s22 + $0x92] sm:$0x7f]  ;;  %v6923_v2 = vld [vmem:[%s8575_s4 + $0x80] sm:$0xf]  ;;  %v6927_v3 = vld [vmem:[%s8575_s4 + $0x84] sm:$0xf] }
  0x2d   : >> { %7320 = vmatpush3.msk.msra.mxu1 %vm420_vm0, %v6831_v22  ;;  %7316 = vmatprep.mubr.msk.f32.mxu0 %vm7740_vm1, %v7739_v1  ;;  %v6913_v63 = vld [vmem:[%s7902_s13 + $0x90] sm:$0x7f]  ;;  %v6935_v9 = vld [vmem:[%s7862_s22 + $0xa0] sm:$0x7f]  ;;  %v6949_v14 = vld [vmem:[%s8575_s4 + $0x98] sm:$0xf] }
  0x2e   : >> { %7324 = vmatprep.subr.mxu0 %v7739_v1  ;;  %7321 = vmatprep.mubr.msk.f32.mxu1 %vm7740_vm1, %v7739_v1  ;;  %v6918_v0 = vld [vmem:[%s7928_s8 + $0x90] sm:$0x7f]  ;;  %v6940_v12 = vld [vmem:[%s7870_s10 + $0xa0] sm:$0x7f]  ;;  %v6953_v15 = vld [vmem:[%s8575_s4 + $0x9c] sm:$0xf] }
  0x2f   : >> { %7329 = vmatprep.subr.mxu1 %v7739_v1  ;;  %7317 = vmatmul.mubr.msk.f32.vlgmr.msra.gmra.mrb[10].mxu0 %vm416_vm2, %v6825_v23  ;;  %v6922_v4 = vld [vmem:[%s7902_s13 + $0x91] sm:$0x7f]  ;;  %v6944_v13 = vld [vmem:[%s7862_s22 + $0xa1] sm:$0x7f]  ;;  %v6967_v22 = vld [vmem:[%s8575_s4 + $0xa8] sm:$0xf] }
  0x30   : >> { %7322 = vmatmul.mubr.msk.f32.vlgmr.msra.gmra.mrb[10].mxu1 %vm416_vm2, %v6830_v24  ;;  %7325 = vmatpush3.msk.msra.mxu0 %vm420_vm0, %v6835_v25  ;;  %v6926_v5 = vld [vmem:[%s7928_s8 + $0x91] sm:$0x7f]  ;;  %v6948_v16 = vld [vmem:[%s7870_s10 + $0xa1] sm:$0x7f]  ;;  %v6971_v23 = vld [vmem:[%s8575_s4 + $0xac] sm:$0xf] }
  0x31   : >> { %7330 = vmatpush3.msk.msra.mxu1 %vm420_vm0, %v6839_v26  ;;  %7326 = vmatprep.mubr.msk.f32.mxu0 %vm7740_vm1, %v7739_v1  ;;  %v6930_v8 = vld [vmem:[%s7902_s13 + $0x92] sm:$0x7f]  ;;  %v6952_v17 = vld [vmem:[%s7862_s22 + $0xa2] sm:$0x7f]  ;;  %s7111_s12 = sshll.u32 %s7737_s30, 3  ;;  %vm6467_vm4 = vcmask 522240  }
  0x32   : >> { %7334 = vmatprep.subr.mxu0 %v7739_v1  ;;  %7331 = vmatprep.mubr.msk.f32.mxu1 %vm7740_vm1, %v7739_v1  ;;  %v6941_v10 = vld [vmem:[%s8575_s4 + $0x90] sm:$0xf]  ;;  %v6945_v11 = vld [vmem:[%s8575_s4 + $0x94] sm:$0xf]  ;;  %v6958_v18 = vld [vmem:[%s8575_s4 + $0xa0] sm:$0xf]  ;;  %s6466_s16 = scalar_lea.vmem %s7830_s29, %s7111_s12 }
  0x33   : >> { %7339 = vmatprep.subr.mxu1 %v7739_v1  ;;  %7327 = vmatmul.mubr.msk.f32.vlgmr.msra.gmra.mrb[12].mxu0 %vm416_vm2, %v6834_v27  ;;  %v6963_v19 = vld [vmem:[%s8575_s4 + $0xa4] sm:$0xf]  ;;  %v6975_v26 = vld [vmem:[%s8575_s4 + $0xb0] sm:$0xf]  ;;  %v6980_v27 = vld [vmem:[%s8575_s4 + $0xb4] sm:$0xf] }
  0x34   : >> { %7332 = vmatmul.mubr.msk.f32.vlgmr.msra.gmra.mrb[12].mxu1 %vm416_vm2, %v6838_v28  ;;  %7335 = vmatpush3.msk.msra.mxu0 %vm420_vm0, %v6843_v29  ;;  %v6957_v20 = vld [vmem:[%s7902_s13 + $0xa0] sm:$0x7f]  ;;  %v6979_v29 = vld [vmem:[%s7862_s22 + $0xb0] sm:$0x7f]  ;;  %s405_s30 = sadd.s32 1, %s7737_s30  }
  0x35   : >> { %7340 = vmatpush3.msk.msra.mxu1 %vm420_vm0, %v6848_v30  ;;  %7336 = vmatprep.mubr.msk.f32.mxu0 %vm7740_vm1, %v7739_v1  ;;  %v6962_v21 = vld [vmem:[%s7928_s8 + $0xa0] sm:$0x7f]  ;;  %v6985_v30 = vld [vmem:[%s8575_s4 + $0xb8] sm:$0xf]  ;;  %p402_p7 = scmp.ge.s32.totalorder %s405_s30, 7  }
  0x36   : >> { %7344 = vmatprep.subr.mxu0 %v7739_v1  ;;  %7341 = vmatprep.mubr.msk.f32.mxu1 %vm7740_vm1, %v7739_v1  ;;  %v6966_v24 = vld [vmem:[%s7902_s13 + $0xa1] sm:$0x7f] }
  0x37   : >> { %7349 = vmatprep.subr.mxu1 %v7739_v1  ;;  %7337 = vmatmul.mubr.msk.f32.vlgmr.msra.gmra.mrb[14].mxu0 %vm416_vm2, %v6842_v31  ;;  %v6970_v25 = vld [vmem:[%s7928_s8 + $0xa1] sm:$0x7f]  ;;  %v6989_v31 = vld [vmem:[%s8575_s4 + $0xbc] sm:$0xf] }
  0x38   : >> { %7342 = vmatmul.mubr.msk.f32.vlgmr.msra.gmra.mrb[14].mxu1 %vm416_vm2, %v6847_v32  ;;  %7345 = vmatpush3.msk.msra.mxu0 %vm420_vm0, %v6853_v33  ;;  %v6974_v28 = vld [vmem:[%s7902_s13 + $0xa2] sm:$0x7f]  ;;  %v6984_v32 = vld [vmem:[%s7870_s10 + $0xb0] sm:$0x7f] }
  0x39   : >> { %7350 = vmatpush3.msk.msra.mxu1 %vm420_vm0, %v6857_v34  ;;  %7346 = vmatprep.mubr.msk.f32.mxu0 %vm7740_vm1, %v7739_v1  ;;  %v6988_v33 = vld [vmem:[%s7862_s22 + $0xb1] sm:$0x7f]  ;;  %v6993_v34 = vld [vmem:[%s8575_s4 + $0xc0] sm:$0xf] }
  0x3a   : >> { %7354 = vmatprep.subr.mxu0 %v7739_v1  ;;  %7351 = vmatprep.mubr.msk.f32.mxu1 %vm7740_vm1, %v7739_v1 }
  0x3b   : >> { %7359 = vmatprep.subr.mxu1 %v7739_v1  ;;  %7347 = vmatmul.mubr.msk.f32.vlgmr.msra.gmra.mrb[16].mxu0 %vm416_vm2, %v6852_v35  ;;  %v6997_v35 = vld [vmem:[%s8575_s4 + $0xc4] sm:$0xf] }
  0x3c   : >> { %7352 = vmatmul.mubr.msk.f32.vlgmr.msra.gmra.mrb[16].mxu1 %vm416_vm2, %v6856_v36  ;;  %7355 = vmatpush3.msk.msra.mxu0 %vm420_vm0, %v6861_v37  ;;  %v6992_v36 = vld [vmem:[%s7870_s10 + $0xb1] sm:$0x7f] }
  0x3d   : >> { %7360 = vmatpush3.msk.msra.mxu1 %vm420_vm0, %v6865_v38  ;;  %7356 = vmatprep.mubr.msk.f32.mxu0 %vm7740_vm1, %v7739_v1  ;;  %v6996_v37 = vld [vmem:[%s7862_s22 + $0xb2] sm:$0x7f]  ;;  %v7002_v38 = vld [vmem:[%s8575_s4 + $0xc8] sm:$0xf] }
  0x3e   : >> { %7364 = vmatprep.subr.mxu0 %v7739_v1  ;;  %7361 = vmatprep.mubr.msk.f32.mxu1 %vm7740_vm1, %v7739_v1 }
  0x3f   : >> { %7369 = vmatprep.subr.mxu1 %v7739_v1  ;;  %7357 = vmatmul.mubr.msk.f32.vlgmr.msra.gmra.mrb[18].mxu0 %vm416_vm2, %v6860_v39  ;;  %v7007_v39 = vld [vmem:[%s8575_s4 + $0xcc] sm:$0xf] }
  0x40   : >> { %7362 = vmatmul.mubr.msk.f32.vlgmr.msra.gmra.mrb[18].mxu1 %vm416_vm2, %v6864_v40  ;;  %7365 = vmatpush3.msk.msra.mxu0 %vm420_vm0, %v6870_v41  ;;  %v7001_v40 = vld [vmem:[%s7862_s22 + $0x120] sm:$0x7f] }
  0x41   : >> { %7370 = vmatpush3.msk.msra.mxu1 %vm420_vm0, %v6875_v42  ;;  %7366 = vmatprep.mubr.msk.f32.mxu0 %vm7740_vm1, %v7739_v1  ;;  %v7006_v41 = vld [vmem:[%s7870_s10 + $0x120] sm:$0x7f]  ;;  %v7011_v42 = vld [vmem:[%s8575_s4 + $0xd0] sm:$0xf] }
  0x42   : >> { %7374 = vmatprep.subr.mxu0 %v7739_v1  ;;  %7371 = vmatprep.mubr.msk.f32.mxu1 %vm7740_vm1, %v7739_v1 }
  0x43   : >> { %7379 = vmatprep.subr.mxu1 %v7739_v1  ;;  %7367 = vmatmul.mubr.msk.f32.vlgmr.msra.gmra.mrb[20].mxu0 %vm416_vm2, %v6869_v43  ;;  %v7015_v43 = vld [vmem:[%s8575_s4 + $0xd4] sm:$0xf] }
  0x44   : >> { %7372 = vmatmul.mubr.msk.f32.vlgmr.msra.gmra.mrb[20].mxu1 %vm416_vm2, %v6874_v44  ;;  %7375 = vmatpush3.msk.msra.mxu0 %vm420_vm0, %v6879_v45  ;;  %v7010_v44 = vld [vmem:[%s7862_s22 + $0x121] sm:$0x7f] }
  0x45   : >> { %7380 = vmatpush3.msk.msra.mxu1 %vm420_vm0, %v6883_v46  ;;  %7376 = vmatprep.mubr.msk.f32.mxu0 %vm7740_vm1, %v7739_v1  ;;  %v7014_v45 = vld [vmem:[%s7870_s10 + $0x121] sm:$0x7f]  ;;  %v7019_v46 = vld [vmem:[%s8575_s4 + $0xd8] sm:$0xf] }
  0x46   : >> { %7384 = vmatprep.subr.mxu0 %v7739_v1  ;;  %7381 = vmatprep.mubr.msk.f32.mxu1 %vm7740_vm1, %v7739_v1 }
  0x47   : >> { %7389 = vmatprep.subr.mxu1 %v7739_v1  ;;  %7377 = vmatmul.mubr.msk.f32.vlgmr.msra.gmra.mrb[22].mxu0 %vm416_vm2, %v6878_v47  ;;  %v7024_v47 = vld [vmem:[%s8575_s4 + $0xdc] sm:$0xf] }
  0x48   : >> { %7382 = vmatmul.mubr.msk.f32.vlgmr.msra.gmra.mrb[22].mxu1 %vm416_vm2, %v6882_v48  ;;  %7385 = vmatpush3.msk.msra.mxu0 %vm420_vm0, %v6887_v49  ;;  %v7018_v48 = vld [vmem:[%s7862_s22 + $0x122] sm:$0x7f] }
  0x49   : >> { %7390 = vmatpush3.msk.msra.mxu1 %vm420_vm0, %v6892_v50  ;;  %7386 = vmatprep.mubr.msk.f32.mxu0 %vm7740_vm1, %v7739_v1  ;;  %v7023_v49 = vld [vmem:[%s7902_s13 + $0x120] sm:$0x7f] }
  0x4a   : >> { %7394 = vmatprep.subr.mxu0 %v7739_v1  ;;  %7391 = vmatprep.mubr.msk.f32.mxu1 %vm7740_vm1, %v7739_v1  ;;  %v7029_v50 = vld [vmem:[%s8575_s4 + $0xe0] sm:$0xf] }
  0x4b   : >> { %7399 = vmatprep.subr.mxu1 %v7739_v1  ;;  %7387 = vmatmul.mubr.msk.f32.vlgmr.msra.gmra.mrb[24].mxu0 %vm416_vm2, %v6886_v51  ;;  %v7033_v51 = vld [vmem:[%s8575_s4 + $0xe4] sm:$0xf] }
  0x4c   : >> { %7392 = vmatmul.mubr.msk.f32.vlgmr.msra.gmra.mrb[24].mxu1 %vm416_vm2, %v6891_v52  ;;  %7395 = vmatpush3.msk.msra.mxu0 %vm420_vm0, %v6897_v53  ;;  %v7028_v52 = vld [vmem:[%s7928_s8 + $0x120] sm:$0x7f] }
  0x4d   : >> { %7400 = vmatpush3.msk.msra.mxu1 %vm420_vm0, %v6901_v54  ;;  %7396 = vmatprep.mubr.msk.f32.mxu0 %vm7740_vm1, %v7739_v1  ;;  %v7032_v53 = vld [vmem:[%s7902_s13 + $0x121] sm:$0x7f]  ;;  %v7037_v54 = vld [vmem:[%s8575_s4 + $0xe8] sm:$0xf] }
  0x4e   : >> { %7404 = vmatprep.subr.mxu0 %v7739_v1  ;;  %7401 = vmatprep.mubr.msk.f32.mxu1 %vm7740_vm1, %v7739_v1 }
  0x4f   : >> { %7409 = vmatprep.subr.mxu1 %v7739_v1  ;;  %7397 = vmatmul.mubr.msk.f32.vlgmr.msra.gmra.mrb[26].mxu0 %vm416_vm2, %v6896_v55  ;;  %v7041_v55 = vld [vmem:[%s8575_s4 + $0xec] sm:$0xf] }
  0x50   : >> { %7402 = vmatmul.mubr.msk.f32.vlgmr.msra.gmra.mrb[26].mxu1 %vm416_vm2, %v6900_v56  ;;  %7405 = vmatpush3.msk.msra.mxu0 %vm420_vm0, %v6905_v57  ;;  %v7036_v56 = vld [vmem:[%s7928_s8 + $0x121] sm:$0x7f] }
  0x51   : >> { %7410 = vmatpush3.msk.msra.mxu1 %vm420_vm0, %v6909_v58  ;;  %7406 = vmatprep.mubr.msk.f32.mxu0 %vm7740_vm1, %v7739_v1  ;;  %v7040_v57 = vld [vmem:[%s7902_s13 + $0x122] sm:$0x7f]  ;;  %v7046_v58 = vld [vmem:[%s8575_s4 + $0xf0] sm:$0xf] }
  0x52   : >> { %7414 = vmatprep.subr.mxu0 %v7739_v1  ;;  %7411 = vmatprep.mubr.msk.f32.mxu1 %vm7740_vm1, %v7739_v1 }
  0x53   : >> { %7419 = vmatprep.subr.mxu1 %v7739_v1  ;;  %7407 = vmatmul.mubr.msk.f32.vlgmr.msra.gmra.mrb[28].mxu0 %vm416_vm2, %v6904_v59  ;;  %v7051_v59 = vld [vmem:[%s8575_s4 + $0xf4] sm:$0xf] }
  0x54   : >> { %7412 = vmatmul.mubr.msk.f32.vlgmr.msra.gmra.mrb[28].mxu1 %vm416_vm2, %v6908_v60  ;;  %7415 = vmatpush3.msk.msra.mxu0 %vm420_vm0, %v6914_v61  ;;  %v7045_v60 = vld [vmem:[%s7862_s22 + $0x130] sm:$0x7f] }
  0x55   : >> { %7420 = vmatpush3.msk.msra.mxu1 %vm420_vm0, %v6919_v62  ;;  %7416 = vmatprep.mubr.msk.f32.mxu0 %vm7740_vm1, %v7739_v1  ;;  %v7050_v61 = vld [vmem:[%s7870_s10 + $0x130] sm:$0x7f]  ;;  %v7055_v62 = vld [vmem:[%s8575_s4 + $0xf8] sm:$0xf] }
  0x56   : >> { %7424 = vmatprep.subr.mxu0 %v7739_v1  ;;  %7421 = vmatprep.mubr.msk.f32.mxu1 %vm7740_vm1, %v7739_v1 }
  0x57   : >> { %7429 = vmatprep.subr.mxu1 %v7739_v1  ;;  %7417 = vmatmul.mubr.msk.f32.vlgmr.msra.gmra.mrb[30].mxu0 %vm416_vm2, %v6913_v63  ;;  %v7059_v63 = vld [vmem:[%s8575_s4 + $0xfc] sm:$0xf] }
  0x58   : >> { %7422 = vmatmul.mubr.msk.f32.vlgmr.msra.gmra.mrb[30].mxu1 %vm416_vm2, %v6918_v0  ;;  %7425 = vmatpush3.msk.msra.mxu0 %vm420_vm0, %v6923_v2  ;;  %v7054_v0 = vld [vmem:[%s7862_s22 + $0x131] sm:$0x7f] }
  0x59   : >> { %7430 = vmatpush3.msk.msra.mxu1 %vm420_vm0, %v6927_v3  ;;  %7426 = vmatprep.mubr.msk.f32.mxu0 %vm7740_vm1, %v7739_v1  ;;  %v7058_v2 = vld [vmem:[%s7870_s10 + $0x131] sm:$0x7f]  ;;  %v7063_v3 = vld [vmem:[%s8575_s4 + $0x100] sm:$0xf] }
  0x5a   : >> { %7434 = vmatprep.subr.mxu0 %v7739_v1  ;;  %7431 = vmatprep.mubr.msk.f32.mxu1 %vm7740_vm1, %v7739_v1 }
  0x5b   : >> { %7439 = vmatprep.subr.mxu1 %v7739_v1  ;;  %7427 = vmatmul.mubr.msk.f32.vlgmr.msra.gmra.mrb[32].mxu0 %vm416_vm2, %v6922_v4  ;;  %v7068_v4 = vld [vmem:[%s8575_s4 + $0x104] sm:$0xf] }
  0x5c   : >> { %7432 = vmatmul.mubr.msk.f32.vlgmr.msra.gmra.mrb[32].mxu1 %vm416_vm2, %v6926_v5  ;;  %7435 = vmatpush3.msk.msra.mxu0 %vm420_vm0, %v6931_v6  ;;  %v7062_v5 = vld [vmem:[%s7862_s22 + $0x132] sm:$0x7f] }
  0x5d   : >> { %7440 = vmatpush3.msk.msra.mxu1 %vm420_vm0, %v6936_v7  ;;  %7436 = vmatprep.mubr.msk.f32.mxu0 %vm7740_vm1, %v7739_v1  ;;  %v7067_v6 = vld [vmem:[%s7902_s13 + $0x130] sm:$0x7f]  ;;  %v7073_v7 = vld [vmem:[%s8575_s4 + $0x108] sm:$0xf] }
  0x5e   : >> { %7444 = vmatprep.subr.mxu0 %v7739_v1  ;;  %7441 = vmatprep.mubr.msk.f32.mxu1 %vm7740_vm1, %v7739_v1 }
  0x5f   : >> { %7449 = vmatprep.subr.mxu1 %v7739_v1  ;;  %7437 = vmatmul.mubr.msk.f32.vlgmr.msra.gmra.mrb[34].mxu0 %vm416_vm2, %v6930_v8  ;;  %v7077_v8 = vld [vmem:[%s8575_s4 + $0x10c] sm:$0xf] }
  0x60   : >> { %7442 = vmatmul.mubr.msk.f32.vlgmr.msra.gmra.mrb[34].mxu1 %vm416_vm2, %v6935_v9  ;;  %7445 = vmatpush3.msk.msra.mxu0 %vm420_vm0, %v6941_v10  ;;  %v7072_v9 = vld [vmem:[%s7928_s8 + $0x130] sm:$0x7f] }
  0x61   : >> { %7450 = vmatpush3.msk.msra.mxu1 %vm420_vm0, %v6945_v11  ;;  %7446 = vmatprep.mubr.msk.f32.mxu0 %vm7740_vm1, %v7739_v1  ;;  %v7076_v10 = vld [vmem:[%s7902_s13 + $0x131] sm:$0x7f] }
  0x62   : >> { %7454 = vmatprep.subr.mxu0 %v7739_v1  ;;  %7451 = vmatprep.mubr.msk.f32.mxu1 %vm7740_vm1, %v7739_v1  ;;  %v7081_v11 = vld [vmem:[%s8575_s4 + $0x110] sm:$0xf] }
  0x63   : >> { %7459 = vmatprep.subr.mxu1 %v7739_v1  ;;  %7447 = vmatmul.mubr.msk.f32.vlgmr.msra.gmra.mrb[36].mxu0 %vm416_vm2, %v6940_v12  ;;  %v7085_v12 = vld [vmem:[%s8575_s4 + $0x114] sm:$0xf] }
  0x64   : >> { %7452 = vmatmul.mubr.msk.f32.vlgmr.msra.gmra.mrb[36].mxu1 %vm416_vm2, %v6944_v13  ;;  %7455 = vmatpush3.msk.msra.mxu0 %vm420_vm0, %v6949_v14  ;;  %v7080_v13 = vld [vmem:[%s7928_s8 + $0x131] sm:$0x7f] }
  0x65   : >> { %7460 = vmatpush3.msk.msra.mxu1 %vm420_vm0, %v6953_v15  ;;  %7456 = vmatprep.mubr.msk.f32.mxu0 %vm7740_vm1, %v7739_v1  ;;  %v7084_v14 = vld [vmem:[%s7902_s13 + $0x132] sm:$0x7f] }
  0x66   : >> { %7464 = vmatprep.subr.mxu0 %v7739_v1  ;;  %7461 = vmatprep.mubr.msk.f32.mxu1 %vm7740_vm1, %v7739_v1  ;;  %v7090_v15 = vld [vmem:[%s8575_s4 + $0x118] sm:$0xf] }
  0x67   : >> { %7469 = vmatprep.subr.mxu1 %v7739_v1  ;;  %7457 = vmatmul.mubr.msk.f32.vlgmr.msra.gmra.mrb[38].mxu0 %vm416_vm2, %v6948_v16  ;;  %v7095_v16 = vld [vmem:[%s8575_s4 + $0x11c] sm:$0xf] }
  0x68   : >> { %7462 = vmatmul.mubr.msk.f32.vlgmr.msra.gmra.mrb[38].mxu1 %vm416_vm2, %v6952_v17  ;;  %7465 = vmatpush3.msk.msra.mxu0 %vm420_vm0, %v6958_v18  ;;  %v7089_v17 = vld [vmem:[%s7862_s22 + $0x140] sm:$0x7f] }
  0x69   : >> { %7470 = vmatpush3.msk.msra.mxu1 %vm420_vm0, %v6963_v19  ;;  %7466 = vmatprep.mubr.msk.f32.mxu0 %vm7740_vm1, %v7739_v1  ;;  %v7094_v18 = vld [vmem:[%s7870_s10 + $0x140] sm:$0x7f] }
  0x6a   : >> { %7474 = vmatprep.subr.mxu0 %v7739_v1  ;;  %7471 = vmatprep.mubr.msk.f32.mxu1 %vm7740_vm1, %v7739_v1  ;;  %v7099_v19 = vld [vmem:[%s8575_s4 + $0x120] sm:$0xf] }
  0x6b   : >> { %7479 = vmatprep.subr.mxu1 %v7739_v1  ;;  %7467 = vmatmul.mubr.msk.f32.vlgmr.msra.gmra.mrb[40].mxu0 %vm416_vm2, %v6957_v20  ;;  %v7103_v20 = vld [vmem:[%s8575_s4 + $0x124] sm:$0xf] }
  0x6c   : >> { %7472 = vmatmul.mubr.msk.f32.vlgmr.msra.gmra.mrb[40].mxu1 %vm416_vm2, %v6962_v21  ;;  %7475 = vmatpush3.msk.msra.mxu0 %vm420_vm0, %v6967_v22  ;;  %v7098_v21 = vld [vmem:[%s7862_s22 + $0x141] sm:$0x7f] }
  0x6d   : >> { %7480 = vmatpush3.msk.msra.mxu1 %vm420_vm0, %v6971_v23  ;;  %7476 = vmatprep.mubr.msk.f32.mxu0 %vm7740_vm1, %v7739_v1  ;;  %v7102_v22 = vld [vmem:[%s7870_s10 + $0x141] sm:$0x7f]  ;;  %v7107_v23 = vld [vmem:[%s8575_s4 + $0x128] sm:$0xf] }
  0x6e   : >> { %7484 = vmatprep.subr.mxu0 %v7739_v1  ;;  %7481 = vmatprep.mubr.msk.f32.mxu1 %vm7740_vm1, %v7739_v1 }
  0x6f   : >> { %7489 = vmatprep.subr.mxu1 %v7739_v1  ;;  %7477 = vmatmul.mubr.msk.f32.vlgmr.msra.gmra.mrb[42].mxu0 %vm416_vm2, %v6966_v24  ;;  %v7106_v24 = vld [vmem:[%s7862_s22 + $0x142] sm:$0x7f] }
  0x70   : >> { %7482 = vmatmul.mubr.msk.f32.vlgmr.msra.gmra.mrb[42].mxu1 %vm416_vm2, %v6970_v25  ;;  %7485 = vmatpush3.msk.msra.mxu0 %vm420_vm0, %v6975_v26 }
  0x71   : >> { %7490 = vmatpush3.msk.msra.mxu1 %vm420_vm0, %v6980_v27  ;;  %7486 = vmatprep.mubr.msk.f32.mxu0 %vm7740_vm1, %v7739_v1 }
  0x72   : >> { %7494 = vmatprep.subr.mxu0 %v7739_v1  ;;  %7491 = vmatprep.mubr.msk.f32.mxu1 %vm7740_vm1, %v7739_v1 }
  0x73   : >> { %7499 = vmatprep.subr.mxu1 %v7739_v1  ;;  %7487 = vmatmul.mubr.msk.f32.vlgmr.msra.gmra.mrb[44].mxu0 %vm416_vm2, %v6974_v28 }
  0x74   : >> { %7492 = vmatmul.mubr.msk.f32.vlgmr.msra.gmra.mrb[44].mxu1 %vm416_vm2, %v6979_v29  ;;  %7495 = vmatpush3.msk.msra.mxu0 %vm420_vm0, %v6985_v30 }
  0x75   : >> { %7500 = vmatpush3.msk.msra.mxu1 %vm420_vm0, %v6989_v31  ;;  %7496 = vmatprep.mubr.msk.f32.mxu0 %vm7740_vm1, %v7739_v1 }
  0x76   : >> { %7504 = vmatprep.subr.mxu0 %v7739_v1  ;;  %7501 = vmatprep.mubr.msk.f32.mxu1 %vm7740_vm1, %v7739_v1 }
  0x77   : >> { %7509 = vmatprep.subr.mxu1 %v7739_v1  ;;  %7497 = vmatmul.mubr.msk.f32.vlgmr.msra.gmra.mrb[46].mxu0 %vm416_vm2, %v6984_v32 }
  0x78   : >> { %7502 = vmatmul.mubr.msk.f32.vlgmr.msra.gmra.mrb[46].mxu1 %vm416_vm2, %v6988_v33  ;;  %7505 = vmatpush3.msk.msra.mxu0 %vm420_vm0, %v6993_v34 }
  0x79   : >> { %7510 = vmatpush3.msk.msra.mxu1 %vm420_vm0, %v6997_v35  ;;  %7506 = vmatprep.mubr.msk.f32.mxu0 %vm7740_vm1, %v7739_v1 }
  0x7a   : >> { %7514 = vmatprep.subr.mxu0 %v7739_v1  ;;  %7511 = vmatprep.mubr.msk.f32.mxu1 %vm7740_vm1, %v7739_v1 }
  0x7b   : >> { %7519 = vmatprep.subr.mxu1 %v7739_v1  ;;  %7507 = vmatmul.mubr.msk.f32.vlgmr.msra.gmra.mrb[48].mxu0 %vm416_vm2, %v6992_v36 }
  0x7c   : >> { %7512 = vmatmul.mubr.msk.f32.vlgmr.msra.gmra.mrb[48].mxu1 %vm416_vm2, %v6996_v37  ;;  %7515 = vmatpush3.msk.msra.mxu0 %vm420_vm0, %v7002_v38 }
  0x7d   : >> { %7520 = vmatpush3.msk.msra.mxu1 %vm420_vm0, %v7007_v39  ;;  %7516 = vmatprep.mubr.msk.f32.mxu0 %vm7740_vm1, %v7739_v1 }
  0x7e   : >> { %7524 = vmatprep.subr.mxu0 %v7739_v1  ;;  %7521 = vmatprep.mubr.msk.f32.mxu1 %vm7740_vm1, %v7739_v1 }
  0x7f   : >> { %7529 = vmatprep.subr.mxu1 %v7739_v1  ;;  %7517 = vmatmul.mubr.msk.f32.vlgmr.msra.gmra.mrb[50].mxu0 %vm416_vm2, %v7001_v40 }
  0x80   : >> { %7522 = vmatmul.mubr.msk.f32.vlgmr.msra.gmra.mrb[50].mxu1 %vm416_vm2, %v7006_v41  ;;  %7525 = vmatpush3.msk.msra.mxu0 %vm420_vm0, %v7011_v42 }
  0x81   : >> { %7530 = vmatpush3.msk.msra.mxu1 %vm420_vm0, %v7015_v43  ;;  %7526 = vmatprep.mubr.msk.f32.mxu0 %vm7740_vm1, %v7739_v1 }
  0x82   : >> { %7534 = vmatprep.subr.mxu0 %v7739_v1  ;;  %7531 = vmatprep.mubr.msk.f32.mxu1 %vm7740_vm1, %v7739_v1 }
  0x83   : >> { %7539 = vmatprep.subr.mxu1 %v7739_v1  ;;  %7527 = vmatmul.mubr.msk.f32.vlgmr.msra.gmra.mrb[52].mxu0 %vm416_vm2, %v7010_v44 }
  0x84   : >> { %7532 = vmatmul.mubr.msk.f32.vlgmr.msra.gmra.mrb[52].mxu1 %vm416_vm2, %v7014_v45  ;;  %7535 = vmatpush3.msk.msra.mxu0 %vm420_vm0, %v7019_v46 }
  0x85   : >> { %7540 = vmatpush3.msk.msra.mxu1 %vm420_vm0, %v7024_v47  ;;  %7536 = vmatprep.mubr.msk.f32.mxu0 %vm7740_vm1, %v7739_v1 }
  0x86   : >> { %7544 = vmatprep.subr.mxu0 %v7739_v1  ;;  %7541 = vmatprep.mubr.msk.f32.mxu1 %vm7740_vm1, %v7739_v1 }
  0x87   : >> { %7549 = vmatprep.subr.mxu1 %v7739_v1  ;;  %7537 = vmatmul.mubr.msk.f32.vlgmr.msra.gmra.mrb[54].mxu0 %vm416_vm2, %v7018_v48 }
  0x88   : >> { %7542 = vmatmul.mubr.msk.f32.vlgmr.msra.gmra.mrb[54].mxu1 %vm416_vm2, %v7023_v49  ;;  %7545 = vmatpush3.msk.msra.mxu0 %vm420_vm0, %v7029_v50 }
  0x89   : >> { %7550 = vmatpush3.msk.msra.mxu1 %vm420_vm0, %v7033_v51  ;;  %7546 = vmatprep.mubr.msk.f32.mxu0 %vm7740_vm1, %v7739_v1 }
  0x8a   : >> { %7554 = vmatprep.subr.mxu0 %v7739_v1  ;;  %7551 = vmatprep.mubr.msk.f32.mxu1 %vm7740_vm1, %v7739_v1 }
  0x8b   : >> { %7559 = vmatprep.subr.mxu1 %v7739_v1  ;;  %7547 = vmatmul.mubr.msk.f32.vlgmr.msra.gmra.mrb[56].mxu0 %vm416_vm2, %v7028_v52 }
  0x8c   : >> { %7552 = vmatmul.mubr.msk.f32.vlgmr.msra.gmra.mrb[56].mxu1 %vm416_vm2, %v7032_v53  ;;  %7555 = vmatpush3.msk.msra.mxu0 %vm420_vm0, %v7037_v54 }
  0x8d   : >> { %7560 = vmatpush3.msk.msra.mxu1 %vm420_vm0, %v7041_v55  ;;  %7556 = vmatprep.mubr.msk.f32.mxu0 %vm7740_vm1, %v7739_v1 }
  0x8e   : >> { %7564 = vmatprep.subr.mxu0 %v7739_v1  ;;  %7561 = vmatprep.mubr.msk.f32.mxu1 %vm7740_vm1, %v7739_v1 }
  0x8f   : >> { %7569 = vmatprep.subr.mxu1 %v7739_v1  ;;  %7557 = vmatmul.mubr.msk.f32.vlgmr.msra.gmra.mrb[58].mxu0 %vm416_vm2, %v7036_v56 }
  0x90   : >> { %7562 = vmatmul.mubr.msk.f32.vlgmr.msra.gmra.mrb[58].mxu1 %vm416_vm2, %v7040_v57  ;;  %7565 = vmatpush3.msk.msra.mxu0 %vm420_vm0, %v7046_v58 }
  0x91   : >> { %7570 = vmatpush3.msk.msra.mxu1 %vm420_vm0, %v7051_v59  ;;  %7566 = vmatprep.mubr.msk.f32.mxu0 %vm7740_vm1, %v7739_v1 }
  0x92   : >> { %7574 = vmatprep.subr.mxu0 %v7739_v1  ;;  %7571 = vmatprep.mubr.msk.f32.mxu1 %vm7740_vm1, %v7739_v1 }
  0x93   : >> { %7579 = vmatprep.subr.mxu1 %v7739_v1  ;;  %7567 = vmatmul.mubr.msk.f32.vlgmr.msra.gmra.mrb[60].mxu0 %vm416_vm2, %v7045_v60 }
  0x94   : >> { %7572 = vmatmul.mubr.msk.f32.vlgmr.msra.gmra.mrb[60].mxu1 %vm416_vm2, %v7050_v61  ;;  %7575 = vmatpush3.msk.msra.mxu0 %vm420_vm0, %v7055_v62 }
  0x95   : >> { %7580 = vmatpush3.msk.msra.mxu1 %vm420_vm0, %v7059_v63  ;;  %7576 = vmatprep.mubr.msk.f32.mxu0 %vm7740_vm1, %v7739_v1 }
  0x96   : >> { %7584 = vmatprep.subr.mxu0 %v7739_v1  ;;  %7581 = vmatprep.mubr.msk.f32.mxu1 %vm7740_vm1, %v7739_v1 }
  0x97   : >> { %7589 = vmatprep.subr.mxu1 %v7739_v1  ;;  %7577 = vmatmul.mubr.msk.f32.vlgmr.msra.gmra.mrb[62].mxu0 %vm416_vm2, %v7054_v0 }
  0x98   : >> { %7582 = vmatmul.mubr.msk.f32.vlgmr.msra.gmra.mrb[62].mxu1 %vm416_vm2, %v7058_v2  ;;  %7585 = vmatpush3.msk.msra.mxu0 %vm420_vm0, %v7063_v3 }
  0x99   : >> { %7590 = vmatpush3.msk.msra.mxu1 %vm420_vm0, %v7068_v4  ;;  %7586 = vmatprep.mubr.msk.f32.mxu0 %vm7740_vm1, %v7739_v1 }
  0x9a   : >> { %7594 = vmatprep.subr.mxu0 %v7739_v1  ;;  %7591 = vmatprep.mubr.msk.f32.mxu1 %vm7740_vm1, %v7739_v1 }
  0x9b   : >> { %7599 = vmatprep.subr.mxu1 %v7739_v1  ;;  %7587 = vmatmul.mubr.msk.f32.vlgmr.msra.gmra.mrb[64].mxu0 %vm416_vm2, %v7062_v5 }
  0x9c   : >> { %7592 = vmatmul.mubr.msk.f32.vlgmr.msra.gmra.mrb[64].mxu1 %vm416_vm2, %v7067_v6  ;;  %7595 = vmatpush3.msk.msra.mxu0 %vm420_vm0, %v7073_v7 }
  0x9d   : >> { %7600 = vmatpush3.msk.msra.mxu1 %vm420_vm0, %v7077_v8  ;;  %7596 = vmatprep.mubr.msk.f32.mxu0 %vm7740_vm1, %v7739_v1 }
  0x9e   : >> { %7604 = vmatprep.subr.mxu0 %v7739_v1  ;;  %7601 = vmatprep.mubr.msk.f32.mxu1 %vm7740_vm1, %v7739_v1 }
  0x9f   : >> { %7609 = vmatprep.subr.mxu1 %v7739_v1  ;;  %7597 = vmatmul.mubr.msk.f32.vlgmr.msra.gmra.mrb[66].mxu0 %vm416_vm2, %v7072_v9 }
  0xa0   : >> { %7602 = vmatmul.mubr.msk.f32.vlgmr.msra.gmra.mrb[66].mxu1 %vm416_vm2, %v7076_v10  ;;  %7605 = vmatpush3.msk.msra.mxu0 %vm420_vm0, %v7081_v11 }
  0xa1   : >> { %7610 = vmatpush3.msk.msra.mxu1 %vm420_vm0, %v7085_v12  ;;  %7606 = vmatprep.mubr.msk.f32.mxu0 %vm7740_vm1, %v7739_v1 }
  0xa2   : >> { %7614 = vmatprep.subr.mxu0 %v7739_v1  ;;  %7611 = vmatprep.mubr.msk.f32.mxu1 %vm7740_vm1, %v7739_v1 }
  0xa3   : >> { %7619 = vmatprep.subr.mxu1 %v7739_v1  ;;  %7607 = vmatmul.mubr.msk.f32.vlgmr.msra.gmra.mrb[68].mxu0 %vm416_vm2, %v7080_v13 }
  0xa4   : >> { %7612 = vmatmul.mubr.msk.f32.vlgmr.msra.gmra.mrb[68].mxu1 %vm416_vm2, %v7084_v14  ;;  %7615 = vmatpush3.msk.msra.mxu0 %vm420_vm0, %v7090_v15 }
  0xa5   : >> { %7620 = vmatpush3.msk.msra.mxu1 %vm420_vm0, %v7095_v16  ;;  %7616 = vmatprep.mubr.msk.f32.mxu0 %vm7740_vm1, %v7739_v1 }
  0xa6   : >> { %7624 = vmatprep.subr.mxu0 %v7739_v1  ;;  %7621 = vmatprep.mubr.msk.f32.mxu1 %vm7740_vm1, %v7739_v1 }
  0xa7   : >> { %7629 = vmatprep.subr.mxu1 %v7739_v1  ;;  %7617 = vmatmul.mubr.msk.f32.vlgmr.msra.gmra.mrb[70].mxu0 %vm416_vm2, %v7089_v17 }
  0xa8   : >> { %7622 = vmatmul.mubr.msk.f32.vlgmr.msra.gmra.mrb[70].mxu1 %vm416_vm2, %v7094_v18  ;;  %7625 = vmatpush3.msk.msra.mxu0 %vm420_vm0, %v7099_v19 }
  0xa9   : >> { %7630 = vmatpush3.msk.msra.mxu1 %vm420_vm0, %v7103_v20  ;;  %7626 = vmatprep.mubr.msk.f32.mxu0 %vm7740_vm1, %v7739_v1 }
  0xaa   : >> { %7634 = vmatprep.subr.mxu0 %v7739_v1  ;;  %7631 = vmatprep.mubr.msk.f32.mxu1 %vm7740_vm1, %v7739_v1 }
  0xab   : >> { %7627 = vmatmul.mubr.msk.f32.vlgmr.msra.gmra.mrb[72].mxu0 %vm416_vm2, %v7098_v21 }
  0xac   : >> { %7632 = vmatmul.mubr.msk.f32.vlgmr.msra.gmra.mrb[72].mxu1 %vm416_vm2, %v7102_v22  ;;  %7635 = vmatpush3.msk.msra.mxu0 %vm420_vm0, %v7107_v23 }
  0xad   : >> { %7636 = vmatprep.mubr.msk.f32.mxu0 %vm7740_vm1, %v7739_v1 }
  0xaf   : >> { %7637 = vmatmul.mubr.msk.f32.vlgmr.msra.gmra.mrb[74].mxu0 %vm416_vm2, %v7106_v24 }
  0xee   : >> { %v490_v25 = vpop.f32.mrb[0].mxu0 }
  0xef   : >> { %v566_v26 = vpop.f32.mrb[0].mxu1  ;;  %v7268_v28 = vpop.f32.mrb[1].mxu0 }
  0xf0   : >> { %v567_v27 = vadd.f32 %v566_v26, %v490_v25  ;;  %v7273_v29 = vpop.f32.mrb[1].mxu1 }
  0xf2   : >> { %v645_v30 = vpop.f32.mrb[2].mxu0 }
  0xf3   : >> { %v725_v31 = vpop.f32.mrb[2].mxu1  ;;  %v649_v32 = vadd.f32 %v645_v30, %v567_v27  ;;  %v7278_v33 = vpop.f32.mrb[3].mxu0 }
  0xf4   : >> { %v7283_v34 = vpop.f32.mrb[3].mxu1 }
  0xf5   : >> { %v729_v35 = vadd.f32 %v725_v31, %v649_v32 }
  0xf6   : >> { %v805_v36 = vpop.f32.mrb[4].mxu0 }
  0xf7   : >> { %v886_v37 = vpop.f32.mrb[4].mxu1  ;;  %v809_v38 = vadd.f32 %v805_v36, %v729_v35  ;;  %v7288_v39 = vpop.f32.mrb[5].mxu0 }
  0xf8   : >> { %v7293_v40 = vpop.f32.mrb[5].mxu1 }
  0xf9   : >> { %v890_v1 = vadd.f32 %v886_v37, %v809_v38 }
  0xfa   : >> { %v967_v41 = vpop.f32.mrb[6].mxu0 }
  0xfb   : >> { %v1047_v42 = vpop.f32.mrb[6].mxu1  ;;  %v971_v43 = vadd.f32 %v967_v41, %v890_v1  ;;  %v7298_v44 = vpop.f32.mrb[7].mxu0 }
  0xfc   : >> { %v7303_v45 = vpop.f32.mrb[7].mxu1 }
  0xfd   : >> { %v1051_v46 = vadd.f32 %v1047_v42, %v971_v43 }
  0xfe   : >> { %v1127_v47 = vpop.f32.mrb[8].mxu0 }
  0xff   : >> { %v1207_v48 = vpop.f32.mrb[8].mxu1  ;;  %v1131_v49 = vadd.f32 %v1127_v47, %v1051_v46  ;;  %v7308_v50 = vpop.f32.mrb[9].mxu0 }
 0x100   : >> { %v7313_v51 = vpop.f32.mrb[9].mxu1 }
 0x101   : >> { %v1211_v52 = vadd.f32 %v1207_v48, %v1131_v49 }
 0x102   : >> { %v1291_v53 = vpop.f32.mrb[10].mxu0 }
 0x103   : >> { %v1372_v54 = vpop.f32.mrb[10].mxu1  ;;  %v1295_v55 = vadd.f32 %v1291_v53, %v1211_v52  ;;  %v7318_v56 = vpop.f32.mrb[11].mxu0 }
 0x104   : >> { %v7323_v57 = vpop.f32.mrb[11].mxu1 }
 0x105   : >> { %v1376_v58 = vadd.f32 %v1372_v54, %v1295_v55 }
 0x106   : >> { %v1452_v59 = vpop.f32.mrb[12].mxu0 }
 0x107   : >> { %v1532_v60 = vpop.f32.mrb[12].mxu1  ;;  %v1456_v61 = vadd.f32 %v1452_v59, %v1376_v58  ;;  %v7328_v62 = vpop.f32.mrb[13].mxu0 }
 0x108   : >> { %v7333_v63 = vpop.f32.mrb[13].mxu1 }
 0x109   : >> { %v1536_v0 = vadd.f32 %v1532_v60, %v1456_v61 }
 0x10a   : >> { %v1612_v2 = vpop.f32.mrb[14].mxu0 }
 0x10b   : >> { %v1693_v3 = vpop.f32.mrb[14].mxu1  ;;  %v1616_v4 = vadd.f32 %v1612_v2, %v1536_v0  ;;  %v7338_v5 = vpop.f32.mrb[15].mxu0 }
 0x10c   : >> { %v7343_v6 = vpop.f32.mrb[15].mxu1 }
 0x10d   : >> { %v1697_v7 = vadd.f32 %v1693_v3, %v1616_v4 }
 0x10e   : >> { %v1774_v8 = vpop.f32.mrb[16].mxu0 }
 0x10f   : >> { %v1854_v9 = vpop.f32.mrb[16].mxu1  ;;  %v1778_v10 = vadd.f32 %v1774_v8, %v1697_v7  ;;  %v7348_v11 = vpop.f32.mrb[17].mxu0 }
 0x110   : >> { %v7353_v12 = vpop.f32.mrb[17].mxu1 }
 0x111   : >> { %v1858_v13 = vadd.f32 %v1854_v9, %v1778_v10 }
 0x112   : >> { %v1934_v14 = vpop.f32.mrb[18].mxu0 }
 0x113   : >> { %v2014_v15 = vpop.f32.mrb[18].mxu1  ;;  %v1938_v16 = vadd.f32 %v1934_v14, %v1858_v13  ;;  %v7358_v17 = vpop.f32.mrb[19].mxu0 }
 0x114   : >> { %v7363_v18 = vpop.f32.mrb[19].mxu1 }
 0x115   : >> { %v2018_v19 = vadd.f32 %v2014_v15, %v1938_v16 }
 0x116   : >> { %v2098_v20 = vpop.f32.mrb[20].mxu0 }
 0x117   : >> { %v2179_v21 = vpop.f32.mrb[20].mxu1  ;;  %v2102_v22 = vadd.f32 %v2098_v20, %v2018_v19  ;;  %v7368_v23 = vpop.f32.mrb[21].mxu0 }
 0x118   : >> { %v7373_v24 = vpop.f32.mrb[21].mxu1 }
 0x119   : >> { %v2183_v25 = vadd.f32 %v2179_v21, %v2102_v22 }
 0x11a   : >> { %v2259_v26 = vpop.f32.mrb[22].mxu0 }
 0x11b   : >> { %v2339_v27 = vpop.f32.mrb[22].mxu1  ;;  %v2263_v28 = vadd.f32 %v2259_v26, %v2183_v25  ;;  %v7378_v29 = vpop.f32.mrb[23].mxu0 }
 0x11c   : >> { %v7383_v30 = vpop.f32.mrb[23].mxu1 }
 0x11d   : >> { %v2343_v31 = vadd.f32 %v2339_v27, %v2263_v28 }
 0x11e   : >> { %v2419_v32 = vpop.f32.mrb[24].mxu0 }
 0x11f   : >> { %v2503_v33 = vpop.f32.mrb[24].mxu1  ;;  %v2423_v34 = vadd.f32 %v2419_v32, %v2343_v31  ;;  %v7388_v35 = vpop.f32.mrb[25].mxu0 }
 0x120   : >> { %v7393_v36 = vpop.f32.mrb[25].mxu1 }
 0x121   : >> { %v2507_v37 = vadd.f32 %v2503_v33, %v2423_v34 }
 0x122   : >> { %v2584_v38 = vpop.f32.mrb[26].mxu0 }
 0x123   : >> { %v2664_v39 = vpop.f32.mrb[26].mxu1  ;;  %v2588_v40 = vadd.f32 %v2584_v38, %v2507_v37  ;;  %v7398_v1 = vpop.f32.mrb[27].mxu0 }
 0x124   : >> { %v7403_v41 = vpop.f32.mrb[27].mxu1 }
 0x125   : >> { %v2668_v42 = vadd.f32 %v2664_v39, %v2588_v40 }
 0x126   : >> { %v2744_v43 = vpop.f32.mrb[28].mxu0 }
 0x127   : >> { %v2824_v44 = vpop.f32.mrb[28].mxu1  ;;  %v2748_v45 = vadd.f32 %v2744_v43, %v2668_v42  ;;  %v7408_v46 = vpop.f32.mrb[29].mxu0 }
 0x128   : >> { %v7413_v47 = vpop.f32.mrb[29].mxu1 }
 0x129   : >> { %v2828_v48 = vadd.f32 %v2824_v44, %v2748_v45 }
 0x12a   : >> { %v2905_v49 = vpop.f32.mrb[30].mxu0 }
 0x12b   : >> { %v2986_v50 = vpop.f32.mrb[30].mxu1  ;;  %v2909_v51 = vadd.f32 %v2905_v49, %v2828_v48  ;;  %v7418_v52 = vpop.f32.mrb[31].mxu0 }
 0x12c   : >> { %v7423_v53 = vpop.f32.mrb[31].mxu1 }
 0x12d   : >> { %v2990_v54 = vadd.f32 %v2986_v50, %v2909_v51 }
 0x12e   : >> { %v3066_v55 = vpop.f32.mrb[32].mxu0 }
 0x12f   : >> { %v3146_v56 = vpop.f32.mrb[32].mxu1  ;;  %v3070_v57 = vadd.f32 %v3066_v55, %v2990_v54  ;;  %v7428_v58 = vpop.f32.mrb[33].mxu0 }
 0x130   : >> { %v7433_v59 = vpop.f32.mrb[33].mxu1 }
 0x131   : >> { %v3150_v60 = vadd.f32 %v3146_v56, %v3070_v57 }
 0x132   : >> { %v3226_v61 = vpop.f32.mrb[34].mxu0 }
 0x133   : >> { %v3308_v62 = vpop.f32.mrb[34].mxu1  ;;  %v3230_v63 = vadd.f32 %v3226_v61, %v3150_v60  ;;  %v7438_v0 = vpop.f32.mrb[35].mxu0 }
 0x134   : >> { %v7443_v2 = vpop.f32.mrb[35].mxu1 }
 0x135   : >> { %v3312_v3 = vadd.f32 %v3308_v62, %v3230_v63 }
 0x136   : >> { %v3389_v4 = vpop.f32.mrb[36].mxu0 }
 0x137   : >> { %v3469_v5 = vpop.f32.mrb[36].mxu1  ;;  %v3393_v6 = vadd.f32 %v3389_v4, %v3312_v3  ;;  %v7448_v7 = vpop.f32.mrb[37].mxu0 }
 0x138   : >> { %v7453_v8 = vpop.f32.mrb[37].mxu1 }
 0x139   : >> { %v3473_v9 = vadd.f32 %v3469_v5, %v3393_v6 }
 0x13a   : >> { %v3549_v10 = vpop.f32.mrb[38].mxu0 }
 0x13b   : >> { %v3629_v11 = vpop.f32.mrb[38].mxu1  ;;  %v3553_v12 = vadd.f32 %v3549_v10, %v3473_v9  ;;  %v7458_v13 = vpop.f32.mrb[39].mxu0 }
 0x13c   : >> { %v7463_v14 = vpop.f32.mrb[39].mxu1 }
 0x13d   : >> { %v3633_v15 = vadd.f32 %v3629_v11, %v3553_v12 }
 0x13e   : >> { %v3710_v16 = vpop.f32.mrb[40].mxu0 }
 0x13f   : >> { %v3791_v17 = vpop.f32.mrb[40].mxu1  ;;  %v3714_v18 = vadd.f32 %v3710_v16, %v3633_v15  ;;  %v7468_v19 = vpop.f32.mrb[41].mxu0 }
 0x140   : >> { %v7473_v20 = vpop.f32.mrb[41].mxu1 }
 0x141   : >> { %v3795_v21 = vadd.f32 %v3791_v17, %v3714_v18 }
 0x142   : >> { %v3871_v22 = vpop.f32.mrb[42].mxu0 }
 0x143   : >> { %v3951_v23 = vpop.f32.mrb[42].mxu1  ;;  %v3875_v24 = vadd.f32 %v3871_v22, %v3795_v21  ;;  %v7478_v25 = vpop.f32.mrb[43].mxu0 }
 0x144   : >> { %v7483_v26 = vpop.f32.mrb[43].mxu1 }
 0x145   : >> { %v3955_v27 = vadd.f32 %v3951_v23, %v3875_v24 }
 0x146   : >> { %v4031_v28 = vpop.f32.mrb[44].mxu0 }
 0x147   : >> { %v4113_v29 = vpop.f32.mrb[44].mxu1  ;;  %v4035_v30 = vadd.f32 %v4031_v28, %v3955_v27  ;;  %v7488_v31 = vpop.f32.mrb[45].mxu0 }
 0x148   : >> { %v7493_v32 = vpop.f32.mrb[45].mxu1 }
 0x149   : >> { %v4117_v33 = vadd.f32 %v4113_v29, %v4035_v30 }
 0x14a   : >> { %v4194_v34 = vpop.f32.mrb[46].mxu0 }
 0x14b   : >> { %v4274_v35 = vpop.f32.mrb[46].mxu1  ;;  %v4198_v36 = vadd.f32 %v4194_v34, %v4117_v33  ;;  %v7498_v37 = vpop.f32.mrb[47].mxu0 }
 0x14c   : >> { %v7503_v38 = vpop.f32.mrb[47].mxu1 }
 0x14d   : >> { %v4278_v39 = vadd.f32 %v4274_v35, %v4198_v36 }
 0x14e   : >> { %v4354_v40 = vpop.f32.mrb[48].mxu0 }
 0x14f   : >> { %v4434_v1 = vpop.f32.mrb[48].mxu1  ;;  %v4358_v41 = vadd.f32 %v4354_v40, %v4278_v39  ;;  %v7508_v42 = vpop.f32.mrb[49].mxu0 }
 0x150   : >> { %v7513_v43 = vpop.f32.mrb[49].mxu1 }
 0x151   : >> { %v4438_v44 = vadd.f32 %v4434_v1, %v4358_v41 }
 0x152   : >> { %v4518_v45 = vpop.f32.mrb[50].mxu0 }
 0x153   : >> { %v4599_v46 = vpop.f32.mrb[50].mxu1  ;;  %v4522_v47 = vadd.f32 %v4518_v45, %v4438_v44  ;;  %v7518_v48 = vpop.f32.mrb[51].mxu0 }
 0x154   : >> { %v7523_v49 = vpop.f32.mrb[51].mxu1 }
 0x155   : >> { %v4603_v50 = vadd.f32 %v4599_v46, %v4522_v47 }
 0x156   : >> { %v4679_v51 = vpop.f32.mrb[52].mxu0 }
 0x157   : >> { %v4759_v52 = vpop.f32.mrb[52].mxu1  ;;  %v4683_v53 = vadd.f32 %v4679_v51, %v4603_v50  ;;  %v7528_v54 = vpop.f32.mrb[53].mxu0 }
 0x158   : >> { %v7533_v55 = vpop.f32.mrb[53].mxu1  ;;  %v7110_v54 = vld [vmem:[%s8576_s5] ss:$0 sm:$0xff] }
 0x159   : >> { %v4763_v56 = vadd.f32 %v4759_v52, %v4683_v53 }
 0x15a   : >> { %v4839_v57 = vpop.f32.mrb[54].mxu0 }
 0x15b   : >> { %v4920_v58 = vpop.f32.mrb[54].mxu1  ;;  %v4843_v59 = vadd.f32 %v4839_v57, %v4763_v56  ;;  %v7538_v60 = vpop.f32.mrb[55].mxu0 }
 0x15c   : >> { %v7543_v61 = vpop.f32.mrb[55].mxu1 }
 0x15d   : >> { %v4924_v62 = vadd.f32 %v4920_v58, %v4843_v59 }
 0x15e   : >> { %v5001_v63 = vpop.f32.mrb[56].mxu0 }
 0x15f   : >> { %v5081_v0 = vpop.f32.mrb[56].mxu1  ;;  %v5005_v2 = vadd.f32 %v5001_v63, %v4924_v62  ;;  %v7548_v3 = vpop.f32.mrb[57].mxu0 }
 0x160   : >> { %v7553_v4 = vpop.f32.mrb[57].mxu1 }
 0x161   : >> { %v5085_v5 = vadd.f32 %v5081_v0, %v5005_v2 }
 0x162   : >> { %v5161_v6 = vpop.f32.mrb[58].mxu0 }
 0x163   : >> { %v5241_v7 = vpop.f32.mrb[58].mxu1  ;;  %v5165_v8 = vadd.f32 %v5161_v6, %v5085_v5  ;;  %v7558_v9 = vpop.f32.mrb[59].mxu0 }
 0x164   : >> { %v7563_v10 = vpop.f32.mrb[59].mxu1 }
 0x165   : >> { %v5245_v11 = vadd.f32 %v5241_v7, %v5165_v8 }
 0x166   : >> { %v5323_v12 = vpop.f32.mrb[60].mxu0 }
 0x167   : >> { %v5404_v13 = vpop.f32.mrb[60].mxu1  ;;  %v5327_v14 = vadd.f32 %v5323_v12, %v5245_v11  ;;  %v7568_v15 = vpop.f32.mrb[61].mxu0 }
 0x168   : >> { %v7573_v16 = vpop.f32.mrb[61].mxu1 }
 0x169   : >> { %v5408_v17 = vadd.f32 %v5404_v13, %v5327_v14 }
 0x16a   : >> { %v5484_v18 = vpop.f32.mrb[62].mxu0 }
 0x16b   : >> { %v5564_v19 = vpop.f32.mrb[62].mxu1  ;;  %v5488_v20 = vadd.f32 %v5484_v18, %v5408_v17  ;;  %v7578_v21 = vpop.f32.mrb[63].mxu0 }
 0x16c   : >> { %v7583_v22 = vpop.f32.mrb[63].mxu1 }
 0x16d   : >> { %v5568_v23 = vadd.f32 %v5564_v19, %v5488_v20 }
 0x16e   : >> { %v5644_v24 = vpop.f32.mrb[64].mxu0 }
 0x16f   : >> { %v5725_v25 = vpop.f32.mrb[64].mxu1  ;;  %v5648_v26 = vadd.f32 %v5644_v24, %v5568_v23  ;;  %v7588_v27 = vpop.f32.mrb[65].mxu0 }
 0x170   : >> { %v7593_v28 = vpop.f32.mrb[65].mxu1 }
 0x171   : >> { %v5729_v29 = vadd.f32 %v5725_v25, %v5648_v26 }
 0x172   : >> { %v5806_v30 = vpop.f32.mrb[66].mxu0 }
 0x173   : >> { %v5886_v31 = vpop.f32.mrb[66].mxu1  ;;  %v5810_v32 = vadd.f32 %v5806_v30, %v5729_v29  ;;  %v7598_v33 = vpop.f32.mrb[67].mxu0 }
 0x174   : >> { %v7603_v34 = vpop.f32.mrb[67].mxu1 }
 0x175   : >> { %v5890_v35 = vadd.f32 %v5886_v31, %v5810_v32 }
 0x176   : >> { %v5966_v36 = vpop.f32.mrb[68].mxu0 }
 0x177   : >> { %v6046_v37 = vpop.f32.mrb[68].mxu1  ;;  %v5970_v38 = vadd.f32 %v5966_v36, %v5890_v35  ;;  %v7608_v39 = vpop.f32.mrb[69].mxu0 }
 0x178   : >> { %v7613_v40 = vpop.f32.mrb[69].mxu1 }
 0x179   : >> { %v6050_v1 = vadd.f32 %v6046_v37, %v5970_v38 }
 0x17a   : >> { %v6128_v41 = vpop.f32.mrb[70].mxu0 }
 0x17b   : >> { %v6209_v42 = vpop.f32.mrb[70].mxu1  ;;  %v6132_v43 = vadd.f32 %v6128_v41, %v6050_v1  ;;  %v7618_v44 = vpop.f32.mrb[71].mxu0 }
 0x17c   : >> { %v7623_v45 = vpop.f32.mrb[71].mxu1 }
 0x17d   : >> { %v6213_v46 = vadd.f32 %v6209_v42, %v6132_v43 }
 0x17e   : >> { %v6289_v47 = vpop.f32.mrb[72].mxu0 }
 0x17f   : >> { %v6369_v48 = vpop.f32.mrb[72].mxu1  ;;  %v6293_v49 = vadd.f32 %v6289_v47, %v6213_v46  ;;  %v7628_v50 = vpop.f32.mrb[73].mxu0 }
 0x180   : >> { %v7633_v51 = vpop.f32.mrb[73].mxu1 }
 0x181   : >> { %v6373_v52 = vadd.f32 %v6369_v48, %v6293_v49 }
 0x182   : >> { %v6449_v53 = vpop.f32.mrb[74].mxu0 }
 0x183   : >> { %v6453_v55 = vadd.f32 %v6449_v53, %v6373_v52  ;;  %v7638_v56 = vpop.f32.mrb[75].mxu0 }
 0x184   : > { %404 = sbr.rel (!%p402_p7) target bundleno = 22 (0x16), region = 201 }
 0x185   : >> { %v6461_v57 = vadd.f32 %v7110_v54, %v6453_v55 }
 0x187   : >> { %vm6462_vm3 = vcmp.ge.f32.partialorder %v6461_v57, 0.0  ;;  %v6463_v58 = vmul.f32 0.2, %v6461_v57 }
 0x189   : >> { %v6464_v59 = vsel %vm6462_vm3, %v6461_v57, %v6463_v58 }
 0x18a   : >> { %6468 = vst.msk [vmem:[%s6466_s16] sm:$0x7f] %vm6467_vm4, %v6464_v59 }
 0x18b PF: > { %s16_s25 = sadd.s32 1, %s7733_s25   ;;  %s8578_s21 = smov %s7725_s23 }
 0x18c   : > { %p13_p8 = scmp.ge.s32.totalorder %s16_s25, 6   ;;  %s8579_s22 = smov %s7729_s24 }
 0x18d   : > { %s8580_s23 = smov %s8583_s26  ;;  %s8581_s24 = smov %s8587_s27 }
 0x18e   :  { %15 = sbr.rel (!%p13_p8) target bundleno = 3 (0x3), region = 212 }

</bundles_post_ra>
